<compile_context>
chip_gen: v7x
topology: tpu7x:2x2x1
jax: 0.10.0
libtpu: 0.0.40
codegen_flags: <defaults>
</compile_context>

<pallas_src>
import functools

import jax
import jax.numpy as jnp
from jax.experimental import pallas as pl
from jax.experimental.pallas import tpu as pltpu

ALPHA, GAMMA = 0.25, 2.0
LAMBDA_CLS, LAMBDA_OBB, LAMBDA_ROT = 1.0, 1.0, 0.5
BACKGROUND_CLASS = 5
POS_IOU_THRESH = 0.5
EPS = 1e-7

ANCHOR_SPLITS = 2                       # extra parallel grid axis (v7x megacore when B small)
_VMEM_LIMIT_BYTES = 32 * 1024 * 1024    # safe on v5e/v6e (128 MiB) and v7x (64 MiB)
_FOCAL_RT_CANDIDATES = (256, 128, 64, 32, 16, 8)
_OBB_RT_CANDIDATES = (128, 64, 32, 16, 8)


def _round_up(n, m):
    return ((n + m - 1) // m) * m


def _plan_anchor_tiling(N, candidates, splits):
    """Pick a sublane-row tile Rt and padded row count Rp = splits * n_tiles * Rt.

    Anchors are packed as rows of 128 lanes; R = ceil(N/128) rows.  We always pad R up to a
    multiple of (Rt * splits), so a candidate always divides (never fall back to one huge tile).
    """
    R = max(_round_up(N, 128) // 128, 1)
    R8 = _round_up(R, 8)
    Rt = candidates[-1]
    for c in candidates:
        if c * splits <= R8:
            Rt = c
            break
    unit = Rt * splits
    Rp = _round_up(max(R, unit), unit)
    return Rt, Rp, Rp // unit


# ----------------------------------------------------------------------------
# Pallas kernel 1: sigmoid focal loss (torchvision semantics), per-(split,batch) sums.
# Layout: logits (B, C, Rp, 128) dense per-class planes; tgt (B, Rp, 128) int32 (-1 = pad).
# Grid: (splits, B, n_tiles); output (splits, B, 1, 1) written once at the last tile.
# ----------------------------------------------------------------------------
def _focal_kernel(logits_ref, tgt_ref, out_ref, acc_ref, *, alpha, gamma):
    n = pl.program_id(2)

    @pl.when(n == 0)
    def _init():
        acc_ref[...] = jnp.zeros_like(acc_ref)

    x = logits_ref[0].astype(jnp.float32)            # (C, Rt, 128)
    tgt = tgt_ref[0]                                 # (Rt, 128) int32

    cls_iota = jax.lax.broadcasted_iota(jnp.int32, x.shape, 0)
    t = (cls_iota == tgt[None]).astype(jnp.float32)  # in-kernel one-hot
    valid = (tgt >= 0).astype(jnp.float32)           # masks the anchor padding

    # EUP-lean sigmoid + BCE-with-logits sharing e = exp(-|x|); approx reciprocal (EUP slot).
    e = jnp.exp(-jnp.abs(x))
    one_plus_e = 1.0 + e
    inv = pl.reciprocal(one_plus_e, approx=True)
    p = jnp.where(x >= 0.0, inv, e * inv)            # sigmoid(x)
    ce = jnp.maximum(x, 0.0) - x * t + jnp.log(one_plus_e)

    p_t = p * t + (1.0 - p) * (1.0 - t)
    one_minus_pt = 1.0 - p_t
    if gamma == 2.0:                                 # static trace-time branch
        mod = one_minus_pt * one_minus_pt
    else:
        mod = jnp.power(one_minus_pt, gamma)
    alpha_t = alpha * t + (1.0 - alpha) * (1.0 - t)
    loss = alpha_t * ce * mod                        # (C, Rt, 128)

    # Per-step accumulation stays on the VPU (sum over the leading C axis is vreg adds);
    # the single cross-lane reduce happens once, at the last step.
    acc_ref[...] += jnp.sum(loss, axis=0) * valid

    @pl.when(n == pl.num_programs(2) - 1)
    def _finalize():
        out_ref[...] = jnp.sum(acc_ref[...]).reshape(1, 1, 1, 1)


def focal_loss_pallas(logits, tgt_cls, alpha=ALPHA, gamma=GAMMA, dma_dtype=None,
                      splits=ANCHOR_SPLITS):
    """logits: (B, N, C); tgt_cls: (B, N) int class indices (already clamped)."""
    B, N, C = logits.shape
    Rt, Rp, n_tiles = _plan_anchor_tiling(N, _FOCAL_RT_CANDIDATES, splits)
    Np = Rp * 128
    dt = dma_dtype if dma_dtype is not None else logits.dtype

    # Cast before the transpose so the relayout pass moves the (possibly halved) byte count.
    lg = jnp.transpose(logits.astype(dt), (0, 2, 1))                  # (B, C, N)
    lg = jnp.pad(lg, ((0, 0), (0, 0), (0, Np - N))).reshape(B, C, Rp, 128)
    tg = jnp.pad(tgt_cls.astype(jnp.int32), ((0, 0), (0, Np - N)),
                 constant_values=-1).reshape(B, Rp, 128)

    kernel = functools.partial(_focal_kernel, alpha=float(alpha), gamma=float(gamma))
    sums = pl.pallas_call(
        kernel,
        grid=(splits, B, n_tiles),
        in_specs=[pl.BlockSpec((1, C, Rt, 128),
                               lambda s, b, n: (b, 0, s * n_tiles + n, 0)),
                  pl.BlockSpec((1, Rt, 128),
                               lambda s, b, n: (b, s * n_tiles + n, 0))],
        out_specs=pl.BlockSpec((1, 1, 1, 1), lambda s, b, n: (s, b, 0, 0)),
        out_shape=jax.ShapeDtypeStruct((splits, B, 1, 1), jnp.float32),
        scratch_shapes=[pltpu.VMEM((Rt, 128), jnp.float32)],
        compiler_params=pltpu.CompilerParams(
            dimension_semantics=("parallel", "parallel", "arbitrary"),
            vmem_limit_bytes=_VMEM_LIMIT_BYTES),
    )(lg, tg)
    # sum_b mean_b(...) / B  ==  global mean over B*N*C elements (true N, not padded)
    return jnp.sum(sums) / float(B * N * C)


# ----------------------------------------------------------------------------
# Pallas kernel 2: per-anchor ProbIoU (1 - iou) and rotation (1 - cos) losses,
# masked-summed per (split, batch).  Anchors laid out dense on (sublane, lane).
#   pc/gc: (B, 8, Rp, 128)  planes [x0,x1,x2,x3,y0,y1,y2,y3]  (normalized coords, f32)
#   aux  : (B, 3, Rp, 128)  planes [pred_angle, gt_angle, mask]
#   wh   : (B, 2) f32 in SMEM  (per-image W, H)
# Output: (splits, B, 1, 4) = [sum(mask*hd), sum(mask*(1-cos)), sum(mask), 0].
# ----------------------------------------------------------------------------
def _obb_rot_kernel(wh_ref, pc_ref, gc_ref, aux_ref, out_ref, acc_ref, *, eps):
    b = pl.program_id(1)
    n = pl.program_id(2)

    @pl.when(n == 0)
    def _init():
        acc_ref[...] = jnp.zeros_like(acc_ref)

    Wf = wh_ref[b, 0]
    Hf = wh_ref[b, 1]

    def centers_and_sq(ref):
        xs = [ref[0, i].astype(jnp.float32) * Wf for i in range(4)]       # (Rt, 128)
        ys = [ref[0, 4 + i].astype(jnp.float32) * Hf for i in range(4)]
        cx = (xs[0] + xs[1] + xs[2] + xs[3]) * 0.25
        cy = (ys[0] + ys[1] + ys[2] + ys[3]) * 0.25
        w2 = (xs[1] - xs[0]) ** 2 + (ys[1] - ys[0]) ** 2                  # squared lengths
        h2 = (xs[2] - xs[1]) ** 2 + (ys[2] - ys[1]) ** 2
        return cx, cy, w2, h2

    x1, y1, w1sq, h1sq = centers_and_sq(pc_ref)
    x2, y2, w2sq, h2sq = centers_and_sq(gc_ref)
    r1 = aux_ref[0, 0].astype(jnp.float32)
    r2 = aux_ref[0, 1].astype(jnp.float32)
    m = aux_ref[0, 2].astype(jnp.float32)

    def cov(wsq, hsq, r):
        a = wsq * (1.0 / 12.0)
        bb = hsq * (1.0 / 12.0)
        c = jnp.cos(r)
        s = jnp.sin(r)
        return (a * c * c + bb * s * s,
                a * s * s + bb * c * c,
                (a - bb) * c * s, c, s)

    a1, b1, c1, cr1, sr1 = cov(w1sq, h1sq, r1)
    a2, b2, c2, cr2, sr2 = cov(w2sq, h2sq, r2)

    sa, sb, sc = a1 + a2, b1 + b2, c1 + c2
    num = jnp.maximum(sa * sb - sc * sc, 0.0)          # clamp FP cancellation (NaN guard)
    inv_denom = pl.reciprocal(num + eps, approx=True)
    dx, dy = x1 - x2, y1 - y2
    t1 = (sa * dy * dy + sb * dx * dx) * inv_denom * 0.25
    t2 = (sc * (-dx) * dy) * inv_denom * 0.5
    det1 = jnp.maximum(a1 * b1 - c1 * c1, 0.0)
    det2 = jnp.maximum(a2 * b2 - c2 * c2, 0.0)
    inv_d3 = pl.reciprocal(4.0 * jnp.sqrt(det1 * det2) + eps, approx=True)
    t3 = jnp.log(num * inv_d3 + eps) * 0.5
    bd = jnp.clip(t1 + t2 + t3, eps, 100.0)
    hd = jnp.sqrt(1.0 - jnp.exp(-bd) + eps)            # = 1 - probiou (Hellinger distance)

    rot = 1.0 - (cr1 * cr2 + sr1 * sr2)                # = 1 - cos(r1 - r2)

    # VPU-only per-step accumulation; cross-lane reduce deferred to the last step.
    acc_ref[0] += m * hd
    acc_ref[1] += m * rot
    acc_ref[2] += m

    @pl.when(n == pl.num_programs(2) - 1)
    def _finalize():
        obb_s = jnp.sum(acc_ref[0])
        rot_s = jnp.sum(acc_ref[1])
        cnt_s = jnp.sum(acc_ref[2])
        lane = jax.lax.broadcasted_iota(jnp.int32, (1, 1, 1, 4), 3)
        out_ref[...] = (jnp.where(lane == 0, obb_s, 0.0)
                        + jnp.where(lane == 1, rot_s, 0.0)
                        + jnp.where(lane == 2, cnt_s, 0.0))


def obb_rot_sums_pallas(pred_verts, gt_verts, pred_ang, gt_ang, pos_mask, wh,
                        dma_dtype=None, splits=ANCHOR_SPLITS):
    """pred_verts/gt_verts: (B,N,8) normalized; pred_ang/gt_ang/pos_mask: (B,N); wh: (B,2)."""
    B, N, _ = pred_verts.shape
    Rt, Rp, n_tiles = _plan_anchor_tiling(N, _OBB_RT_CANDIDATES, splits)
    Np = Rp * 128
    aux_dt = dma_dtype if dma_dtype is not None else jnp.float32

    def pack_coords(v):
        # (B, N, 8) -> (B, 8, Rp, 128), planes [x0..x3, y0..y3].  Coordinates stay f32:
        # bf16 would cause catastrophic cancellation in (x1 - x2) for well-matched boxes.
        xs = jnp.transpose(v[..., 0::2], (0, 2, 1))                      # (B, 4, N)
        ys = jnp.transpose(v[..., 1::2], (0, 2, 1))                      # (B, 4, N)
        planes = jnp.concatenate([xs, ys], axis=1).astype(jnp.float32)   # (B, 8, N)
        planes = jnp.pad(planes, ((0, 0), (0, 0), (0, Np - N)))
        return planes.reshape(B, 8, Rp, 128)

    pc = pack_coords(pred_verts)
    gc = pack_coords(gt_verts)
    aux = jnp.stack([pred_ang.astype(jnp.float32),
                     gt_ang.astype(jnp.float32),
                     pos_mask.astype(jnp.float32)], axis=1)              # (B, 3, N)
    aux = jnp.pad(aux, ((0, 0), (0, 0), (0, Np - N))).reshape(B, 3, Rp, 128).astype(aux_dt)

    kernel = functools.partial(_obb_rot_kernel, eps=EPS)
    out = pl.pallas_call(
        kernel,
        grid=(splits, B, n_tiles),
        in_specs=[pl.BlockSpec(memory_space=pltpu.MemorySpace.SMEM),      # wh (B, 2)
                  pl.BlockSpec((1, 8, Rt, 128),
                               lambda s, b, n: (b, 0, s * n_tiles + n, 0)),
                  pl.BlockSpec((1, 8, Rt, 128),
                               lambda s, b, n: (b, 0, s * n_tiles + n, 0)),
                  pl.BlockSpec((1, 3, Rt, 128),
                               lambda s, b, n: (b, 0, s * n_tiles + n, 0))],
        out_specs=pl.BlockSpec((1, 1, 1, 4), lambda s, b, n: (s, b, 0, 0)),
        out_shape=jax.ShapeDtypeStruct((splits, B, 1, 4), jnp.float32),
        scratch_shapes=[pltpu.VMEM((3, Rt, 128), jnp.float32)],
        compiler_params=pltpu.CompilerParams(
            dimension_semantics=("parallel", "parallel", "arbitrary"),
            vmem_limit_bytes=_VMEM_LIMIT_BYTES),
    )(wh.astype(jnp.float32), pc, gc, aux)
    out = jnp.sum(out, axis=0)                                           # (B, 1, 4)
    return out[:, 0, 0], out[:, 0, 1], out[:, 0, 2]


# ----------------------------------------------------------------------------
# Plain-JAX glue (helpers that the original module imports but does not define).
# ----------------------------------------------------------------------------
def _cov_terms(w, h, r):
    a = w * w / 12.0
    b = h * h / 12.0
    c = jnp.cos(r)
    s = jnp.sin(r)
    return a * c * c + b * s * s, a * s * s + b * c * c, (a - b) * c * s


def _verts_to_xywhr(verts, angles, W, H):
    # TODO(synk): xyxyxyxy2xywhr is not in the provided source; standard convention used
    # (centroid + adjacent-edge lengths + given angle, scaled to pixel coords by (W, H)).
    xs = verts[:, 0::2] * W
    ys = verts[:, 1::2] * H
    cx = jnp.mean(xs, axis=1)
    cy = jnp.mean(ys, axis=1)
    w = jnp.sqrt((xs[:, 1] - xs[:, 0]) ** 2 + (ys[:, 1] - ys[:, 0]) ** 2)
    h = jnp.sqrt((xs[:, 2] - xs[:, 1]) ** 2 + (ys[:, 2] - ys[:, 1]) ** 2)
    return jnp.stack([cx, cy, w, h, angles], axis=-1)


def _probiou_matrix(obb1, obb2, eps=EPS):
    # Pairwise ProbIoU (N, M) between anchor OBBs and GT OBBs (used only for matching).
    x1, y1, w1, h1, r1 = [obb1[:, i:i + 1] for i in range(5)]      # (N, 1)
    x2, y2, w2, h2, r2 = [obb2[None, :, i] for i in range(5)]      # (1, M)
    a1, b1, c1 = _cov_terms(w1, h1, r1)
    a2, b2, c2 = _cov_terms(w2, h2, r2)
    num = jnp.maximum((a1 + a2) * (b1 + b2) - (c1 + c2) ** 2, 0.0)  # NaN guard
    denom = num + eps
    t1 = ((a1 + a2) * (y1 - y2) ** 2 + (b1 + b2) * (x1 - x2) ** 2) / denom * 0.25
    t2 = ((c1 + c2) * (x2 - x1) * (y1 - y2)) / denom * 0.5
    det1 = jnp.maximum(a1 * b1 - c1 * c1, 0.0)
    det2 = jnp.maximum(a2 * b2 - c2 * c2, 0.0)
    t3 = jnp.log(num / (4.0 * jnp.sqrt(det1 * det2) + eps) + eps) * 0.5
    bd = jnp.clip(t1 + t2 + t3, eps, 100.0)
    hd = jnp.sqrt(1.0 - jnp.exp(-bd) + eps)
    return 1.0 - hd


def match_anchors_to_targets(anchors_xywhr, gt_boxes, gt_angles, W, H,
                             iou_thresh=POS_IOU_THRESH):
    # TODO(synk): match_anchors_to_targets is not in the provided source; standard
    # max-ProbIoU assignment with a fixed positive threshold is used here.
    gt_xywhr = _verts_to_xywhr(gt_boxes, gt_angles, W, H)
    iou = _probiou_matrix(anchors_xywhr, gt_xywhr)          # (N, M)
    best_iou = jnp.max(iou, axis=1)
    best_gt = jnp.argmax(iou, axis=1)
    pos_mask = best_iou > iou_thresh
    return pos_mask, best_gt


def decode_vertices(deltas, anchors_xy, image_size=None):
    # TODO(synk): decode_vertices is not in the provided source; additive offsets in
    # normalized vertex coordinates are used here (image_size unused).
    return anchors_xy + deltas


# ----------------------------------------------------------------------------
# MultiTaskLoss forward (jitted so the packing/relayout passes fuse around the kernels).
# ----------------------------------------------------------------------------
@functools.partial(jax.jit, static_argnames=("dma_dtype",))
def _multi_task_loss_impl(preds, targets, anchors_xy, anchors_xywhr, wh,
                          lambda_cls, lambda_obb, lambda_rot, dma_dtype):
    logits, deltas, pred_angles = preds
    B, N, C = logits.shape
    Wb, Hb = wh[:, 0], wh[:, 1]

    # --- per-image anchor matching (data-dependent glue), vmapped over batch ---
    pos_mask, best_gt = jax.vmap(match_anchors_to_targets,
                                 in_axes=(None, 0, 0, 0, 0))(
        anchors_xywhr, targets["boxes"], targets["angle"][..., 0], Wb, Hb)

    # --- classification targets + focal loss (Pallas kernel 1, in-kernel one-hot) ---
    cls_per_anchor = jnp.take_along_axis(targets["class_idx"], best_gt, axis=1)
    tgt_cls = jnp.where(pos_mask, cls_per_anchor, BACKGROUND_CLASS)
    tgt_cls = jnp.minimum(tgt_cls, C - 1).astype(jnp.int32)    # matches clamp_max(C-1)
    loss_cls = focal_loss_pallas(logits, tgt_cls, dma_dtype=dma_dtype)

    # --- matched GT per anchor (gather glue) ---
    gt_boxes_m = jnp.take_along_axis(targets["boxes"], best_gt[..., None], axis=1)   # (B,N,8)
    gt_angles_m = jnp.take_along_axis(targets["angle"], best_gt[..., None], axis=1)[..., 0]

    # decode_vertices (anchors + deltas) fuses with the packing pass under this jit.
    pred_verts = decode_vertices(deltas, anchors_xy)                                  # (B,N,8)
    pang = pred_angles[..., 0].astype(jnp.float32)                                    # (B,N)
    gang = gt_angles_m.astype(jnp.float32)                                            # (B,N)
    maskf = pos_mask.astype(jnp.float32)                                              # (B,N)

    obb_sum, rot_sum, cnt = obb_rot_sums_pallas(
        pred_verts.astype(jnp.float32), gt_boxes_m.astype(jnp.float32),
        pang, gang, maskf, wh, dma_dtype=dma_dtype)

    valid = cnt > 0.0
    valid_batches = jnp.sum(valid.astype(jnp.float32))
    safe_cnt = jnp.maximum(cnt, 1.0)
    obb_per_b = jnp.where(valid, obb_sum / safe_cnt, 0.0)   # per-batch mean over positives
    rot_per_b = jnp.where(valid, rot_sum / safe_cnt, 0.0)
    safe_vb = jnp.maximum(valid_batches, 1.0)
    loss_obb = jnp.where(valid_batches > 0, jnp.sum(obb_per_b) / safe_vb, 0.0)
    loss_rot = jnp.where(valid_batches > 0, jnp.sum(rot_per_b) / safe_vb, 0.0)

    total = lambda_cls * loss_cls + lambda_obb * loss_obb + lambda_rot * loss_rot
    return total, loss_cls, loss_obb, loss_rot


def multi_task_loss(preds, targets, anchors_xy, anchors_xywhr, image_sizes,
                    lambda_cls=LAMBDA_CLS, lambda_obb=LAMBDA_OBB, lambda_rot=LAMBDA_ROT,
                    dma_dtype=None):
    wh = jnp.asarray([[float(s[0]), float(s[1])] for s in image_sizes], jnp.float32)
    return _multi_task_loss_impl(preds, targets, anchors_xy, anchors_xywhr, wh,
                                 lambda_cls, lambda_obb, lambda_rot, dma_dtype)


# ----------------------------------------------------------------------------
# Example / smoke test.
# ----------------------------------------------------------------------------
if __name__ == "__main__":
    B, C, M = 2, 6, 4
    g = 72
    N = g * g                 # 5184 anchors: exercises multi-tile grids AND anchor padding
    key = jax.random.PRNGKey(0)
    k_logits, k_deltas, k_ang, k_cls, k_gta = jax.random.split(key, 5)

    image_sizes = [(128, 96), (160, 120)]

    # Anchors: g x g grid of axis-aligned boxes, vertex format, normalized [0,1] coords.
    cs = (jnp.arange(g, dtype=jnp.float32) + 0.5) / g
    cxg, cyg = jnp.meshgrid(cs, cs, indexing="xy")
    cx, cy = cxg.reshape(-1), cyg.reshape(-1)
    hw, hh = 0.06, 0.08
    anchors_single = jnp.stack(
        [cx - hw, cy - hh, cx + hw, cy - hh, cx + hw, cy + hh, cx - hw, cy + hh],
        axis=-1)                                            # (N, 8)
    anchors_xy = jnp.broadcast_to(anchors_single[None], (B, N, 8))
    anchors_xywhr = _verts_to_xywhr(anchors_single, jnp.zeros((N,), jnp.float32),
                                    float(image_sizes[0][0]), float(image_sizes[0][1]))

    # Ground truth: boxes copied from a few anchors (guarantees positive matches).
    gt_idx = jnp.array([[3, 170, 1033, 2500], [5, 620, 2048, 3600]], dtype=jnp.int32)
    gt_boxes = jnp.stack([anchors_single[gt_idx[b]] for b in range(B)])       # (B, M, 8)
    gt_angles = 0.05 * jax.random.normal(k_gta, (B, M, 1), jnp.float32)
    gt_cls = jax.random.randint(k_cls, (B, M), 0, 5)
    targets = {"boxes": gt_boxes, "angle": gt_angles, "class_idx": gt_cls}

    logits = jax.random.normal(k_logits, (B, N, C), jnp.float32)
    deltas = 0.01 * jax.random.normal(k_deltas, (B, N, 8), jnp.float32)
    pred_angles = 0.1 * jax.random.normal(k_ang, (B, N, 1), jnp.float32)
    preds = (logits, deltas, pred_angles)

    total, l_cls, l_obb, l_rot = multi_task_loss(
        preds, targets, anchors_xy, anchors_xywhr, image_sizes)
    jax.block_until_ready(total)
    assert bool(jnp.isfinite(total)), "non-finite total loss"
    print("KERNEL_OK")
</pallas_src>

<mosaic_0001>
module attributes {stable_mosaic.version = 11 : i64} {
  func.func @_obb_rot_kernel(%arg0: i32, %arg1: i32, %arg2: i32, %arg3: memref<2x2xf32, #tpu.memory_space<smem>>, %arg4: memref<1x8x16x128xf32, #tpu.memory_space<vmem>>, %arg5: memref<1x8x16x128xf32, #tpu.memory_space<vmem>>, %arg6: memref<1x3x16x128xf32, #tpu.memory_space<vmem>>, %arg7: memref<1x1x1x4xf32, #tpu.memory_space<vmem>>, %arg8: memref<3x16x128xf32, #tpu.memory_space<vmem>>) attributes {dimension_semantics = [#tpu.dimension_semantics<parallel>, #tpu.dimension_semantics<parallel>, #tpu.dimension_semantics<arbitrary>], iteration_bounds = array<i64: 2, 2, 2>, scalar_prefetch = 0 : i64, scratch_operands = 1 : i64, tpu.core_type = #tpu.core_type<tc>, window_params = [{transform_indices = @transform_0, window_bounds = array<i64: 2, 2>}, {transform_indices = @transform_1, window_bounds = array<i64: 1, 8, 16, 128>}, {transform_indices = @transform_2, window_bounds = array<i64: 1, 8, 16, 128>}, {transform_indices = @transform_3, window_bounds = array<i64: 1, 3, 16, 128>}, {transform_indices = @transform_4, window_bounds = array<i64: 1, 1, 1, 4>}]} {
    %c0_i32 = arith.constant 0 : i32
    %0 = arith.cmpi eq, %arg2, %c0_i32 : i32
    %1 = arith.extui %0 : i1 to i32
    %c0_i32_0 = arith.constant 0 : i32
    %2 = arith.cmpi ne, %1, %c0_i32_0 : i32
    scf.if %2 {
      %cst_114 = arith.constant 0.000000e+00 : f32
      %248 = vector.broadcast %cst_114 : f32 to vector<3x16x128xf32>
      %c0_115 = arith.constant 0 : index
      %c0_116 = arith.constant 0 : index
      %c0_117 = arith.constant 0 : index
      %249 = vector.load %arg8[%c0_115, %c0_116, %c0_117] : memref<3x16x128xf32, #tpu.memory_space<vmem>>, vector<3x16x128xf32>
      tpu.vector_store %arg8[%c0_115, %c0_116, %c0_117], %248 {strides = array<i32>} : memref<3x16x128xf32, #tpu.memory_space<vmem>>, vector<3x16x128xf32>,
    } else {
    }
    %3 = arith.index_cast %arg1 : i32 to index
    %c0 = arith.constant 0 : index
    %4 = memref.load %arg3[%3, %c0] : memref<2x2xf32, #tpu.memory_space<smem>>
    %5 = arith.index_cast %arg1 : i32 to index
    %c1 = arith.constant 1 : index
    %6 = memref.load %arg3[%5, %c1] : memref<2x2xf32, #tpu.memory_space<smem>>
    %c0_1 = arith.constant 0 : index
    %c0_2 = arith.constant 0 : index
    %c0_3 = arith.constant 0 : index
    %c0_4 = arith.constant 0 : index
    %7 = vector.load %arg4[%c0_1, %c0_2, %c0_3, %c0_4] : memref<1x8x16x128xf32, #tpu.memory_space<vmem>>, vector<1x1x16x128xf32>
    %8 = vector.shape_cast %7 : vector<1x1x16x128xf32> to vector<16x128xf32>
    %9 = vector.broadcast %4 : f32 to vector<16x128xf32>
    %10 = arith.mulf %8, %9 : vector<16x128xf32>
    %c0_5 = arith.constant 0 : index
    %c1_6 = arith.constant 1 : index
    %c0_7 = arith.constant 0 : index
    %c0_8 = arith.constant 0 : index
    %11 = vector.load %arg4[%c0_5, %c1_6, %c0_7, %c0_8] : memref<1x8x16x128xf32, #tpu.memory_space<vmem>>, vector<1x1x16x128xf32>
    %12 = vector.shape_cast %11 : vector<1x1x16x128xf32> to vector<16x128xf32>
    %13 = vector.broadcast %4 : f32 to vector<16x128xf32>
    %14 = arith.mulf %12, %13 : vector<16x128xf32>
    %c0_9 = arith.constant 0 : index
    %c2 = arith.constant 2 : index
    %c0_10 = arith.constant 0 : index
    %c0_11 = arith.constant 0 : index
    %15 = vector.load %arg4[%c0_9, %c2, %c0_10, %c0_11] : memref<1x8x16x128xf32, #tpu.memory_space<vmem>>, vector<1x1x16x128xf32>
    %16 = vector.shape_cast %15 : vector<1x1x16x128xf32> to vector<16x128xf32>
    %17 = vector.broadcast %4 : f32 to vector<16x128xf32>
    %18 = arith.mulf %16, %17 : vector<16x128xf32>
    %c0_12 = arith.constant 0 : index
    %c3 = arith.constant 3 : index
    %c0_13 = arith.constant 0 : index
    %c0_14 = arith.constant 0 : index
    %19 = vector.load %arg4[%c0_12, %c3, %c0_13, %c0_14] : memref<1x8x16x128xf32, #tpu.memory_space<vmem>>, vector<1x1x16x128xf32>
    %20 = vector.shape_cast %19 : vector<1x1x16x128xf32> to vector<16x128xf32>
    %21 = vector.broadcast %4 : f32 to vector<16x128xf32>
    %22 = arith.mulf %20, %21 : vector<16x128xf32>
    %c0_15 = arith.constant 0 : index
    %c4 = arith.constant 4 : index
    %c0_16 = arith.constant 0 : index
    %c0_17 = arith.constant 0 : index
    %23 = vector.load %arg4[%c0_15, %c4, %c0_16, %c0_17] : memref<1x8x16x128xf32, #tpu.memory_space<vmem>>, vector<1x1x16x128xf32>
    %24 = vector.shape_cast %23 : vector<1x1x16x128xf32> to vector<16x128xf32>
    %25 = vector.broadcast %6 : f32 to vector<16x128xf32>
    %26 = arith.mulf %24, %25 : vector<16x128xf32>
    %c0_18 = arith.constant 0 : index
    %c5 = arith.constant 5 : index
    %c0_19 = arith.constant 0 : index
    %c0_20 = arith.constant 0 : index
    %27 = vector.load %arg4[%c0_18, %c5, %c0_19, %c0_20] : memref<1x8x16x128xf32, #tpu.memory_space<vmem>>, vector<1x1x16x128xf32>
    %28 = vector.shape_cast %27 : vector<1x1x16x128xf32> to vector<16x128xf32>
    %29 = vector.broadcast %6 : f32 to vector<16x128xf32>
    %30 = arith.mulf %28, %29 : vector<16x128xf32>
    %c0_21 = arith.constant 0 : index
    %c6 = arith.constant 6 : index
    %c0_22 = arith.constant 0 : index
    %c0_23 = arith.constant 0 : index
    %31 = vector.load %arg4[%c0_21, %c6, %c0_22, %c0_23] : memref<1x8x16x128xf32, #tpu.memory_space<vmem>>, vector<1x1x16x128xf32>
    %32 = vector.shape_cast %31 : vector<1x1x16x128xf32> to vector<16x128xf32>
    %33 = vector.broadcast %6 : f32 to vector<16x128xf32>
    %34 = arith.mulf %32, %33 : vector<16x128xf32>
    %c0_24 = arith.constant 0 : index
    %c7 = arith.constant 7 : index
    %c0_25 = arith.constant 0 : index
    %c0_26 = arith.constant 0 : index
    %35 = vector.load %arg4[%c0_24, %c7, %c0_25, %c0_26] : memref<1x8x16x128xf32, #tpu.memory_space<vmem>>, vector<1x1x16x128xf32>
    %36 = vector.shape_cast %35 : vector<1x1x16x128xf32> to vector<16x128xf32>
    %37 = vector.broadcast %6 : f32 to vector<16x128xf32>
    %38 = arith.mulf %36, %37 : vector<16x128xf32>
    %39 = arith.addf %10, %14 : vector<16x128xf32>
    %40 = arith.addf %39, %18 : vector<16x128xf32>
    %41 = arith.addf %40, %22 : vector<16x128xf32>
    %cst = arith.constant 2.500000e-01 : f32
    %42 = vector.broadcast %cst : f32 to vector<16x128xf32>
    %43 = arith.mulf %41, %42 : vector<16x128xf32>
    %44 = arith.addf %26, %30 : vector<16x128xf32>
    %45 = arith.addf %44, %34 : vector<16x128xf32>
    %46 = arith.addf %45, %38 : vector<16x128xf32>
    %cst_27 = arith.constant 2.500000e-01 : f32
    %47 = vector.broadcast %cst_27 : f32 to vector<16x128xf32>
    %48 = arith.mulf %46, %47 : vector<16x128xf32>
    %49 = arith.subf %14, %10 : vector<16x128xf32>
    %50 = arith.mulf %49, %49 : vector<16x128xf32>
    %51 = arith.subf %30, %26 : vector<16x128xf32>
    %52 = arith.mulf %51, %51 : vector<16x128xf32>
    %53 = arith.addf %50, %52 : vector<16x128xf32>
    %54 = arith.subf %18, %14 : vector<16x128xf32>
    %55 = arith.mulf %54, %54 : vector<16x128xf32>
    %56 = arith.subf %34, %30 : vector<16x128xf32>
    %57 = arith.mulf %56, %56 : vector<16x128xf32>
    %58 = arith.addf %55, %57 : vector<16x128xf32>
    %c0_28 = arith.constant 0 : index
    %c0_29 = arith.constant 0 : index
    %c0_30 = arith.constant 0 : index
    %c0_31 = arith.constant 0 : index
    %59 = vector.load %arg5[%c0_28, %c0_29, %c0_30, %c0_31] : memref<1x8x16x128xf32, #tpu.memory_space<vmem>>, vector<1x1x16x128xf32>
    %60 = vector.shape_cast %59 : vector<1x1x16x128xf32> to vector<16x128xf32>
    %61 = vector.broadcast %4 : f32 to vector<16x128xf32>
    %62 = arith.mulf %60, %61 : vector<16x128xf32>
    %c0_32 = arith.constant 0 : index
    %c1_33 = arith.constant 1 : index
    %c0_34 = arith.constant 0 : index
    %c0_35 = arith.constant 0 : index
    %63 = vector.load %arg5[%c0_32, %c1_33, %c0_34, %c0_35] : memref<1x8x16x128xf32, #tpu.memory_space<vmem>>, vector<1x1x16x128xf32>
    %64 = vector.shape_cast %63 : vector<1x1x16x128xf32> to vector<16x128xf32>
    %65 = vector.broadcast %4 : f32 to vector<16x128xf32>
    %66 = arith.mulf %64, %65 : vector<16x128xf32>
    %c0_36 = arith.constant 0 : index
    %c2_37 = arith.constant 2 : index
    %c0_38 = arith.constant 0 : index
    %c0_39 = arith.constant 0 : index
    %67 = vector.load %arg5[%c0_36, %c2_37, %c0_38, %c0_39] : memref<1x8x16x128xf32, #tpu.memory_space<vmem>>, vector<1x1x16x128xf32>
    %68 = vector.shape_cast %67 : vector<1x1x16x128xf32> to vector<16x128xf32>
    %69 = vector.broadcast %4 : f32 to vector<16x128xf32>
    %70 = arith.mulf %68, %69 : vector<16x128xf32>
    %c0_40 = arith.constant 0 : index
    %c3_41 = arith.constant 3 : index
    %c0_42 = arith.constant 0 : index
    %c0_43 = arith.constant 0 : index
    %71 = vector.load %arg5[%c0_40, %c3_41, %c0_42, %c0_43] : memref<1x8x16x128xf32, #tpu.memory_space<vmem>>, vector<1x1x16x128xf32>
    %72 = vector.shape_cast %71 : vector<1x1x16x128xf32> to vector<16x128xf32>
    %73 = vector.broadcast %4 : f32 to vector<16x128xf32>
    %74 = arith.mulf %72, %73 : vector<16x128xf32>
    %c0_44 = arith.constant 0 : index
    %c4_45 = arith.constant 4 : index
    %c0_46 = arith.constant 0 : index
    %c0_47 = arith.constant 0 : index
    %75 = vector.load %arg5[%c0_44, %c4_45, %c0_46, %c0_47] : memref<1x8x16x128xf32, #tpu.memory_space<vmem>>, vector<1x1x16x128xf32>
    %76 = vector.shape_cast %75 : vector<1x1x16x128xf32> to vector<16x128xf32>
    %77 = vector.broadcast %6 : f32 to vector<16x128xf32>
    %78 = arith.mulf %76, %77 : vector<16x128xf32>
    %c0_48 = arith.constant 0 : index
    %c5_49 = arith.constant 5 : index
    %c0_50 = arith.constant 0 : index
    %c0_51 = arith.constant 0 : index
    %79 = vector.load %arg5[%c0_48, %c5_49, %c0_50, %c0_51] : memref<1x8x16x128xf32, #tpu.memory_space<vmem>>, vector<1x1x16x128xf32>
    %80 = vector.shape_cast %79 : vector<1x1x16x128xf32> to vector<16x128xf32>
    %81 = vector.broadcast %6 : f32 to vector<16x128xf32>
    %82 = arith.mulf %80, %81 : vector<16x128xf32>
    %c0_52 = arith.constant 0 : index
    %c6_53 = arith.constant 6 : index
    %c0_54 = arith.constant 0 : index
    %c0_55 = arith.constant 0 : index
    %83 = vector.load %arg5[%c0_52, %c6_53, %c0_54, %c0_55] : memref<1x8x16x128xf32, #tpu.memory_space<vmem>>, vector<1x1x16x128xf32>
    %84 = vector.shape_cast %83 : vector<1x1x16x128xf32> to vector<16x128xf32>
    %85 = vector.broadcast %6 : f32 to vector<16x128xf32>
    %86 = arith.mulf %84, %85 : vector<16x128xf32>
    %c0_56 = arith.constant 0 : index
    %c7_57 = arith.constant 7 : index
    %c0_58 = arith.constant 0 : index
    %c0_59 = arith.constant 0 : index
    %87 = vector.load %arg5[%c0_56, %c7_57, %c0_58, %c0_59] : memref<1x8x16x128xf32, #tpu.memory_space<vmem>>, vector<1x1x16x128xf32>
    %88 = vector.shape_cast %87 : vector<1x1x16x128xf32> to vector<16x128xf32>
    %89 = vector.broadcast %6 : f32 to vector<16x128xf32>
    %90 = arith.mulf %88, %89 : vector<16x128xf32>
    %91 = arith.addf %62, %66 : vector<16x128xf32>
    %92 = arith.addf %91, %70 : vector<16x128xf32>
    %93 = arith.addf %92, %74 : vector<16x128xf32>
    %cst_60 = arith.constant 2.500000e-01 : f32
    %94 = vector.broadcast %cst_60 : f32 to vector<16x128xf32>
    %95 = arith.mulf %93, %94 : vector<16x128xf32>
    %96 = arith.addf %78, %82 : vector<16x128xf32>
    %97 = arith.addf %96, %86 : vector<16x128xf32>
    %98 = arith.addf %97, %90 : vector<16x128xf32>
    %cst_61 = arith.constant 2.500000e-01 : f32
    %99 = vector.broadcast %cst_61 : f32 to vector<16x128xf32>
    %100 = arith.mulf %98, %99 : vector<16x128xf32>
    %101 = arith.subf %66, %62 : vector<16x128xf32>
    %102 = arith.mulf %101, %101 : vector<16x128xf32>
    %103 = arith.subf %82, %78 : vector<16x128xf32>
    %104 = arith.mulf %103, %103 : vector<16x128xf32>
    %105 = arith.addf %102, %104 : vector<16x128xf32>
    %106 = arith.subf %70, %66 : vector<16x128xf32>
    %107 = arith.mulf %106, %106 : vector<16x128xf32>
    %108 = arith.subf %86, %82 : vector<16x128xf32>
    %109 = arith.mulf %108, %108 : vector<16x128xf32>
    %110 = arith.addf %107, %109 : vector<16x128xf32>
    %c0_62 = arith.constant 0 : index
    %c0_63 = arith.constant 0 : index
    %c0_64 = arith.constant 0 : index
    %c0_65 = arith.constant 0 : index
    %111 = vector.load %arg6[%c0_62, %c0_63, %c0_64, %c0_65] : memref<1x3x16x128xf32, #tpu.memory_space<vmem>>, vector<1x1x16x128xf32>
    %112 = vector.shape_cast %111 : vector<1x1x16x128xf32> to vector<16x128xf32>
    %c0_66 = arith.constant 0 : index
    %c1_67 = arith.constant 1 : index
    %c0_68 = arith.constant 0 : index
    %c0_69 = arith.constant 0 : index
    %113 = vector.load %arg6[%c0_66, %c1_67, %c0_68, %c0_69] : memref<1x3x16x128xf32, #tpu.memory_space<vmem>>, vector<1x1x16x128xf32>
    %114 = vector.shape_cast %113 : vector<1x1x16x128xf32> to vector<16x128xf32>
    %c0_70 = arith.constant 0 : index
    %c2_71 = arith.constant 2 : index
    %c0_72 = arith.constant 0 : index
    %c0_73 = arith.constant 0 : index
    %115 = vector.load %arg6[%c0_70, %c2_71, %c0_72, %c0_73] : memref<1x3x16x128xf32, #tpu.memory_space<vmem>>, vector<1x1x16x128xf32>
    %116 = vector.shape_cast %115 : vector<1x1x16x128xf32> to vector<16x128xf32>
    %cst_74 = arith.constant 0.0833333358 : f32
    %117 = vector.broadcast %cst_74 : f32 to vector<16x128xf32>
    %118 = arith.mulf %53, %117 : vector<16x128xf32>
    %cst_75 = arith.constant 0.0833333358 : f32
    %119 = vector.broadcast %cst_75 : f32 to vector<16x128xf32>
    %120 = arith.mulf %58, %119 : vector<16x128xf32>
    %121 = math.cos %112 : vector<16x128xf32>
    %122 = math.sin %112 : vector<16x128xf32>
    %123 = arith.mulf %118, %121 : vector<16x128xf32>
    %124 = arith.mulf %123, %121 : vector<16x128xf32>
    %125 = arith.mulf %120, %122 : vector<16x128xf32>
    %126 = arith.mulf %125, %122 : vector<16x128xf32>
    %127 = arith.addf %124, %126 : vector<16x128xf32>
    %128 = arith.mulf %118, %122 : vector<16x128xf32>
    %129 = arith.mulf %128, %122 : vector<16x128xf32>
    %130 = arith.mulf %120, %121 : vector<16x128xf32>
    %131 = arith.mulf %130, %121 : vector<16x128xf32>
    %132 = arith.addf %129, %131 : vector<16x128xf32>
    %133 = arith.subf %118, %120 : vector<16x128xf32>
    %134 = arith.mulf %133, %121 : vector<16x128xf32>
    %135 = arith.mulf %134, %122 : vector<16x128xf32>
    %cst_76 = arith.constant 0.0833333358 : f32
    %136 = vector.broadcast %cst_76 : f32 to vector<16x128xf32>
    %137 = arith.mulf %105, %136 : vector<16x128xf32>
    %cst_77 = arith.constant 0.0833333358 : f32
    %138 = vector.broadcast %cst_77 : f32 to vector<16x128xf32>
    %139 = arith.mulf %110, %138 : vector<16x128xf32>
    %140 = math.cos %114 : vector<16x128xf32>
    %141 = math.sin %114 : vector<16x128xf32>
    %142 = arith.mulf %137, %140 : vector<16x128xf32>
    %143 = arith.mulf %142, %140 : vector<16x128xf32>
    %144 = arith.mulf %139, %141 : vector<16x128xf32>
    %145 = arith.mulf %144, %141 : vector<16x128xf32>
    %146 = arith.addf %143, %145 : vector<16x128xf32>
    %147 = arith.mulf %137, %141 : vector<16x128xf32>
    %148 = arith.mulf %147, %141 : vector<16x128xf32>
    %149 = arith.mulf %139, %140 : vector<16x128xf32>
    %150 = arith.mulf %149, %140 : vector<16x128xf32>
    %151 = arith.addf %148, %150 : vector<16x128xf32>
    %152 = arith.subf %137, %139 : vector<16x128xf32>
    %153 = arith.mulf %152, %140 : vector<16x128xf32>
    %154 = arith.mulf %153, %141 : vector<16x128xf32>
    %155 = arith.addf %127, %146 : vector<16x128xf32>
    %156 = arith.addf %132, %151 : vector<16x128xf32>
    %157 = arith.addf %135, %154 : vector<16x128xf32>
    %158 = arith.mulf %155, %156 : vector<16x128xf32>
    %159 = arith.mulf %157, %157 : vector<16x128xf32>
    %160 = arith.subf %158, %159 : vector<16x128xf32>
    %cst_78 = arith.constant 0.000000e+00 : f32
    %161 = vector.broadcast %cst_78 : f32 to vector<16x128xf32>
    %162 = arith.maximumf %160, %161 : vector<16x128xf32>
    %cst_79 = arith.constant 1.000000e-07 : f32
    %163 = vector.broadcast %cst_79 : f32 to vector<16x128xf32>
    %164 = arith.addf %162, %163 : vector<16x128xf32>
    %165 = tpu.reciprocal %164 {approx = true} : vector<16x128xf32> -> vector<16x128xf32>
    %166 = arith.subf %43, %95 : vector<16x128xf32>
    %167 = arith.subf %48, %100 : vector<16x128xf32>
    %168 = arith.mulf %155, %167 : vector<16x128xf32>
    %169 = arith.mulf %168, %167 : vector<16x128xf32>
    %170 = arith.mulf %156, %166 : vector<16x128xf32>
    %171 = arith.mulf %170, %166 : vector<16x128xf32>
    %172 = arith.addf %169, %171 : vector<16x128xf32>
    %173 = arith.mulf %172, %165 : vector<16x128xf32>
    %cst_80 = arith.constant 2.500000e-01 : f32
    %174 = vector.broadcast %cst_80 : f32 to vector<16x128xf32>
    %175 = arith.mulf %173, %174 : vector<16x128xf32>
    %cst_81 = arith.constant 0.000000e+00 : f32
    %176 = vector.broadcast %cst_81 : f32 to vector<16x128xf32>
    %177 = arith.subf %176, %166 : vector<16x128xf32>
    %178 = arith.mulf %157, %177 : vector<16x128xf32>
    %179 = arith.mulf %178, %167 : vector<16x128xf32>
    %180 = arith.mulf %179, %165 : vector<16x128xf32>
    %cst_82 = arith.constant 5.000000e-01 : f32
    %181 = vector.broadcast %cst_82 : f32 to vector<16x128xf32>
    %182 = arith.mulf %180, %181 : vector<16x128xf32>
    %183 = arith.mulf %127, %132 : vector<16x128xf32>
    %184 = arith.mulf %135, %135 : vector<16x128xf32>
    %185 = arith.subf %183, %184 : vector<16x128xf32>
    %cst_83 = arith.constant 0.000000e+00 : f32
    %186 = vector.broadcast %cst_83 : f32 to vector<16x128xf32>
    %187 = arith.maximumf %185, %186 : vector<16x128xf32>
    %188 = arith.mulf %146, %151 : vector<16x128xf32>
    %189 = arith.mulf %154, %154 : vector<16x128xf32>
    %190 = arith.subf %188, %189 : vector<16x128xf32>
    %cst_84 = arith.constant 0.000000e+00 : f32
    %191 = vector.broadcast %cst_84 : f32 to vector<16x128xf32>
    %192 = arith.maximumf %190, %191 : vector<16x128xf32>
    %193 = arith.mulf %187, %192 : vector<16x128xf32>
    %194 = math.sqrt %193 : vector<16x128xf32>
    %cst_85 = arith.constant 4.000000e+00 : f32
    %195 = vector.broadcast %cst_85 : f32 to vector<16x128xf32>
    %196 = arith.mulf %195, %194 : vector<16x128xf32>
    %cst_86 = arith.constant 1.000000e-07 : f32
    %197 = vector.broadcast %cst_86 : f32 to vector<16x128xf32>
    %198 = arith.addf %196, %197 : vector<16x128xf32>
    %199 = tpu.reciprocal %198 {approx = true} : vector<16x128xf32> -> vector<16x128xf32>
    %200 = arith.mulf %162, %199 : vector<16x128xf32>
    %cst_87 = arith.constant 1.000000e-07 : f32
    %201 = vector.broadcast %cst_87 : f32 to vector<16x128xf32>
    %202 = arith.addf %200, %201 : vector<16x128xf32>
    %203 = math.log %202 : vector<16x128xf32>
    %cst_88 = arith.constant 5.000000e-01 : f32
    %204 = vector.broadcast %cst_88 : f32 to vector<16x128xf32>
    %205 = arith.mulf %203, %204 : vector<16x128xf32>
    %206 = arith.addf %175, %182 : vector<16x128xf32>
    %207 = arith.addf %206, %205 : vector<16x128xf32>
    %cst_89 = arith.constant 1.000000e-07 : f32
    %cst_90 = arith.constant 1.000000e+02 : f32
    %208 = vector.broadcast %cst_89 : f32 to vector<16x128xf32>
    %209 = arith.maximumf %208, %207 : vector<16x128xf32>
    %210 = vector.broadcast %cst_90 : f32 to vector<16x128xf32>
    %211 = arith.minimumf %210, %209 : vector<16x128xf32>
    %cst_91 = arith.constant 0.000000e+00 : f32
    %212 = vector.broadcast %cst_91 : f32 to vector<16x128xf32>
    %213 = arith.subf %212, %211 : vector<16x128xf32>
    %214 = math.exp %213 : vector<16x128xf32>
    %cst_92 = arith.constant 1.000000e+00 : f32
    %215 = vector.broadcast %cst_92 : f32 to vector<16x128xf32>
    %216 = arith.subf %215, %214 : vector<16x128xf32>
    %cst_93 = arith.constant 1.000000e-07 : f32
    %217 = vector.broadcast %cst_93 : f32 to vector<16x128xf32>
    %218 = arith.addf %216, %217 : vector<16x128xf32>
    %219 = math.sqrt %218 : vector<16x128xf32>
    %220 = arith.mulf %121, %140 : vector<16x128xf32>
    %221 = arith.mulf %122, %141 : vector<16x128xf32>
    %222 = arith.addf %220, %221 : vector<16x128xf32>
    %cst_94 = arith.constant 1.000000e+00 : f32
    %223 = vector.broadcast %cst_94 : f32 to vector<16x128xf32>
    %224 = arith.subf %223, %222 : vector<16x128xf32>
    %c0_95 = arith.constant 0 : index
    %c0_96 = arith.constant 0 : index
    %c0_97 = arith.constant 0 : index
    %225 = vector.load %arg8[%c0_95, %c0_96, %c0_97] : memref<3x16x128xf32, #tpu.memory_space<vmem>>, vector<1x16x128xf32>
    %226 = vector.shape_cast %225 : vector<1x16x128xf32> to vector<16x128xf32>
    %227 = arith.mulf %116, %219 : vector<16x128xf32>
    %228 = arith.addf %226, %227 : vector<16x128xf32>
    %c0_98 = arith.constant 0 : index
    %c0_99 = arith.constant 0 : index
    %c0_100 = arith.constant 0 : index
    %229 = vector.load %arg8[%c0_98, %c0_99, %c0_100] : memref<3x16x128xf32, #tpu.memory_space<vmem>>, vector<1x16x128xf32>
    %230 = vector.shape_cast %229 : vector<1x16x128xf32> to vector<16x128xf32>
    %231 = vector.shape_cast %228 : vector<16x128xf32> to vector<1x16x128xf32>
    tpu.vector_store %arg8[%c0_98, %c0_99, %c0_100], %231 {strides = array<i32>} : memref<3x16x128xf32, #tpu.memory_space<vmem>>, vector<1x16x128xf32>,
    %c1_101 = arith.constant 1 : index
    %c0_102 = arith.constant 0 : index
    %c0_103 = arith.constant 0 : index
    %232 = vector.load %arg8[%c1_101, %c0_102, %c0_103] : memref<3x16x128xf32, #tpu.memory_space<vmem>>, vector<1x16x128xf32>
    %233 = vector.shape_cast %232 : vector<1x16x128xf32> to vector<16x128xf32>
    %234 = arith.mulf %116, %224 : vector<16x128xf32>
    %235 = arith.addf %233, %234 : vector<16x128xf32>
    %c1_104 = arith.constant 1 : index
    %c0_105 = arith.constant 0 : index
    %c0_106 = arith.constant 0 : index
    %236 = vector.load %arg8[%c1_104, %c0_105, %c0_106] : memref<3x16x128xf32, #tpu.memory_space<vmem>>, vector<1x16x128xf32>
    %237 = vector.shape_cast %236 : vector<1x16x128xf32> to vector<16x128xf32>
    %238 = vector.shape_cast %235 : vector<16x128xf32> to vector<1x16x128xf32>
    tpu.vector_store %arg8[%c1_104, %c0_105, %c0_106], %238 {strides = array<i32>} : memref<3x16x128xf32, #tpu.memory_space<vmem>>, vector<1x16x128xf32>,
    %c2_107 = arith.constant 2 : index
    %c0_108 = arith.constant 0 : index
    %c0_109 = arith.constant 0 : index
    %239 = vector.load %arg8[%c2_107, %c0_108, %c0_109] : memref<3x16x128xf32, #tpu.memory_space<vmem>>, vector<1x16x128xf32>
    %240 = vector.shape_cast %239 : vector<1x16x128xf32> to vector<16x128xf32>
    %241 = arith.addf %240, %116 : vector<16x128xf32>
    %c2_110 = arith.constant 2 : index
    %c0_111 = arith.constant 0 : index
    %c0_112 = arith.constant 0 : index
    %242 = vector.load %arg8[%c2_110, %c0_111, %c0_112] : memref<3x16x128xf32, #tpu.memory_space<vmem>>, vector<1x16x128xf32>
    %243 = vector.shape_cast %242 : vector<1x16x128xf32> to vector<16x128xf32>
    %244 = vector.shape_cast %241 : vector<16x128xf32> to vector<1x16x128xf32>
    tpu.vector_store %arg8[%c2_110, %c0_111, %c0_112], %244 {strides = array<i32>} : memref<3x16x128xf32, #tpu.memory_space<vmem>>, vector<1x16x128xf32>,
    %c1_i32 = arith.constant 1 : i32
    %245 = arith.cmpi eq, %arg2, %c1_i32 : i32
    %246 = arith.extui %245 : i1 to i32
    %c0_i32_113 = arith.constant 0 : i32
    %247 = arith.cmpi ne, %246, %c0_i32_113 : i32
    scf.if %247 {
      %c0_114 = arith.constant 0 : index
      %c0_115 = arith.constant 0 : index
      %c0_116 = arith.constant 0 : index
      %248 = vector.load %arg8[%c0_114, %c0_115, %c0_116] : memref<3x16x128xf32, #tpu.memory_space<vmem>>, vector<1x16x128xf32>
      %249 = vector.shape_cast %248 : vector<1x16x128xf32> to vector<16x128xf32>
      %250 = vector.shape_cast %249 : vector<16x128xf32> to vector<1x16x128xf32>
      %cst_117 = arith.constant dense<0.000000e+00> : vector<1xf32>
      %251 = vector.multi_reduction <add>, %250, %cst_117 [1, 2] : vector<1x16x128xf32> to vector<1xf32>
      %252 = vector.shape_cast %251 : vector<1xf32> to vector<1x1x1xf32>
      %253 = vector.extract %252[0, 0, 0] : f32 from vector<1x1x1xf32>
      %c1_118 = arith.constant 1 : index
      %c0_119 = arith.constant 0 : index
      %c0_120 = arith.constant 0 : index
      %254 = vector.load %arg8[%c1_118, %c0_119, %c0_120] : memref<3x16x128xf32, #tpu.memory_space<vmem>>, vector<1x16x128xf32>
      %255 = vector.shape_cast %254 : vector<1x16x128xf32> to vector<16x128xf32>
      %256 = vector.shape_cast %255 : vector<16x128xf32> to vector<1x16x128xf32>
      %cst_121 = arith.constant dense<0.000000e+00> : vector<1xf32>
      %257 = vector.multi_reduction <add>, %256, %cst_121 [1, 2] : vector<1x16x128xf32> to vector<1xf32>
      %258 = vector.shape_cast %257 : vector<1xf32> to vector<1x1x1xf32>
      %259 = vector.extract %258[0, 0, 0] : f32 from vector<1x1x1xf32>
      %c2_122 = arith.constant 2 : index
      %c0_123 = arith.constant 0 : index
      %c0_124 = arith.constant 0 : index
      %260 = vector.load %arg8[%c2_122, %c0_123, %c0_124] : memref<3x16x128xf32, #tpu.memory_space<vmem>>, vector<1x16x128xf32>
      %261 = vector.shape_cast %260 : vector<1x16x128xf32> to vector<16x128xf32>
      %262 = vector.shape_cast %261 : vector<16x128xf32> to vector<1x16x128xf32>
      %cst_125 = arith.constant dense<0.000000e+00> : vector<1xf32>
      %263 = vector.multi_reduction <add>, %262, %cst_125 [1, 2] : vector<1x16x128xf32> to vector<1xf32>
      %264 = vector.shape_cast %263 : vector<1xf32> to vector<1x1x1xf32>
      %265 = vector.extract %264[0, 0, 0] : f32 from vector<1x1x1xf32>
      %266 = tpu.iota {dimensions = array<i32: 3>} : vector<1x1x1x4xi32>
      %c0_i32_126 = arith.constant 0 : i32
      %267 = vector.broadcast %c0_i32_126 : i32 to vector<1x1x1x4xi32>
      %268 = arith.cmpi eq, %266, %267 : vector<1x1x1x4xi32>
      %cst_127 = arith.constant 0.000000e+00 : f32
      %269 = vector.broadcast %253 : f32 to vector<1x1x1x4xf32>
      %270 = vector.broadcast %cst_127 : f32 to vector<1x1x1x4xf32>
      %271 = arith.select %268, %269, %270 : vector<1x1x1x4xi1>, vector<1x1x1x4xf32>
      %c1_i32_128 = arith.constant 1 : i32
      %272 = vector.broadcast %c1_i32_128 : i32 to vector<1x1x1x4xi32>
      %273 = arith.cmpi eq, %266, %272 : vector<1x1x1x4xi32>
      %cst_129 = arith.constant 0.000000e+00 : f32
      %274 = vector.broadcast %259 : f32 to vector<1x1x1x4xf32>
      %275 = vector.broadcast %cst_129 : f32 to vector<1x1x1x4xf32>
      %276 = arith.select %273, %274, %275 : vector<1x1x1x4xi1>, vector<1x1x1x4xf32>
      %277 = arith.addf %271, %276 : vector<1x1x1x4xf32>
      %c2_i32 = arith.constant 2 : i32
      %278 = vector.broadcast %c2_i32 : i32 to vector<1x1x1x4xi32>
      %279 = arith.cmpi eq, %266, %278 : vector<1x1x1x4xi32>
      %cst_130 = arith.constant 0.000000e+00 : f32
      %280 = vector.broadcast %265 : f32 to vector<1x1x1x4xf32>
      %281 = vector.broadcast %cst_130 : f32 to vector<1x1x1x4xf32>
      %282 = arith.select %279, %280, %281 : vector<1x1x1x4xi1>, vector<1x1x1x4xf32>
      %283 = arith.addf %277, %282 : vector<1x1x1x4xf32>
      %c0_131 = arith.constant 0 : index
      %c0_132 = arith.constant 0 : index
      %c0_133 = arith.constant 0 : index
      %c0_134 = arith.constant 0 : index
      %284 = vector.load %arg7[%c0_131, %c0_132, %c0_133, %c0_134] : memref<1x1x1x4xf32, #tpu.memory_space<vmem>>, vector<1x1x1x4xf32>
      tpu.vector_store %arg7[%c0_131, %c0_132, %c0_133, %c0_134], %283 {strides = array<i32>} : memref<1x1x1x4xf32, #tpu.memory_space<vmem>>, vector<1x1x1x4xf32>,
    } else {
    }
    return
  }
  func.func @transform_0(%arg0: i32, %arg1: i32, %arg2: i32) -> (i32, i32) {
    %c0_i32 = arith.constant 0 : i32
    %c0_i32_0 = arith.constant 0 : i32
    %c0_i32_1 = arith.constant 0 : i32
    return %c0_i32, %c0_i32_0 : i32, i32
  }
  func.func @transform_1(%arg0: i32, %arg1: i32, %arg2: i32) -> (i32, i32, i32, i32) {
    %c2_i32 = arith.constant 2 : i32
    %0 = arith.muli %arg0, %c2_i32 : i32
    %1 = arith.addi %0, %arg2 : i32
    %c0_i32 = arith.constant 0 : i32
    %c0_i32_0 = arith.constant 0 : i32
    %c0_i32_1 = arith.constant 0 : i32
    return %arg1, %c0_i32, %1, %c0_i32_0 : i32, i32, i32, i32
  }
  func.func @transform_2(%arg0: i32, %arg1: i32, %arg2: i32) -> (i32, i32, i32, i32) {
    %c2_i32 = arith.constant 2 : i32
    %0 = arith.muli %arg0, %c2_i32 : i32
    %1 = arith.addi %0, %arg2 : i32
    %c0_i32 = arith.constant 0 : i32
    %c0_i32_0 = arith.constant 0 : i32
    %c0_i32_1 = arith.constant 0 : i32
    return %arg1, %c0_i32, %1, %c0_i32_0 : i32, i32, i32, i32
  }
  func.func @transform_3(%arg0: i32, %arg1: i32, %arg2: i32) -> (i32, i32, i32, i32) {
    %c2_i32 = arith.constant 2 : i32
    %0 = arith.muli %arg0, %c2_i32 : i32
    %1 = arith.addi %0, %arg2 : i32
    %c0_i32 = arith.constant 0 : i32
    %c0_i32_0 = arith.constant 0 : i32
    %c0_i32_1 = arith.constant 0 : i32
    return %arg1, %c0_i32, %1, %c0_i32_0 : i32, i32, i32, i32
  }
  func.func @transform_4(%arg0: i32, %arg1: i32, %arg2: i32) -> (i32, i32, i32, i32) {
    %c0_i32 = arith.constant 0 : i32
    %c0_i32_0 = arith.constant 0 : i32
    %c0_i32_1 = arith.constant 0 : i32
    return %arg0, %arg1, %c0_i32, %c0_i32_0 : i32, i32, i32, i32
  }
}

module attributes {stable_mosaic.version = 11 : i64} {
  func.func @_focal_kernel(%arg0: i32, %arg1: i32, %arg2: i32, %arg3: memref<1x6x16x128xf32, #tpu.memory_space<vmem>>, %arg4: memref<1x16x128xi32, #tpu.memory_space<vmem>>, %arg5: memref<1x1x1x1xf32, #tpu.memory_space<vmem>>, %arg6: memref<16x128xf32, #tpu.memory_space<vmem>>) attributes {dimension_semantics = [#tpu.dimension_semantics<parallel>, #tpu.dimension_semantics<parallel>, #tpu.dimension_semantics<arbitrary>], iteration_bounds = array<i64: 2, 2, 2>, scalar_prefetch = 0 : i64, scratch_operands = 1 : i64, tpu.core_type = #tpu.core_type<tc>, window_params = [{transform_indices = @transform_0, window_bounds = array<i64: 1, 6, 16, 128>}, {transform_indices = @transform_1, window_bounds = array<i64: 1, 16, 128>}, {transform_indices = @transform_2, window_bounds = array<i64: 1, 1, 1, 1>}]} {
    %c0_i32 = arith.constant 0 : i32
    %0 = arith.cmpi eq, %arg2, %c0_i32 : i32
    %1 = arith.extui %0 : i1 to i32
    %c0_i32_0 = arith.constant 0 : i32
    %2 = arith.cmpi ne, %1, %c0_i32_0 : i32
    scf.if %2 {
      %cst_23 = arith.constant 0.000000e+00 : f32
      %61 = vector.broadcast %cst_23 : f32 to vector<16x128xf32>
      %c0_24 = arith.constant 0 : index
      %c0_25 = arith.constant 0 : index
      %62 = vector.load %arg6[%c0_24, %c0_25] : memref<16x128xf32, #tpu.memory_space<vmem>>, vector<16x128xf32>
      tpu.vector_store %arg6[%c0_24, %c0_25], %61 {strides = array<i32>} : memref<16x128xf32, #tpu.memory_space<vmem>>, vector<16x128xf32>,
    } else {
    }
    %c0 = arith.constant 0 : index
    %c0_1 = arith.constant 0 : index
    %c0_2 = arith.constant 0 : index
    %c0_3 = arith.constant 0 : index
    %3 = vector.load %arg3[%c0, %c0_1, %c0_2, %c0_3] : memref<1x6x16x128xf32, #tpu.memory_space<vmem>>, vector<1x6x16x128xf32>
    %4 = vector.shape_cast %3 : vector<1x6x16x128xf32> to vector<6x16x128xf32>
    %c0_4 = arith.constant 0 : index
    %c0_5 = arith.constant 0 : index
    %c0_6 = arith.constant 0 : index
    %5 = vector.load %arg4[%c0_4, %c0_5, %c0_6] : memref<1x16x128xi32, #tpu.memory_space<vmem>>, vector<1x16x128xi32>
    %6 = vector.shape_cast %5 : vector<1x16x128xi32> to vector<16x128xi32>
    %7 = tpu.iota {dimensions = array<i32: 0>} : vector<6x16x128xi32>
    %8 = vector.shape_cast %6 : vector<16x128xi32> to vector<1x16x128xi32>
    %9 = vector.broadcast %8 : vector<1x16x128xi32> to vector<6x16x128xi32>
    %10 = arith.cmpi eq, %7, %9 : vector<6x16x128xi32>
    %11 = arith.extui %10 : vector<6x16x128xi1> to vector<6x16x128xi32>
    %12 = arith.sitofp %11 : vector<6x16x128xi32> to vector<6x16x128xf32>
    %c0_i32_7 = arith.constant 0 : i32
    %13 = vector.broadcast %c0_i32_7 : i32 to vector<16x128xi32>
    %14 = arith.cmpi sge, %6, %13 : vector<16x128xi32>
    %15 = arith.extui %14 : vector<16x128xi1> to vector<16x128xi32>
    %16 = arith.sitofp %15 : vector<16x128xi32> to vector<16x128xf32>
    %17 = math.absf %4 : vector<6x16x128xf32>
    %cst = arith.constant 0.000000e+00 : f32
    %18 = vector.broadcast %cst : f32 to vector<6x16x128xf32>
    %19 = arith.subf %18, %17 : vector<6x16x128xf32>
    %20 = math.exp %19 : vector<6x16x128xf32>
    %cst_8 = arith.constant 1.000000e+00 : f32
    %21 = vector.broadcast %cst_8 : f32 to vector<6x16x128xf32>
    %22 = arith.addf %21, %20 : vector<6x16x128xf32>
    %23 = tpu.reciprocal %22 {approx = true} : vector<6x16x128xf32> -> vector<6x16x128xf32>
    %cst_9 = arith.constant 0.000000e+00 : f32
    %24 = vector.broadcast %cst_9 : f32 to vector<6x16x128xf32>
    %25 = arith.cmpf oge, %4, %24 : vector<6x16x128xf32>
    %26 = arith.mulf %20, %23 : vector<6x16x128xf32>
    %27 = arith.select %25, %23, %26 : vector<6x16x128xi1>, vector<6x16x128xf32>
    %cst_10 = arith.constant 0.000000e+00 : f32
    %28 = vector.broadcast %cst_10 : f32 to vector<6x16x128xf32>
    %29 = arith.maximumf %4, %28 : vector<6x16x128xf32>
    %30 = arith.mulf %4, %12 : vector<6x16x128xf32>
    %31 = arith.subf %29, %30 : vector<6x16x128xf32>
    %32 = math.log %22 : vector<6x16x128xf32>
    %33 = arith.addf %31, %32 : vector<6x16x128xf32>
    %34 = arith.mulf %27, %12 : vector<6x16x128xf32>
    %cst_11 = arith.constant 1.000000e+00 : f32
    %35 = vector.broadcast %cst_11 : f32 to vector<6x16x128xf32>
    %36 = arith.subf %35, %27 : vector<6x16x128xf32>
    %cst_12 = arith.constant 1.000000e+00 : f32
    %37 = vector.broadcast %cst_12 : f32 to vector<6x16x128xf32>
    %38 = arith.subf %37, %12 : vector<6x16x128xf32>
    %39 = arith.mulf %36, %38 : vector<6x16x128xf32>
    %40 = arith.addf %34, %39 : vector<6x16x128xf32>
    %cst_13 = arith.constant 1.000000e+00 : f32
    %41 = vector.broadcast %cst_13 : f32 to vector<6x16x128xf32>
    %42 = arith.subf %41, %40 : vector<6x16x128xf32>
    %43 = arith.mulf %42, %42 : vector<6x16x128xf32>
    %cst_14 = arith.constant 2.500000e-01 : f32
    %44 = vector.broadcast %cst_14 : f32 to vector<6x16x128xf32>
    %45 = arith.mulf %44, %12 : vector<6x16x128xf32>
    %cst_15 = arith.constant 1.000000e+00 : f32
    %46 = vector.broadcast %cst_15 : f32 to vector<6x16x128xf32>
    %47 = arith.subf %46, %12 : vector<6x16x128xf32>
    %cst_16 = arith.constant 7.500000e-01 : f32
    %48 = vector.broadcast %cst_16 : f32 to vector<6x16x128xf32>
    %49 = arith.mulf %48, %47 : vector<6x16x128xf32>
    %50 = arith.addf %45, %49 : vector<6x16x128xf32>
    %51 = arith.mulf %50, %33 : vector<6x16x128xf32>
    %52 = arith.mulf %51, %43 : vector<6x16x128xf32>
    %c0_17 = arith.constant 0 : index
    %c0_18 = arith.constant 0 : index
    %53 = vector.load %arg6[%c0_17, %c0_18] : memref<16x128xf32, #tpu.memory_space<vmem>>, vector<16x128xf32>
    %cst_19 = arith.constant dense<0.000000e+00> : vector<16x128xf32>
    %54 = vector.multi_reduction <add>, %52, %cst_19 [0] : vector<6x16x128xf32> to vector<16x128xf32>
    %55 = arith.mulf %54, %16 : vector<16x128xf32>
    %56 = arith.addf %53, %55 : vector<16x128xf32>
    %c0_20 = arith.constant 0 : index
    %c0_21 = arith.constant 0 : index
    %57 = vector.load %arg6[%c0_20, %c0_21] : memref<16x128xf32, #tpu.memory_space<vmem>>, vector<16x128xf32>
    tpu.vector_store %arg6[%c0_20, %c0_21], %56 {strides = array<i32>} : memref<16x128xf32, #tpu.memory_space<vmem>>, vector<16x128xf32>,
    %c1_i32 = arith.constant 1 : i32
    %58 = arith.cmpi eq, %arg2, %c1_i32 : i32
    %59 = arith.extui %58 : i1 to i32
    %c0_i32_22 = arith.constant 0 : i32
    %60 = arith.cmpi ne, %59, %c0_i32_22 : i32
    scf.if %60 {
      %c0_23 = arith.constant 0 : index
      %c0_24 = arith.constant 0 : index
      %61 = vector.load %arg6[%c0_23, %c0_24] : memref<16x128xf32, #tpu.memory_space<vmem>>, vector<16x128xf32>
      %62 = vector.shape_cast %61 : vector<16x128xf32> to vector<1x16x128xf32>
      %cst_25 = arith.constant dense<0.000000e+00> : vector<1xf32>
      %63 = vector.multi_reduction <add>, %62, %cst_25 [1, 2] : vector<1x16x128xf32> to vector<1xf32>
      %64 = vector.shape_cast %63 : vector<1xf32> to vector<1x1x1xf32>
      %65 = vector.extract %64[0, 0, 0] : f32 from vector<1x1x1xf32>
      %66 = vector.broadcast %65 : f32 to vector<1x1x1x1xf32>
      %c0_26 = arith.constant 0 : index
      %c0_27 = arith.constant 0 : index
      %c0_28 = arith.constant 0 : index
      %c0_29 = arith.constant 0 : index
      %67 = vector.load %arg5[%c0_26, %c0_27, %c0_28, %c0_29] : memref<1x1x1x1xf32, #tpu.memory_space<vmem>>, vector<1x1x1x1xf32>
      tpu.vector_store %arg5[%c0_26, %c0_27, %c0_28, %c0_29], %66 {strides = array<i32>} : memref<1x1x1x1xf32, #tpu.memory_space<vmem>>, vector<1x1x1x1xf32>,
    } else {
    }
    return
  }
  func.func @transform_0(%arg0: i32, %arg1: i32, %arg2: i32) -> (i32, i32, i32, i32) {
    %c2_i32 = arith.constant 2 : i32
    %0 = arith.muli %arg0, %c2_i32 : i32
    %1 = arith.addi %0, %arg2 : i32
    %c0_i32 = arith.constant 0 : i32
    %c0_i32_0 = arith.constant 0 : i32
    %c0_i32_1 = arith.constant 0 : i32
    return %arg1, %c0_i32, %1, %c0_i32_0 : i32, i32, i32, i32
  }
  func.func @transform_1(%arg0: i32, %arg1: i32, %arg2: i32) -> (i32, i32, i32) {
    %c2_i32 = arith.constant 2 : i32
    %0 = arith.muli %arg0, %c2_i32 : i32
    %1 = arith.addi %0, %arg2 : i32
    %c0_i32 = arith.constant 0 : i32
    %c0_i32_0 = arith.constant 0 : i32
    return %arg1, %1, %c0_i32 : i32, i32, i32
  }
  func.func @transform_2(%arg0: i32, %arg1: i32, %arg2: i32) -> (i32, i32, i32, i32) {
    %c0_i32 = arith.constant 0 : i32
    %c0_i32_0 = arith.constant 0 : i32
    %c0_i32_1 = arith.constant 0 : i32
    return %arg0, %arg1, %c0_i32, %c0_i32_0 : i32, i32, i32, i32
  }
}

</mosaic_0001>

<bundles_post_ra>
// kernel: _multi_task_loss_impl.3
= control target key start
LH: loop header
LB: loop body
LE: loop exit
PB: predicated region body
PF: predicated region fallthrough
CT: control target
= control target key end

     0   :  { %s3341_s0 = inlined_call_operand.vmem [shape: f32[2,2], index: 0, kind: input, shape index: {}]   ;;  %s3342_s1 = inlined_call_operand.vmem [shape: f32[2,8,64,128], index: 1, kind: input, shape index: {}]   ;;  %s3343_s2 = inlined_call_operand.vmem [shape: f32[2,8,64,128], index: 2, kind: input, shape index: {}]   ;;  %s3344_s3 = inlined_call_operand.vmem [shape: f32[2,3,64,128], index: 3, kind: input, shape index: {}]   ;;  %s3345_s4 = inlined_call_operand.vmem [shape: f32[2,2,1,4], index: 4, kind: output, shape index: {}]  }
   0x1   :  { %3356 = sst [smem:[#allocation13_spill]] %s3341_s0 }
   0x2   :  { %9 = vsyncpa [#allocation4], 0  ;;  %s2364_s15 = smov 0   ;;  %s2366_s16 = smov 0  }
   0x3   :  { %s2368_s17 = smov 0   ;;  %s2370_s18 = smov 0  }
   0x4   :  { %s2372_s19 = smov 0   ;;  %s2374_s20 = smov 0  }
   0x5   :  { %s2376_s21 = smov 0   ;;  %s2378_s22 = smov 0  }
   0x6   :  { %s2380_s23 = smov 0  }
   0x7 LB: > { %3357 = sst [smem:[#allocation9_spill]] %s2325_s22  ;;  %s27_s24 = sadd.s32 1, %s2317_s20  ;;  %s2329_s23 = sphi %s2380_s23, %s15_s23   ;;  %s2325_s22 = sphi %s2378_s22, %s3391_s22   ;;  %s2321_s21 = sphi %s2376_s21, %s3390_s21   ;;  %s2317_s20 = sphi %s2374_s20, %s3389_s20   ;;  %s2313_s19 = sphi %s2372_s19, %s3384_s19   ;;  %s2309_s18 = sphi %s2370_s18, %s3388_s18   ;;  %s2305_s17 = sphi %s2368_s17, %s3387_s17   ;;  %s2301_s16 = sphi %s2366_s16, %s3386_s16   ;;  %s2297_s15 = sphi %s2364_s15, %s3385_s15  }
   0x8   : > { %p28_p0 = scmp.ge.s32.totalorder %s27_s24, 2  ;;  %s30_s25 = sadd.s32 1, %s2321_s21 }
   0x9   : > { %s1986_s26 = sadd.s32 4294967295, %s2329_s23   ;;  %s1988_s27 = sshll.u32 %s2325_s22, 1 }
   0xa   : > { %s3393_s24 = smov (%p28_p0, %s27_s24), 0  ;;  %s3395_s25 = smov (!%p28_p0, %s30_s25), %s2321_s21 }
   0xb   : > { %s34_s28 = sadd.s32 1, %s2325_s22  ;;  %s2418_s29 = sadd.s32 %s2317_s20, %s1988_s27 }
   0xc   : > { %p32_p1 = scmp.ge.s32.totalorder %s3395_s25, 2  ;;  %p75_p2 = scmp.ne.s32.totalorder %s2301_s16, %s2297_s15 }
   0xd   : > { %s68_s30 = sadd.s32 1, %s2301_s16  ;;  %p76_p3 = scmp.eq.s32.totalorder %s2329_s23, 0 }
   0xe   : > { %s3397_s25 = smov (%p32_p1, %s3395_s25), 0  ;;  %s3399_s28 = smov (!%p32_p1, %s34_s28), %s2325_s22 }
   0xf   : > { %p2427_p4 = por %p76_p3, %p75_p2  ;;  %p1994_p5 = scmp.ge.s32.totalorder %s2329_s23, 1 }
  0x10   : > { %p36_p6 = scmp.ge.s32.totalorder %s3399_s28, 2  ;;  %p184_p7 = scmp.lt.s32.totalorder %s2329_s23, 9 }
  0x11   : > { %p2433_p8 = scmp.eq.s32.totalorder %s1986_s26, 0  ;;  %s3361_s0 = sld [smem:[#allocation13_spill]] }
  0x12   : > { %s3401_s28 = smov (%p36_p6, %s3399_s28), 0  ;;  %p2439_p9 = pnand %p1994_p5, %p184_p7 }
  0x13   : > { %s1989_s11 = sshll.u32 %s3401_s28, 1  ;;  %s63_s12 = ssub.s32 %s2321_s21, %s3397_s25 }
  0x14   : > { %s62_s13 = sadd.s32 %s1989_s11, %s3393_s24  ;;  %p2113_p10 = pneg %p2439_p9 }
  0x15   : > { %s64_s14 = ssub.s32 %s2418_s29, %s62_s13 }
  0x16   : > { %s65_s26 = sor.u32 %s64_s14, %s63_s12  ;;  %p2455_p11 = pnand %p2433_p8, %p2113_p10 }
  0x17   : > { %s197_s10 = sshll.u32 %s3361_s0, 4  ;;  %p66_p12 = scmp.eq.s32.totalorder %s65_s26, 0  ;;  %s198_s10 = int_to_ptr.vmem [resolvable:$true] %s197_s10 }
  0x18   : > { %s2240_s8 = scalar_lea.vmem %s198_s10, 32  ;;  %p2242_p0 = pneg %p2455_p11 }
  0x19   : > { %s2460_s22 = scalar_select %p66_p12, %s2301_s16, %s68_s30  }
  0x1a   : > { %p2241_p13 = scmp.ne.s32.totalorder %s198_s10, %s2240_s8  ;;  %p2248_p3 = scmp.lt.s32.totalorder %s198_s10, %s198_s10 }
  0x1b   : > { %p2249_p5 = scmp.lt.s32.totalorder %s2240_s8, %s2240_s8 }
  0x1c   : > { %p2243_p1 = pnand %p2242_p0, %p2241_p13 }
  0x1d   : > { %p2250_p6 = por %p2249_p5, %p2248_p3 }
  0x1e   : > { %p2244_p2 = pneg %p2243_p1 }
  0x20   : > { %p2251_p7 = pnand %p2250_p6, %p2244_p2 }
  0x22   : > { %2254 = shalt.err (!%p2251_p7)
}
  0x23   : > { %s2331_s9 = smov [#allocation3]   ;;  %p1996_p10 = scmp.ge.s32.totalorder %s2329_s23, 8 }
  0x24   : > { %2116 = dma.vmem_to_smem (!%p2455_p11), %s198_s10, 32, %s2331_s9, [#allocation4]  }
  0x25   : > { %204 = sbr.rel (%p1996_p10) target bundleno = 85 (0x55), region = 20 }
  0x2c   : > { %207 = sbr.rel (!%p2427_p4) target bundleno = 59 (0x3b), region = 24  ;;  %s209_s30 = sand.u32 (%p2427_p4), 1, %s2301_s16  }
  0x2d   : > { %s1999_s11 = sshll.u32 (%p2427_p4), %s2418_s29, 1  ;;  %s1997_s12 = sshll.u32 (%p2427_p4), %s209_s30, 7 }
  0x2e   : > { %s2000_s13 = sshll.u32 (%p2427_p4), %s2321_s21, 6  ;;  %s211_s10 = scalar_lea.vmem (%p2427_p4), [#allocation5], %s1997_s12 }
  0x2f   : > { %s216_s14 = sadd.s32 (%p2427_p4), %s2000_s13, %s1999_s11 }
  0x30   : > { %s2001_s26 = sshll.u32 (%p2427_p4), %s216_s14, 3 }
  0x31   : > { %s2475_s27 = scalar_lea.vmem (%p2427_p4), %s3342_s1, %s2001_s26 }
  0x32   : > { %v276_v0 = vld [vmem:[%s2475_s27] sm:$0xff] (%p2427_p4)  ;;  %v278_v1 = vld [vmem:[%s2475_s27 + $0x8] sm:$0xff] (%p2427_p4) }
  0x33   : > { %v280_v2 = vld [vmem:[%s2475_s27 + $0x40] sm:$0xff]  ;;  %277 = vst [vmem:[%s211_s10] sm:$0xff] %v276_v0  ;;  %279 = vst [vmem:[%s211_s10 + $0x8] sm:$0xff] %v278_v1  ;;  %v282_v3 = vld [vmem:[%s2475_s27 + $0x48] sm:$0xff] }
  0x34   : > { %281 = vst [vmem:[%s211_s10 + $0x10] sm:$0xff] %v280_v2  ;;  %v284_v4 = vld [vmem:[%s2475_s27 + $0x80] sm:$0xff]  ;;  %v286_v5 = vld [vmem:[%s2475_s27 + $0x88] sm:$0xff]  ;;  %283 = vst [vmem:[%s211_s10 + $0x18] sm:$0xff] %v282_v3 }
  0x35   : > { %285 = vst [vmem:[%s211_s10 + $0x20] sm:$0xff] %v284_v4  ;;  %287 = vst [vmem:[%s211_s10 + $0x28] sm:$0xff] %v286_v5  ;;  %v288_v6 = vld [vmem:[%s2475_s27 + $0xc0] sm:$0xff]  ;;  %v290_v7 = vld [vmem:[%s2475_s27 + $0xc8] sm:$0xff] }
  0x36   : > { %v292_v8 = vld [vmem:[%s2475_s27 + $0x100] sm:$0xff]  ;;  %289 = vst [vmem:[%s211_s10 + $0x30] sm:$0xff] %v288_v6  ;;  %291 = vst [vmem:[%s211_s10 + $0x38] sm:$0xff] %v290_v7  ;;  %v294_v9 = vld [vmem:[%s2475_s27 + $0x108] sm:$0xff] }
  0x37   : > { %293 = vst [vmem:[%s211_s10 + $0x40] sm:$0xff] %v292_v8  ;;  %v296_v10 = vld [vmem:[%s2475_s27 + $0x140] sm:$0xff]  ;;  %v298_v11 = vld [vmem:[%s2475_s27 + $0x148] sm:$0xff]  ;;  %295 = vst [vmem:[%s211_s10 + $0x48] sm:$0xff] %v294_v9 }
  0x38   : > { %297 = vst [vmem:[%s211_s10 + $0x50] sm:$0xff] %v296_v10  ;;  %299 = vst [vmem:[%s211_s10 + $0x58] sm:$0xff] %v298_v11  ;;  %v300_v12 = vld [vmem:[%s2475_s27 + $0x180] sm:$0xff]  ;;  %v302_v13 = vld [vmem:[%s2475_s27 + $0x188] sm:$0xff] }
  0x39   : > { %v304_v14 = vld [vmem:[%s2475_s27 + $0x1c0] sm:$0xff]  ;;  %301 = vst [vmem:[%s211_s10 + $0x60] sm:$0xff] %v300_v12  ;;  %303 = vst [vmem:[%s211_s10 + $0x68] sm:$0xff] %v302_v13  ;;  %v306_v15 = vld [vmem:[%s2475_s27 + $0x1c8] sm:$0xff] }
  0x3a   : > { %305 = vst [vmem:[%s211_s10 + $0x70] sm:$0xff] %v304_v14  ;;  %307 = vst [vmem:[%s211_s10 + $0x78] sm:$0xff] %v306_v15 }
  0x3b PF: > { %313 = sbr.rel (!%p2427_p4) target bundleno = 74 (0x4a), region = 62  ;;  %s315_s0 = sand.u32 (%p2427_p4), 1, %s2301_s16  }
  0x3c   : > { %s2004_s9 = sshll.u32 (%p2427_p4), %s2418_s29, 1  ;;  %s2002_s30 = sshll.u32 (%p2427_p4), %s315_s0, 7 }
  0x3d   : > { %s2005_s11 = sshll.u32 (%p2427_p4), %s2321_s21, 6  ;;  %s317_s27 = scalar_lea.vmem (%p2427_p4), [#allocation6], %s2002_s30 }
  0x3e   : > { %s322_s12 = sadd.s32 (%p2427_p4), %s2005_s11, %s2004_s9 }
  0x3f   : > { %s2006_s13 = sshll.u32 (%p2427_p4), %s322_s12, 3 }
  0x40   : > { %s2501_s8 = scalar_lea.vmem (%p2427_p4), %s3343_s2, %s2006_s13 }
  0x41   : > { %v382_v16 = vld [vmem:[%s2501_s8] sm:$0xff] (%p2427_p4)  ;;  %v384_v17 = vld [vmem:[%s2501_s8 + $0x8] sm:$0xff] (%p2427_p4) }
  0x42   : > { %v386_v18 = vld [vmem:[%s2501_s8 + $0x40] sm:$0xff]  ;;  %383 = vst [vmem:[%s317_s27] sm:$0xff] %v382_v16  ;;  %385 = vst [vmem:[%s317_s27 + $0x8] sm:$0xff] %v384_v17  ;;  %v388_v19 = vld [vmem:[%s2501_s8 + $0x48] sm:$0xff] }
  0x43   : > { %387 = vst [vmem:[%s317_s27 + $0x10] sm:$0xff] %v386_v18  ;;  %v390_v20 = vld [vmem:[%s2501_s8 + $0x80] sm:$0xff]  ;;  %v392_v21 = vld [vmem:[%s2501_s8 + $0x88] sm:$0xff]  ;;  %389 = vst [vmem:[%s317_s27 + $0x18] sm:$0xff] %v388_v19 }
  0x44   : > { %391 = vst [vmem:[%s317_s27 + $0x20] sm:$0xff] %v390_v20  ;;  %393 = vst [vmem:[%s317_s27 + $0x28] sm:$0xff] %v392_v21  ;;  %v394_v22 = vld [vmem:[%s2501_s8 + $0xc0] sm:$0xff]  ;;  %v396_v23 = vld [vmem:[%s2501_s8 + $0xc8] sm:$0xff] }
  0x45   : > { %v398_v24 = vld [vmem:[%s2501_s8 + $0x100] sm:$0xff]  ;;  %395 = vst [vmem:[%s317_s27 + $0x30] sm:$0xff] %v394_v22  ;;  %397 = vst [vmem:[%s317_s27 + $0x38] sm:$0xff] %v396_v23  ;;  %v400_v25 = vld [vmem:[%s2501_s8 + $0x108] sm:$0xff] }
  0x46   : > { %399 = vst [vmem:[%s317_s27 + $0x40] sm:$0xff] %v398_v24  ;;  %v402_v26 = vld [vmem:[%s2501_s8 + $0x140] sm:$0xff]  ;;  %v404_v27 = vld [vmem:[%s2501_s8 + $0x148] sm:$0xff]  ;;  %401 = vst [vmem:[%s317_s27 + $0x48] sm:$0xff] %v400_v25 }
  0x47   : > { %403 = vst [vmem:[%s317_s27 + $0x50] sm:$0xff] %v402_v26  ;;  %405 = vst [vmem:[%s317_s27 + $0x58] sm:$0xff] %v404_v27  ;;  %v406_v28 = vld [vmem:[%s2501_s8 + $0x180] sm:$0xff]  ;;  %v408_v29 = vld [vmem:[%s2501_s8 + $0x188] sm:$0xff] }
  0x48   : > { %v410_v30 = vld [vmem:[%s2501_s8 + $0x1c0] sm:$0xff]  ;;  %407 = vst [vmem:[%s317_s27 + $0x60] sm:$0xff] %v406_v28  ;;  %409 = vst [vmem:[%s317_s27 + $0x68] sm:$0xff] %v408_v29  ;;  %v412_v31 = vld [vmem:[%s2501_s8 + $0x1c8] sm:$0xff] }
  0x49   : > { %411 = vst [vmem:[%s317_s27 + $0x70] sm:$0xff] %v410_v30  ;;  %413 = vst [vmem:[%s317_s27 + $0x78] sm:$0xff] %v412_v31 }
  0x4a PF: > { %419 = sbr.rel (!%p2427_p4) target bundleno = 85 (0x55), region = 100  ;;  %s421_s10 = sand.u32 (%p2427_p4), 1, %s2301_s16  }
  0x4b   : > { %s2084_s0 = smul.u32 (%p2427_p4), 48, %s421_s10  ;;  %s2008_s9 = sshll.u32 (%p2427_p4), %s2418_s29, 1 }
  0x4c   : > { %s2085_s30 = smul.u32 (%p2427_p4), 24, %s2321_s21 }
  0x4d   : > { %s423_s8 = scalar_lea.vmem (%p2427_p4), [#allocation7], %s2084_s0 }
  0x4e   : > { %s428_s11 = sadd.s32 (%p2427_p4), %s2085_s30, %s2008_s9 }
  0x4f   : > { %s2009_s12 = sshll.u32 (%p2427_p4), %s428_s11, 3 }
  0x50   : > { %s430_s26 = scalar_lea.vmem (%p2427_p4), %s3344_s3, %s2009_s12 }
  0x51   : > { %v468_v32 = vld [vmem:[%s430_s26] sm:$0xff]  ;;  %v470_v33 = vld [vmem:[%s430_s26 + $0x8] sm:$0xff] }
  0x52   : > { %v472_v34 = vld [vmem:[%s430_s26 + $0x40] sm:$0xff]  ;;  %469 = vst [vmem:[%s423_s8] sm:$0xff] %v468_v32  ;;  %471 = vst [vmem:[%s423_s8 + $0x8] sm:$0xff] %v470_v33  ;;  %v474_v35 = vld [vmem:[%s430_s26 + $0x48] sm:$0xff] }
  0x53   : > { %473 = vst [vmem:[%s423_s8 + $0x10] sm:$0xff] %v472_v34  ;;  %v476_v36 = vld [vmem:[%s430_s26 + $0x80] sm:$0xff]  ;;  %v478_v37 = vld [vmem:[%s430_s26 + $0x88] sm:$0xff]  ;;  %475 = vst [vmem:[%s423_s8 + $0x18] sm:$0xff] %v474_v35 }
  0x54   : > { %477 = vst [vmem:[%s423_s8 + $0x20] sm:$0xff] %v476_v36  ;;  %479 = vst [vmem:[%s423_s8 + $0x28] sm:$0xff] %v478_v37 }
  0x55 PF: > { %488 = sbr.rel (%p2439_p9) target bundleno = 602 (0x25a), region = 138 }
  0x5c   : > { %2292 = dma.done.wait (%p2433_p8), [#allocation4], 32  }
  0x5d   : > { %2294 = vsyncadd (%p2433_p8), [#allocation4], 4294967264  ;;  %s495_s29 = sand.u32 1, %s2297_s15  }
  0x5e   : > { %s2012_s5 = sshll.u32 %s495_s29, 7  ;;  %s2086_s27 = smul.u32 48, %s495_s29 }
  0x5f   : > { %s2534_s10 = scalar_lea.vmem [#allocation5], %s2012_s5  ;;  %s2536_s0 = scalar_lea.vmem [#allocation6], %s2012_s5 }
  0x60   : > { %s2538_s9 = scalar_lea.vmem [#allocation7], %s2086_s27 }
  0x61   : > { %515 = sfence }
  0x62   : > { %p554_p4 = scmp.lt.s32.totalorder %s2313_s19, 1  ;;  %p556_p9 = scmp.lt.s32.totalorder %s2309_s18, 1 }
  0x63   : > { %p2015_p8 = scmp.ne.s32.totalorder %s2305_s17, 0 }
  0x64   : > { %s3403_s19 = smov (!%p554_p4, %s2313_s19), 1  ;;  %v2332_v38 = vmov (!%p2015_p8), 0.0  }
  0x65   : > { %s557_s6 = scalar_select %p556_p9, %s2309_s18, 1 }
  0x66   : > { %s2014_s7 = sshll.u32 %s3403_s19, 1  ;;  %564 = sbr.rel (%p2015_p8) target bundleno = 109 (0x6d), region = 158  ;;  %565 = vst [vmem:[#allocation2] sm:$0xff] (!%p2015_p8), %v2332_v38  ;;  %566 = vst [vmem:[#allocation2 + $0x8] sm:$0xff] (!%p2015_p8), %v2332_v38 }
  0x67   : > { %s2544_s30 = sadd.s32 %s2014_s7, %s557_s6  ;;  %567 = vst [vmem:[#allocation2 + $0x10] sm:$0xff] (!%p2015_p8), %v2332_v38  ;;  %568 = vst [vmem:[#allocation2 + $0x18] sm:$0xff] (!%p2015_p8), %v2332_v38 }
  0x68   : > { %s560_s12 = scalar_lea.vmem %s3345_s4, %s2544_s30  ;;  %569 = vst [vmem:[#allocation2 + $0x20] sm:$0xff] (!%p2015_p8), %v2332_v38  ;;  %570 = vst [vmem:[#allocation2 + $0x28] sm:$0xff] (!%p2015_p8), %v2332_v38 }
  0x6d PF: > { %s2016_s19 = sshll.u32 %s2309_s18, 7  ;;  %v2553_v39 = vld [vmem:[%s2538_s9] sm:$0xff]  ;;  %v2559_v41 = vld [vmem:[%s2538_s9 + $0x8] sm:$0xff]  ;;  %v2579_v57 = vld [vmem:[%s2538_s9 + $0x10] sm:$0xff]  ;;  %v2333_v26 = vmov 683565275  }
  0x6e   : > { %s572_s13 = sld [smem:[#allocation3 + %s2016_s19]]  ;;  %s573_s14 = sadd.s32 1, %s2016_s19  ;;  %v575_v40 = vld [vmem:[%s2534_s10] sm:$0xff]  ;;  %v739_v42 = vand.u32 2147483647, %v2553_v39  ;;  %v576_v43 = vld [vmem:[%s2534_s10 + $0x8] sm:$0xff] }
  0x6f   : > { %s2555_s26 = sld [smem:[#allocation3 + %s573_s14]]  ;;  %v2017_v44 = vld [vmem:[%s2534_s10 + $0x10] sm:$0xff]  ;;  %v2018_v45 = vld [vmem:[%s2534_s10 + $0x18] sm:$0xff]  ;;  %v742_v46 = vand.u32 2139095040, %v2553_v39  ;;  %v3348_v47 = vand.u32 2147483647, %v2559_v41 }
  0x70   : > { %v2019_v49 = vld [vmem:[%s2534_s10 + $0x20] sm:$0xff]  ;;  %v2020_v50 = vld [vmem:[%s2534_s10 + $0x28] sm:$0xff]  ;;  %v2021_v51 = vld [vmem:[%s2534_s10 + $0x30] sm:$0xff]  ;;  %v845_v53 = vand.u32 2139095040, %v2559_v41  ;;  %v746_v54 = vand.u32 8388607, %v739_v42 }
  0x71   : > { %v743_v52 = vshrl.u32 %v742_v46, 23  ;;  %v849_v55 = vand.u32 8388607, %v3348_v47  ;;  %v2022_v0 = vld [vmem:[%s2534_s10 + $0x38] sm:$0xff]  ;;  %v2023_v5 = vld [vmem:[%s2534_s10 + $0x40] sm:$0xff]  ;;  %v1186_v9 = vand.u32 2139095040, %v2579_v57 }
  0x72   : > { %v846_v59 = vshrl.u32 %v845_v53, 23  ;;  %v747_v7 = vor.u32 8388608, %v746_v54  ;;  %v2024_v11 = vld [vmem:[%s2534_s10 + $0x48] sm:$0xff]  ;;  %v3354_v28 = vmov 2475754826   ;;  %p2081_p11 = scmp.ne.s32.totalorder %s2305_s17, 1 }
  0x73   : > { %v2049_v58 = vadd.s32 4294967169, %v743_v52  ;;  %v850_v8 = vor.u32 8388608, %v849_v55  ;;  %v1187_v17 = vshrl.u32 %v1186_v9, 23  ;;  %v2335_v30 = vmov 2131351028  }
  0x74   : > { %v2567_v48 = vstv %s572_s13  ;;  %v2053_v4 = vadd.s32 4294967169, %v846_v59  ;;  %v2625_v22 = vshll.u32 %v747_v7, 8  ;;  %v3349_v32 = vmov 2102212464  }
  0x75   : > { %v578_v56 = vmul.f32 %v2567_v48, %v575_v40  ;;  %v2582_v60 = vmul.f32 %v2567_v48, %v576_v43  ;;  %v2585_v61 = vmul.f32 %v2017_v44, %v2567_v48  ;;  %v2588_v62 = vmul.f32 %v2018_v45, %v2567_v48 }
  0x76   : > { %v2591_v63 = vmul.f32 %v2019_v49, %v2567_v48  ;;  %v2595_v1 = vmul.f32 %v2020_v50, %v2567_v48  ;;  %v2598_v2 = vmul.f32 %v2021_v51, %v2567_v48  ;;  %v749_v3 = vadd.s32 1, %v2049_v58 }
  0x77   : > { %v2602_v6 = vstv %s2555_s26  ;;  %v2606_v10 = vmul.f32 %v2022_v0, %v2567_v48  ;;  %v2610_v12 = vadd.f32 %v2585_v61, %v578_v56  ;;  %v852_v13 = vadd.s32 1, %v2053_v4 }
  0x78   : > { %vm750_vm0 = vcmp.gt.s32.totalorder %v749_v3, 0  ;;  %v2614_v14 = vadd.f32 %v2588_v62, %v2582_v60  ;;  %v2617_v15 = vsub.f32 %v2585_v61, %v578_v56  ;;  %v2620_v18 = vmul.f32 %v2023_v5, %v2602_v6 }
  0x79   : > { %v751_v16 = vsel %vm750_vm0, %v749_v3, 0  ;;  %vm853_vm1 = vcmp.gt.s32.totalorder %v852_v13, 0  ;;  %v2623_v21 = vmul.f32 %v2024_v11, %v2602_v6  ;;  %v2627_v24 = vshll.u32 %v850_v8, 8 }
  0x7a   : > { %v752_v19 = vshrl.u32 %v751_v16, 5  ;;  %v753_v20 = vand.u32 31, %v751_v16  ;;  %v854_v23 = vsel %vm853_vm1, %v852_v13, 0  ;;  %v3352_v34 = vmov 920167782  }
  0x7b   : > { %v2065_v36 = vadd.s32 4294967169, %v1187_v17  ;;  %v3351_v45 = vmov 1326507024   ;;  %v2640_v54 = vshrl.u32 %v854_v23, 5  ;;  %v856_v55 = vand.u32 31, %v854_v23 }
  0x7c   : > { %v754_v25 = vsub.s32 32, %v753_v20  ;;  %v756_v27 = vshll.u32 %v2333_v26, %v753_v20  ;;  %v759_v29 = vshll.u32 %v3354_v28, %v753_v20  ;;  %v762_v31 = vshll.u32 %v2335_v30, %v753_v20 }
  0x7d   : > { %v765_v33 = vshll.u32 %v3349_v32, %v753_v20  ;;  %v768_v35 = vshll.u32 %v3352_v34, %v753_v20  ;;  %vm771_vm2 = vcmp.lt.s32.totalorder %v752_v19, 1  ;;  %vm772_vm3 = vcmp.lt.s32.totalorder %v752_v19, 2 }
  0x7e   : > { %v755_v37 = vshrl.u32 %v2333_v26, %v754_v25  ;;  %v757_v38 = vshrl.u32 %v3354_v28, %v754_v25  ;;  %v760_v40 = vshrl.u32 %v2335_v30, %v754_v25  ;;  %v763_v43 = vshrl.u32 %v3349_v32, %v754_v25 }
  0x7f   : > { %v766_v44 = vshrl.u32 %v3352_v34, %v754_v25  ;;  %v769_v46 = vshrl.u32 %v3351_v45, %v754_v25  ;;  %vm773_vm4 = vcmp.lt.s32.totalorder %v752_v19, 3  ;;  %vm774_vm5 = vcmp.lt.s32.totalorder %v752_v19, 4 }
  0x80   : > { %v758_v49 = vor.u32 %v757_v38, %v756_v27  ;;  %v761_v50 = vor.u32 %v760_v40, %v759_v29  ;;  %v764_v51 = vor.u32 %v763_v43, %v762_v31  ;;  %v857_v7 = vsub.s32 32, %v856_v55 }
  0x81   : > { %v767_v52 = vor.u32 %v766_v44, %v765_v33  ;;  %v770_v53 = vor.u32 %v769_v46, %v768_v35  ;;  %v859_v13 = vshll.u32 %v2333_v26, %v856_v55  ;;  %v862_v35 = vshll.u32 %v3354_v28, %v856_v55 }
  0x82   : > { %v775_v56 = vsel %vm771_vm2, %v755_v37, %v758_v49  ;;  %v776_v58 = vsel %vm774_vm5, %v764_v51, 2102212464  ;;  %v779_v59 = vsel %vm771_vm2, %v758_v49, %v761_v50  ;;  %v783_v0 = vsel %vm771_vm2, %v761_v50, %v764_v51 }
  0x83   : > { %v777_v3 = vsel %vm773_vm4, %v761_v50, %v776_v58  ;;  %v780_v4 = vsel %vm774_vm5, %v767_v52, 920167782  ;;  %v784_v5 = vsel %vm774_vm5, %v770_v53, 1326507024  ;;  %v858_v23 = vshrl.u32 %v2333_v26, %v857_v7 }
  0x84   : > { %v778_v8 = vsel %vm772_vm3, %v775_v56, %v777_v3  ;;  %v781_v9 = vsel %vm773_vm4, %v764_v51, %v780_v4  ;;  %v785_v11 = vsel %vm773_vm4, %v767_v52, %v784_v5  ;;  %v860_v33 = vshrl.u32 %v3354_v28, %v857_v7 }
  0x85   : > { %v782_v16 = vsel %vm772_vm3, %v779_v59, %v781_v9  ;;  %v786_v17 = vsel %vm772_vm3, %v783_v0, %v785_v11  ;;  %v794_v20 = vmul.u32 %v2625_v22, %v778_v8  ;;  %v863_v19 = vshrl.u32 %v2335_v30, %v857_v7  ;;  %v2026_v11 = vld [vmem:[%s2534_s10 + $0x58] sm:$0xff] }
  0x86   : > { %v2655_v25 = vmul.u32.u64.low %v2625_v22, %v786_v17  ;;  %v2656_v27 = vmul.u32.u64.high %v2625_v22, %v786_v17, %v2655_v25  ;;  %v2659_v29 = vmul.u32.u64.low %v2625_v22, %v782_v16  ;;  %v2660_v31 = vmul.u32.u64.high %v2625_v22, %v782_v16, %v2659_v29  ;;  %v2027_v16 = vld [vmem:[%s2534_s10 + $0x60] sm:$0xff]  ;;  %v2028_v17 = vld [vmem:[%s2534_s10 + $0x68] sm:$0xff] }
  0x87   : > { %v865_v37 = vshll.u32 %v2335_v30, %v856_v55  ;;  %v866_v38 = vshrl.u32 %v3349_v32, %v857_v7  ;;  %v868_v40 = vshll.u32 %v3349_v32, %v856_v55  ;;  %v869_v43 = vshrl.u32 %v3352_v34, %v857_v7 }
  0x88   : > { %v871_v44 = vshll.u32 %v3352_v34, %v856_v55  ;;  %v861_v22 = vor.u32 %v860_v33, %v859_v13  ;;  %v864_v46 = vor.u32 %v863_v19, %v862_v35  ;;  %v872_v49 = vshrl.u32 %v3351_v45, %v857_v7  ;;  %v2025_v55 = vld [vmem:[%s2534_s10 + $0x50] sm:$0xff] }
  0x89   : > { %vm874_vm6 = vcmp.lt.s32.totalorder %v2640_v54, 1  ;;  %vm796_vm7 = vc.u32 %v2656_v27, %v2659_v29  ;;  %v797_v50 = vadd.s32 1, %v2660_v31  ;;  %v867_v51 = vor.u32 %v866_v38, %v865_v37 }
  0x8a   : > { %v1193_v52 = vadd.s32 1, %v2065_v36  ;;  %v870_v53 = vor.u32 %v869_v43, %v868_v40  ;;  %v873_v56 = vor.u32 %v872_v49, %v871_v44  ;;  %vm875_vm8 = vcmp.lt.s32.totalorder %v2640_v54, 2  ;;  %v2029_v49 = vld [vmem:[%s2534_s10 + $0x70] sm:$0xff] }
  0x8b   : > { %vm876_vm9 = vcmp.lt.s32.totalorder %v2640_v54, 3  ;;  %v798_v58 = vsel %vm796_vm7, %v797_v50, %v2660_v31  ;;  %vm877_vm10 = vcmp.lt.s32.totalorder %v2640_v54, 4  ;;  %v878_v59 = vsel %vm874_vm6, %v858_v23, %v861_v22 }
  0x8c   : > { %v882_v36 = vsel %vm874_vm6, %v861_v22, %v864_v46  ;;  %v799_v0 = vadd.s32 %v798_v58, %v794_v20  ;;  %v879_v3 = vsel %vm877_vm10, %v867_v51, 2102212464  ;;  %v883_v4 = vsel %vm877_vm10, %v870_v53, 920167782 }
  0x8d   : > { %v886_v5 = vsel %vm874_vm6, %v864_v46, %v867_v51  ;;  %v880_v7 = vsel %vm876_vm9, %v864_v46, %v879_v3  ;;  %v884_v8 = vsel %vm876_vm9, %v867_v51, %v883_v4  ;;  %v887_v9 = vsel %vm877_vm10, %v873_v56, 1326507024  ;;  %v2030_v56 = vld [vmem:[%s2534_s10 + $0x78] sm:$0xff] }
  0x8e   : > { %vm1194_vm11 = vcmp.gt.s32.totalorder %v1193_v52, 0  ;;  %v2693_v13 = vmul.f32 %v2025_v55, %v2602_v6  ;;  %v800_v20 = vadd.s32 536870912, %v799_v0  ;;  %v885_v23 = vsel %vm875_vm8, %v882_v36, %v884_v8 }
  0x8f   : > { %v888_v25 = vsel %vm876_vm9, %v870_v53, %v887_v9  ;;  %v881_v31 = vsel %vm875_vm8, %v878_v59, %v880_v7  ;;  %v2706_v35 = vmul.u32.u64.low %v2627_v24, %v885_v23  ;;  %v2707_v19 = vmul.u32.u64.high %v2627_v24, %v885_v23, %v2706_v35 }
  0x90   : > { %v889_v33 = vsel %vm875_vm8, %v886_v5, %v888_v25  ;;  %v2710_v37 = vshrl.u32 %v800_v20, 30  ;;  %v1195_v43 = vsel %vm1194_vm11, %v1193_v52, 0  ;;  %v2717_v44 = vmul.f32 %v2026_v11, %v2602_v6 }
  0x91   : > { %v2713_v38 = vmul.u32.u64.low %v2627_v24, %v889_v33  ;;  %v2714_v40 = vmul.u32.u64.high %v2627_v24, %v889_v33, %v2713_v38  ;;  %v2720_v22 = vmul.f32 %v2027_v16, %v2602_v6  ;;  %v2723_v54 = vmul.f32 %v2028_v17, %v2602_v6 }
  0x92   : > { %v3347_v46 = vand.u32 2147483647, %v2579_v57  ;;  %v618_v50 = vadd.f32 %v2610_v12, %v2591_v63  ;;  %v802_v51 = vshll.u32 %v2710_v37, 30  ;;  %v897_v53 = vmul.u32 %v2627_v24, %v881_v31 }
  0x93   : > { %v1197_v52 = vand.u32 31, %v1195_v43  ;;  %v619_v55 = vadd.f32 %v2614_v14, %v2595_v1  ;;  %v624_v58 = vadd.f32 %v2693_v13, %v2620_v18  ;;  %v625_v59 = vadd.f32 %v2717_v44, %v2623_v21 }
  0x94   : > { %v900_v36 = vadd.s32 1, %v2707_v19  ;;  %v633_v12 = vsub.f32 %v2588_v62, %v2582_v60  ;;  %v636_v3 = vsub.f32 %v2693_v13, %v2620_v18  ;;  %v2743_v24 = vsub.s32 %v799_v0, %v802_v51 }
  0x95   : > { %vm899_vm12 = vc.u32 %v2714_v40, %v2706_v35  ;;  %v2748_v14 = vmul.f32 %v2029_v49, %v2602_v6  ;;  %v637_v4 = vsub.f32 %v2717_v44, %v2623_v21  ;;  %v1190_v7 = vand.u32 8388607, %v3347_v46 }
  0x96   : > { %v901_v5 = vsel %vm899_vm12, %v900_v36, %v2707_v19  ;;  %v2756_v60 = vmul.f32 %v2030_v56, %v2602_v6  ;;  %v805_v18 = vsub.s32 0, %v2743_v24  ;;  %v1198_v8 = vsub.s32 32, %v1197_v52  ;;  %v2785_v19 = vld [vmem:[%s2538_s9 + $0x18] sm:$0xff] }
  0x97   : > { %v902_v0 = vadd.s32 %v901_v5, %v897_v53  ;;  %v620_v9 = vadd.f32 %v618_v50, %v2598_v2  ;;  %v2761_v11 = vadd.f32 %v619_v55, %v2606_v10  ;;  %v2764_v21 = vadd.f32 %v624_v58, %v2720_v22 }
  0x98   : > { %v2768_v16 = vmul.f32 %v2617_v15, %v2617_v15  ;;  %v2771_v17 = vadd.f32 %v625_v59, %v2723_v54  ;;  %v2773_v20 = vmul.f32 %v633_v12, %v633_v12  ;;  %v2775_v23 = vmul.f32 %v636_v3, %v636_v3 }
  0x99   : > { %v2050_v25 = vmin.u32 %v805_v18, %v2743_v24  ;;  %v2778_v2 = vmul.f32 %v637_v4, %v637_v4  ;;  %v2782_v10 = vsub.f32 %v2591_v63, %v2585_v61  ;;  %v903_v31 = vadd.s32 536870912, %v902_v0 }
  0x9a   : > { %v1191_v33 = vor.u32 8388608, %v1190_v7  ;;  %v1200_v38 = vshll.u32 %v2333_v26, %v1197_v52  ;;  %v1201_v49 = vshrl.u32 %v3354_v28, %v1198_v8  ;;  %v1203_v50 = vshll.u32 %v3354_v28, %v1197_v52 }
  0x9b   : > { %v807_v15 = vclz %v2050_v25  ;;  %v2790_v51 = vshrl.u32 %v903_v31, 30  ;;  %v1204_v53 = vshrl.u32 %v2335_v30, %v1198_v8  ;;  %v1206_v56 = vshll.u32 %v2335_v30, %v1197_v52 }
  0x9c   : > { %v1207_v61 = vshrl.u32 %v3349_v32, %v1198_v8  ;;  %v1196_v55 = vshrl.u32 %v1195_v43, 5  ;;  %v1209_v58 = vshll.u32 %v3349_v32, %v1197_v52  ;;  %v1210_v59 = vshrl.u32 %v3352_v34, %v1198_v8 }
  0x9d   : > { %v2051_v63 = vadd.s32 4294967294, %v807_v15  ;;  %v905_v36 = vshll.u32 %v2790_v51, 30  ;;  %v1212_v12 = vshll.u32 %v3352_v34, %v1197_v52  ;;  %v1213_v3 = vshrl.u32 %v3351_v45, %v1198_v8 }
  0x9e   : > { %v1289_v4 = vand.u32 2139095040, %v2785_v19  ;;  %v795_v5 = vadd.s32 %v2659_v29, %v2656_v27  ;;  %v1199_v7 = vshrl.u32 %v2333_v26, %v1198_v8  ;;  %v1202_v18 = vor.u32 %v1201_v49, %v1200_v38 }
  0x9f   : > { %vm2052_vm13 = vcmp.lt.s32.totalorder %v2051_v63, 0  ;;  %v2804_v25 = vsub.s32 %v902_v0, %v905_v36  ;;  %v1205_v31 = vor.u32 %v1204_v53, %v1203_v50  ;;  %v1208_v15 = vor.u32 %v1207_v61, %v1206_v56 }
  0xa0   : > { %v810_v43 = vsel %vm2052_vm13, 0, %v2051_v63  ;;  %v1211_v32 = vor.u32 %v1210_v59, %v1209_v58  ;;  %vm1218_vm14 = vcmp.lt.s32.totalorder %v1196_v55, 4  ;;  %v1214_v45 = vor.u32 %v1213_v3, %v1212_v12 }
  0xa1   : > { %v811_v46 = vsub.s32 32, %v810_v43  ;;  %v815_v47 = vsub.s32 4294967266, %v810_v43  ;;  %v908_v52 = vsub.s32 0, %v2804_v25  ;;  %vm1215_vm15 = vcmp.lt.s32.totalorder %v1196_v55, 1 }
  0xa2   : > { %v1220_v34 = vsel %vm1218_vm14, %v1208_v15, 2102212464  ;;  %v812_v27 = vshll.u32 %v2743_v24, %v810_v43  ;;  %vm1217_vm0 = vcmp.lt.s32.totalorder %v1196_v55, 3  ;;  %vm1216_vm1 = vcmp.lt.s32.totalorder %v1196_v55, 2 }
  0xa3   : > { %v813_v29 = vshrl.u32 %v795_v5, %v811_v46  ;;  %v816_v8 = vadd.s32 127, %v815_v47  ;;  %v2054_v0 = vmin.u32 %v908_v52, %v2804_v25  ;;  %v1219_v38 = vsel %vm1215_vm15, %v1199_v7, %v1202_v18 }
  0xa4   : > { %v1231_v49 = vshll.u32 %v1191_v33, 8  ;;  %v1221_v53 = vsel %vm1217_vm0, %v1205_v31, %v1220_v34  ;;  %v1223_v56 = vsel %vm1215_vm15, %v1202_v18, %v1205_v31  ;;  %v1224_v61 = vsel %vm1218_vm14, %v1211_v32, 920167782 }
  0xa5   : > { %v817_v50 = vshll.u32 %v816_v8, 23  ;;  %v910_v63 = vclz %v2054_v0  ;;  %v1225_v58 = vsel %vm1217_vm0, %v1208_v15, %v1224_v61  ;;  %v1227_v46 = vsel %vm1215_vm15, %v1205_v31, %v1208_v15  ;;  %v2035_v61 = vld [vmem:[%s2536_s0 + $0x30] sm:$0xff] }
  0xa6   : > { %v1228_v47 = vsel %vm1218_vm14, %v1214_v45, 1326507024  ;;  %v2817_v24 = vmul.f32 0.25, %v620_v9  ;;  %v814_v59 = vor.u32 %v813_v29, %v812_v27  ;;  %v1290_v12 = vshrl.u32 %v1289_v4, 23  ;;  %v653_v27 = vld [vmem:[%s2536_s0 + $0x8] sm:$0xff] }
  0xa7   : > { %v818_v36 = vor.u32 4788187, %v817_v50  ;;  %v2821_v33 = vadd.f32 %v2764_v21, %v2748_v14  ;;  %v2055_v34 = vadd.s32 4294967294, %v910_v63  ;;  %v1226_v3 = vsel %vm1216_vm1, %v1223_v56, %v1225_v58  ;;  %v2036_v63 = vld [vmem:[%s2536_s0 + $0x38] sm:$0xff]  ;;  %v2037_v58 = vld [vmem:[%s2536_s0 + $0x40] sm:$0xff] }
  0xa8   : > { %3363 = vst [vmem:[#allocation10_spill] sm:$0xff] %v2817_v24  ;;  %v1229_v5 = vsel %vm1217_vm0, %v1211_v32, %v1228_v47  ;;  %v1222_v7 = vsel %vm1216_vm1, %v1219_v38, %v1221_v53  ;;  %v2827_v9 = vmul.u32.u64.low %v1231_v49, %v1226_v3  ;;  %v2828_v18 = vmul.u32.u64.high %v1231_v49, %v1226_v3, %v2827_v9 }
  0xa9   : > { %v1230_v45 = vsel %vm1216_vm1, %v1227_v46, %v1229_v5  ;;  %v643_v14 = vsub.f32 %v2595_v1, %v2588_v62  ;;  %vm2056_vm2 = vcmp.lt.s32.totalorder %v2055_v34, 0  ;;  %v819_v43 = vand.u32 2147483647, %v818_v36  ;;  %v652_v1 = vld [vmem:[%s2536_s0] sm:$0xff] }
  0xaa   : > { %v2833_v21 = vmul.u32.u64.low %v1231_v49, %v1230_v45  ;;  %v2834_v4 = vmul.u32.u64.high %v1231_v49, %v1230_v45, %v2833_v21  ;;  %v821_v31 = vcvt.s32.f32 %v814_v59  ;;  %v2836_v32 = vsel %vm2056_vm2, 0, %v2055_v34  ;;  %v2039_v59 = vld [vmem:[%s2536_s0 + $0x50] sm:$0xff] }
  0xab   : > { %v2069_v15 = vadd.s32 4294967169, %v1290_v12  ;;  %v2840_v55 = vadd.f32 %v2771_v17, %v2756_v60  ;;  %v646_v52 = vsub.f32 %v2720_v22, %v2693_v13  ;;  %v647_v62 = vsub.f32 %v2723_v54, %v2717_v44  ;;  %v2031_v60 = vld [vmem:[%s2536_s0 + $0x10] sm:$0xff]  ;;  %v2032_v54 = vld [vmem:[%s2536_s0 + $0x18] sm:$0xff] }
  0xac   : > { %v1238_v29 = vmul.u32 %v1231_v49, %v1222_v7  ;;  %v2850_v8 = vadd.f32 %v2775_v23, %v2768_v16  ;;  %v2854_v0 = vadd.f32 %v2778_v2, %v2773_v20  ;;  %v1241_v17 = vadd.s32 1, %v2828_v18  ;;  %v2033_v23 = vld [vmem:[%s2536_s0 + $0x20] sm:$0xff]  ;;  %v2034_v2 = vld [vmem:[%s2536_s0 + $0x28] sm:$0xff] }
  0xad   : > { %3364 = vst [vmem:[#allocation11_spill] sm:$0xff] %v2840_v55  ;;  %v1296_v13 = vadd.s32 1, %v2069_v15  ;;  %v644_v44 = vmul.f32 %v2782_v10, %v2782_v10  ;;  %v645_v22 = vmul.f32 %v643_v14, %v643_v14  ;;  %v918_v38 = vsub.s32 4294967266, %v2836_v32 }
  0xae   : > { %vm1240_vm3 = vc.u32 %v2834_v4, %v2827_v9  ;;  %v654_v16 = vmul.f32 %v652_v1, %v2567_v48  ;;  %v2866_v20 = vmul.f32 %v653_v27, %v2567_v48  ;;  %v822_v49 = vmul.f32 %v821_v31, %v819_v43 }
  0xaf   : > { %v1242_v50 = vsel %vm1240_vm3, %v1241_v17, %v2828_v18  ;;  %v648_v10 = vmul.f32 %v646_v52, %v646_v52  ;;  %v649_v53 = vmul.f32 %v647_v62, %v647_v62  ;;  %v659_v56 = vmul.f32 %v2031_v60, %v2567_v48  ;;  %v2041_v62 = vld [vmem:[%s2536_s0 + $0x60] sm:$0xff]  ;;  %v2042_v60 = vld [vmem:[%s2536_s0 + $0x68] sm:$0xff]  ;;  %v2043_v17 = vld [vmem:[%s2536_s0 + $0x70] sm:$0xff] }
  0xb0   : > { %v1243_v46 = vadd.s32 %v1242_v50, %v1238_v29  ;;  %v2876_v47 = vmul.f32 %v2032_v54, %v2567_v48  ;;  %v898_v36 = vadd.s32 %v2706_v35, %v2714_v40  ;;  %v914_v12 = vsub.s32 32, %v2836_v32  ;;  %v2038_v35 = vld [vmem:[%s2536_s0 + $0x48] sm:$0xff]  ;;  %v2044_v54 = vld [vmem:[%s2536_s0 + $0x78] sm:$0xff] }
  0xb1   : > { %vm1297_vm4 = vcmp.gt.s32.totalorder %v1296_v13, 0  ;;  %v2883_v34 = vmul.f32 %v2033_v23, %v2567_v48  ;;  %v2886_v3 = vmul.f32 %v2034_v2, %v2567_v48  ;;  %v919_v5 = vadd.s32 127, %v918_v38 }
  0xb2   : > { %v1244_v7 = vadd.s32 536870912, %v1243_v46  ;;  %v2889_v45 = vmul.f32 %v2035_v61, %v2567_v48  ;;  %v2892_v18 = vmul.f32 %v2036_v63, %v2567_v48  ;;  %v2896_v40 = vmul.f32 %v2037_v58, %v2602_v6  ;;  %v2040_v48 = vld [vmem:[%s2536_s0 + $0x58] sm:$0xff] }
  0xb3   : > { %v823_v14 = vxor.u32 2147483648, %v822_v49  ;;  %v2899_v21 = vmul.f32 %v2039_v59, %v2602_v6  ;;  %vm741_vm5 = vcmp.lt.s32.totalorder %v2553_v39, 0  ;;  %v1298_v31 = vsel %vm1297_vm4, %v1296_v13, 0 }
  0xb4   : > { %v2902_v43 = vshrl.u32 %v1244_v7, 30  ;;  %v2904_v15 = vadd.f32 %v648_v10, %v644_v44  ;;  %v2906_v52 = vadd.f32 %v649_v53, %v645_v22  ;;  %v915_v1 = vshll.u32 %v2804_v25, %v2836_v32 }
  0xb5   : > { %v916_v27 = vshrl.u32 %v898_v36, %v914_v12  ;;  %v2913_v29 = vmul.f32 %v2038_v35, %v2602_v6  ;;  %v825_v38 = vsub.s32 4, %v2710_v37  ;;  %v920_v23 = vshll.u32 %v919_v5, 23 }
  0xb6   : > { %v1246_v13 = vshll.u32 %v2902_v43, 30  ;;  %v707_v44 = vsub.f32 %v659_v56, %v654_v16  ;;  %vm2922_vm6 = vcmp.le.f32.partialorder %v739_v42, 0.7853982  ;;  %v824_v25 = vsel %vm741_vm5, %v823_v14, %v822_v49 }
  0xb7   : > { %v1300_v32 = vand.u32 31, %v1298_v31  ;;  %v2929_v2 = vmul.f32 %v2040_v48, %v2602_v6  ;;  %v2932_v50 = vmul.f32 %v2041_v62, %v2602_v6  ;;  %v711_v10 = vsub.f32 %v2899_v21, %v2896_v40 }
  0xb8   : > { %v2936_v53 = vsub.s32 %v1243_v46, %v1246_v13  ;;  %v2939_v42 = vmul.f32 %v2042_v60, %v2602_v6  ;;  %v2942_v61 = vmul.f32 %v2043_v17, %v2602_v6  ;;  %v2945_v49 = vmul.f32 %v2044_v54, %v2602_v6 }
  0xb9   : > { %v917_v63 = vor.u32 %v916_v27, %v915_v1  ;;  %v826_v58 = vsel %vm741_vm5, %v825_v38, %v2710_v37  ;;  %v827_v59 = vsel %vm2922_vm6, %v2553_v39, %v824_v25  ;;  %v921_v46 = vor.u32 4788187, %v920_v23 }
  0xba   : > { %3367 = vst [vmem:[#allocation12_spill] sm:$0xff] %v2945_v49  ;;  %v1249_v36 = vsub.s32 0, %v2936_v53  ;;  %v2954_v12 = vadd.f32 %v659_v56, %v654_v16  ;;  %v2958_v5 = vadd.f32 %v2876_v47, %v2866_v20  ;;  %v2960_v6 = vmul.f32 %v707_v44, %v707_v44 }
  0xbb   : > { %v1301_v7 = vsub.s32 32, %v1300_v32  ;;  %v2962_v35 = vmul.f32 %v711_v10, %v711_v10  ;;  %v717_v37 = vsub.f32 %v2883_v34, %v659_v56  ;;  %v721_v14 = vsub.f32 %v2932_v50, %v2899_v21 }
  0xbc   : > { %v2066_v48 = vmin.u32 %v1249_v36, %v2936_v53  ;;  %v828_v16 = vsel %vm2922_vm6, 0, %v826_v58  ;;  %2199 = vcosq.f32 %v827_v59  ;;  %v924_v62 = vcvt.s32.f32 %v917_v63 }
  0xbd   : > { %v3355_v1 = vand.u32 2147483647, %v2785_v19  ;;  %v922_v27 = vand.u32 2147483647, %v921_v46  ;;  %v2971_v17 = vshrl.u32 %v1298_v31, 5  ;;  %v1306_v54 = vshll.u32 %v3354_v28, %v1300_v32 }
  0xbe   : > { %v1251_v60 = vclz %v2066_v48  ;;  %v1307_v56 = vshrl.u32 %v2335_v30, %v1301_v7  ;;  %v1309_v38 = vshll.u32 %v2335_v30, %v1300_v32  ;;  %v3368_v23 = vmov 2102212464  }
  0xbf   : > { %v1312_v13 = vshll.u32 %v3368_v23, %v1300_v32  ;;  %v3369_v44 = vmov 920167782   ;;  %v1310_v10 = vshrl.u32 %v3368_v23, %v1301_v7  ;;  %v3370_v58 = vmov 1326507024  }
  0xc0   : > { %v1313_v25 = vshrl.u32 %v3369_v44, %v1301_v7  ;;  %v2067_v22 = vadd.s32 4294967294, %v1251_v60  ;;  %v1315_v63 = vshll.u32 %v3369_v44, %v1300_v32  ;;  %v1316_v46 = vshrl.u32 %v3370_v58, %v1301_v7 }
  0xc1   : > { %v2981_v36 = vmul.f32 %v717_v37, %v717_v37  ;;  %v2983_v31 = vmul.f32 %v721_v14, %v721_v14  ;;  %vm844_vm7 = vcmp.lt.s32.totalorder %v2559_v41, 0  ;;  %v1293_v30 = vand.u32 8388607, %v3355_v1 }
  0xc2   : > { %2201 = vsinq.f32 %v827_v59  ;;  %v1038_v48 = vadd.s32 3, %v828_v16  ;;  %v1303_v28 = vshll.u32 %v2333_v26, %v1300_v32  ;;  %v3371_v60 = vmov 2475754826  }
  0xc3   : > { %v1304_v24 = vshrl.u32 %v3371_v60, %v1301_v7  ;;  %v925_v23 = vmul.f32 %v924_v62, %v922_v27  ;;  %v1239_v44 = vadd.s32 %v2827_v9, %v2834_v4  ;;  %vm2068_vm8 = vcmp.lt.s32.totalorder %v2067_v22, 0 }
  0xc4   : > { %v1314_v37 = vor.u32 %v1313_v25, %v1312_v13  ;;  %v1308_v58 = vor.u32 %v1307_v56, %v1306_v54  ;;  %v1311_v14 = vor.u32 %v1310_v10, %v1309_v38  ;;  %v1317_v55 = vor.u32 %v1316_v46, %v1315_v63 }
  0xc5   : > { %vm1321_vm9 = vcmp.lt.s32.totalorder %v2971_v17, 4  ;;  %v2993_v49 = vand.u32 3, %v828_v16  ;;  %v1254_v1 = vsel %vm2068_vm8, 0, %v2067_v22  ;;  %v1294_v59 = vor.u32 8388608, %v1293_v30 }
  0xc6   : > { %vm1318_vm10 = vcmp.lt.s32.totalorder %v2971_v17, 1  ;;  %v3372_v32 = vand.u32 2147483647, %v2559_v41  ;;  %v1255_v9 = vsub.s32 32, %v1254_v1  ;;  %v1256_v4 = vshll.u32 %v2936_v53, %v1254_v1  ;;  %v2200_v54 = vpop.eup %2199 }
  0xc7   : > { %v1305_v27 = vor.u32 %v1304_v24, %v1303_v28  ;;  %vm1320_vm12 = vcmp.lt.s32.totalorder %v2971_v17, 3  ;;  %v926_v56 = vxor.u32 2147483648, %v925_v23  ;;  %v3004_v16 = vand.u32 3, %v1038_v48 }
  0xc8   : > { %vm2998_vm11 = vcmp.le.f32.partialorder %v3372_v32, 0.7853982  ;;  %v1259_v38 = vsub.s32 4294967266, %v1254_v1  ;;  %v1327_v13 = vsel %vm1321_vm9, %v1314_v37, 920167782  ;;  %v1257_v25 = vshrl.u32 %v1239_v44, %v1255_v9 }
  0xc9   : > { %vm1319_vm13 = vcmp.lt.s32.totalorder %v2971_v17, 2  ;;  %v1330_v22 = vsel %vm1318_vm10, %v1308_v58, %v1311_v14  ;;  %v1331_v53 = vsel %vm1321_vm9, %v1317_v55, 1326507024  ;;  %v1302_v24 = vshrl.u32 %v2333_v26, %v1301_v7 }
  0xca   : > { %v1260_v28 = vadd.s32 127, %v1259_v38  ;;  %v1332_v10 = vsel %vm1320_vm12, %v1314_v37, %v1331_v53  ;;  %v1334_v63 = vshll.u32 %v1294_v59, 8  ;;  %v1258_v1 = vor.u32 %v1257_v25, %v1256_v4 }
  0xcb   : > { %v1323_v46 = vsel %vm1321_vm9, %v1311_v14, 2102212464  ;;  %v1326_v30 = vsel %vm1318_vm10, %v1305_v27, %v1308_v58  ;;  %v1328_v48 = vsel %vm1320_vm12, %v1311_v14, %v1327_v13  ;;  %v928_v60 = vsub.s32 4, %v2790_v51 }
  0xcc   : > { %vm1185_vm14 = vcmp.lt.s32.totalorder %v2579_v57, 0  ;;  %v1261_v55 = vshll.u32 %v1260_v28, 23  ;;  %v1333_v26 = vsel %vm1319_vm13, %v1330_v22, %v1332_v10  ;;  %v2202_v7 = vpop.eup %2201  ;;  %vm834_vm15 = vcmp.eq.s32.totalorder %v2993_v49, 0 }
  0xcd   : > { %vm837_vm0 = vcmp.eq.s32.totalorder %v2993_v49, 2  ;;  %v927_v44 = vsel %vm844_vm7, %v926_v56, %v925_v23  ;;  %vm1041_vm1 = vcmp.eq.s32.totalorder %v3004_v16, 0  ;;  %v838_v37 = vxor.u32 2147483648, %v2200_v54 }
  0xce   : > { %v1322_v14 = vsel %vm1318_vm10, %v1302_v24, %v1305_v27  ;;  %v1324_v59 = vsel %vm1320_vm12, %v1308_v58, %v1323_v46  ;;  %v1329_v32 = vsel %vm1319_vm13, %v1326_v30, %v1328_v48  ;;  %v1262_v9 = vor.u32 4788187, %v1261_v55 }
  0xcf   : > { %v1265_v4 = vcvt.s32.f32 %v1258_v1  ;;  %v3037_v38 = vmul.u32.u64.low %v1334_v63, %v1333_v26  ;;  %v3038_v13 = vmul.u32.u64.high %v1334_v63, %v1333_v26, %v3037_v38  ;;  %v835_v25 = vxor.u32 2147483648, %v2202_v7 }
  0xd0   : > { %v929_v23 = vsel %vm844_vm7, %v928_v60, %v2790_v51  ;;  %vm1044_vm2 = vcmp.eq.s32.totalorder %v3004_v16, 2  ;;  %v1269_v27 = vsub.s32 4, %v2902_v43  ;;  %v1263_v56 = vand.u32 2147483647, %v1262_v9 }
  0xd1   : > { %v1325_v58 = vsel %vm1319_vm13, %v1322_v14, %v1324_v59  ;;  %v3047_v22 = vmul.u32.u64.low %v1334_v63, %v1329_v32  ;;  %v3048_v53 = vmul.u32.u64.high %v1334_v63, %v1329_v32, %v3047_v22  ;;  %vm833_vm3 = vcmp.lt.s32.totalorder %v2993_v49, 2 }
  0xd2   : > { %v930_v28 = vsel %vm2998_vm11, %v2559_v41, %v927_v44  ;;  %vm1040_vm4 = vcmp.lt.s32.totalorder %v3004_v16, 2  ;;  %v3375_v51 = vand.u32 2147483647, %v2579_v57  ;;  %v839_v17 = vsel %vm837_vm0, %v838_v37, %v2202_v7 }
  0xd3   : > { %v931_v10 = vsel %vm2998_vm11, 0, %v929_v23  ;;  %v1046_v1 = vsel %vm1044_vm2, %v838_v37, %v2202_v7  ;;  %v1266_v46 = vmul.f32 %v1265_v4, %v1263_v56  ;;  %v836_v30 = vsel %vm834_vm15, %v2200_v54, %v835_v25 }
  0xd4   : > { %vm3058_vm5 = vcmp.le.f32.partialorder %v3375_v51, 0.7853982  ;;  %v1043_v41 = vsel %vm1041_vm1, %v2200_v54, %v835_v25  ;;  %v1341_v48 = vmul.u32 %v1334_v63, %v1325_v58  ;;  %vm1343_vm6 = vc.u32 %v3038_v13, %v3047_v22 }
  0xd5   : > { %2203 = vcosq.f32 %v930_v28  ;;  %v1267_v60 = vxor.u32 2147483648, %v1266_v46  ;;  %v1270_v55 = vsel %vm1185_vm14, %v1269_v27, %v2902_v43  ;;  %v1344_v62 = vadd.s32 1, %v3048_v53 }
  0xd6   : > { %v735_v26 = vmul.f32 0.083333336, %v2850_v8  ;;  %v737_v7 = vmul.f32 0.083333336, %v2904_v15  ;;  %vm831_vm7 = vweird.f32 %v2553_v39  ;;  %2205 = vsinq.f32 %v930_v28 }
  0xd7   : > { %v840_v54 = vsel %vm833_vm3, %v836_v30, %v839_v17  ;;  %v1047_v63 = vsel %vm1040_vm4, %v1043_v41, %v1046_v1  ;;  %v1268_v44 = vsel %vm1185_vm14, %v1267_v60, %v1266_v46  ;;  %v1345_v43 = vsel %vm1343_vm6, %v1344_v62, %v3048_v53 }
  0xd8   : > { %v1142_v37 = vadd.s32 3, %v931_v10  ;;  %v1271_v8 = vsel %vm3058_vm5, %v2579_v57, %v1268_v44  ;;  %v1272_v39 = vsel %vm3058_vm5, 0, %v1270_v55  ;;  %v1346_v15 = vadd.s32 %v1345_v43, %v1341_v48 }
  0xd9   : > { %v3093_v49 = vadd.f32 %v2899_v21, %v2896_v40  ;;  %v715_v16 = vadd.f32 %v2962_v35, %v2960_v6  ;;  %v725_v14 = vadd.f32 %v2983_v31, %v2981_v36  ;;  %2207 = vcosq.f32 %v1271_v8 }
  0xda   : > { %v3099_v59 = vsel %vm831_vm7, nan, %v840_v54  ;;  %v3101_v32 = vsel %vm831_vm7, nan, %v1047_v63  ;;  %2209 = vsinq.f32 %v1271_v8  ;;  %v1347_v9 = vadd.s32 536870912, %v1346_v15 }
  0xdb   : > { %v3105_v4 = vadd.f32 %v2929_v2, %v2913_v29  ;;  %v3109_v40 = vsub.f32 %v2876_v47, %v2866_v20  ;;  %v3111_v21 = vand.u32 3, %v931_v10  ;;  %v1482_v6 = vadd.s32 3, %v1272_v39 }
  0xdc   : > { %v3115_v35 = vsub.f32 %v2929_v2, %v2913_v29  ;;  %v3117_v36 = vand.u32 3, %v1142_v37  ;;  %v1173_v31 = vsub.f32 %v735_v26, %v737_v7  ;;  %v3119_v38 = vshrl.u32 %v1347_v9, 30 }
  0xdd   : > { %v1153_v25 = vmul.f32 %v3099_v59, %v735_v26  ;;  %v1157_v23 = vmul.f32 %v3101_v32, %v737_v7  ;;  %v1163_v27 = vmul.f32 %v3101_v32, %v735_v26  ;;  %v1167_v20 = vmul.f32 %v3099_v59, %v737_v7 }
  0xde   : > { %v1179_v56 = vmul.f32 0.083333336, %v715_v16  ;;  %v1181_v58 = vmul.f32 0.083333336, %v725_v14  ;;  %v1276_v53 = vand.u32 3, %v1272_v39  ;;  %v1349_v28 = vshll.u32 %v3119_v38, 30 }
  0xdf   : > { %v2204_v29 = vpop.eup %2203  ;;  %vm937_vm8 = vcmp.eq.s32.totalorder %v3111_v21, 0  ;;  %vm940_vm9 = vcmp.eq.s32.totalorder %v3111_v21, 2  ;;  %vm1275_vm10 = vweird.f32 %v2579_v57  ;;  %v1483_v51 = vand.u32 3, %v1482_v6 }
  0xe0   : > { %v2206_v24 = vpop.eup %2205  ;;  %vm1145_vm11 = vcmp.eq.s32.totalorder %v3117_v36, 0  ;;  %vm1148_vm12 = vcmp.eq.s32.totalorder %v3117_v36, 2  ;;  %v1175_v17 = vmul.f32 %v1173_v31, %v3099_v59  ;;  %v3132_v10 = vsub.s32 %v1346_v15, %v1349_v28 }
  0xe1   : > { %v1155_v1 = vmul.f32 %v1153_v25, %v3099_v59  ;;  %v1159_v46 = vmul.f32 %v1157_v23, %v3101_v32  ;;  %v1165_v30 = vmul.f32 %v1163_v27, %v3101_v32  ;;  %v1169_v41 = vmul.f32 %v1167_v20, %v3099_v59 }
  0xe2   : > { %v941_v48 = vxor.u32 2147483648, %v2204_v29  ;;  %vm1277_vm13 = vcmp.lt.s32.totalorder %v1276_v53, 2  ;;  %v1352_v60 = vsub.s32 0, %v3132_v10  ;;  %v1617_v55 = vsub.f32 %v1179_v56, %v1181_v58 }
  0xe3   : > { %v2208_v62 = vpop.eup %2207  ;;  %v938_v26 = vxor.u32 2147483648, %v2206_v24  ;;  %vm1278_vm14 = vcmp.eq.s32.totalorder %v1276_v53, 0  ;;  %vm1281_vm15 = vcmp.eq.s32.totalorder %v1276_v53, 2  ;;  %vm1488_vm0 = vcmp.eq.s32.totalorder %v1483_v51, 2 }
  0xe4   : > { %v2210_v7 = vpop.eup %2209  ;;  %v3140_v54 = vmul.f32 %v1175_v17, %v3101_v32  ;;  %v1282_v63 = vxor.u32 2147483648, %v2208_v62  ;;  %v2070_v44 = vmin.u32 %v1352_v60, %v3132_v10  ;;  %vm1485_vm1 = vcmp.eq.s32.totalorder %v1483_v51, 0 }
  0xe5   : > { %v3143_v43 = vadd.f32 %v1159_v46, %v1155_v1  ;;  %v3145_v37 = vadd.f32 %v1169_v41, %v1165_v30  ;;  %v1279_v8 = vxor.u32 2147483648, %v2210_v7  ;;  %vm1484_vm2 = vcmp.lt.s32.totalorder %v1483_v51, 2 }
  0xe6   : > { %vm936_vm3 = vcmp.lt.s32.totalorder %v3111_v21, 2  ;;  %v942_v39 = vsel %vm940_vm9, %v941_v48, %v2206_v24  ;;  %vm1144_vm4 = vcmp.lt.s32.totalorder %v3117_v36, 2  ;;  %v1283_v15 = vsel %vm1281_vm15, %v1282_v63, %v2210_v7 }
  0xe7   : > { %v1354_v16 = vclz %v2070_v44  ;;  %v1490_v14 = vsel %vm1488_vm0, %v1282_v63, %v2210_v7  ;;  %v939_v9 = vsel %vm937_vm8, %v2204_v29, %v938_v26  ;;  %v1150_v6 = vsel %vm1148_vm12, %v941_v48, %v2206_v24 }
  0xe8   : > { %v1280_v31 = vsel %vm1278_vm14, %v2208_v62, %v1279_v8  ;;  %v1487_v25 = vsel %vm1485_vm1, %v2208_v62, %v1279_v8  ;;  %v1147_v23 = vsel %vm1145_vm11, %v2204_v29, %v938_v26  ;;  %v1342_v17 = vadd.s32 %v3047_v22, %v3038_v13 }
  0xe9   : > { %v1284_v27 = vsel %vm1277_vm13, %v1280_v31, %v1283_v15  ;;  %v2071_v20 = vadd.s32 4294967294, %v1354_v16  ;;  %v1491_v28 = vsel %vm1484_vm2, %v1487_v25, %v1490_v14  ;;  %v1669_v24 = vmul.f32 %v3145_v37, %v3143_v43 }
  0xea   : > { %v1285_v51 = vsel %vm1275_vm10, nan, %v1284_v27  ;;  %v1492_v1 = vsel %vm1275_vm10, nan, %v1491_v28  ;;  %v1671_v60 = vmul.f32 %v3140_v54, %v3140_v54  ;;  %v710_v15 = vmul.f32 %v3109_v40, %v3109_v40 }
  0xeb   : > { %vm2072_vm5 = vcmp.lt.s32.totalorder %v2071_v20, 0  ;;  %v1597_v46 = vmul.f32 %v1285_v51, %v1179_v56  ;;  %v1601_v30 = vmul.f32 %v1492_v1, %v1181_v58  ;;  %v1607_v29 = vmul.f32 %v1492_v1, %v1179_v56 }
  0xec   : > { %v1357_v53 = vsel %vm2072_vm5, 0, %v2071_v20  ;;  %v1611_v41 = vmul.f32 %v1285_v51, %v1181_v58  ;;  %v1619_v48 = vmul.f32 %v1617_v55, %v1285_v51  ;;  %v1749_v58 = vmul.f32 %v1285_v51, %v3099_v59  ;;  %v3185_v59 = vld [vmem:[%s2538_s9 + $0x20] sm:$0xff] }
  0xed   : > { %v1358_v62 = vsub.s32 32, %v1357_v53  ;;  %v1359_v26 = vshll.u32 %v3132_v10, %v1357_v53  ;;  %v1362_v13 = vsub.s32 4294967266, %v1357_v53  ;;  %v1599_v22 = vmul.f32 %v1597_v46, %v1285_v51 }
  0xee   : > { %v1603_v57 = vmul.f32 %v1601_v30, %v1492_v1  ;;  %v1609_v7 = vmul.f32 %v1607_v29, %v1492_v1  ;;  %v1613_v63 = vmul.f32 %v1611_v41, %v1285_v51  ;;  %v3170_v44 = vmul.f32 %v1619_v48, %v1492_v1  ;;  %v1766_v48 = vld [vmem:[#allocation2 + $0x10] sm:$0xff] }
  0xef   : > { %v1360_v8 = vshrl.u32 %v1342_v17, %v1358_v62  ;;  %v1363_v56 = vadd.s32 127, %v1362_v13  ;;  %v1751_v55 = vmul.f32 %v1492_v1, %v3101_v32  ;;  %v1673_v14 = vsub.f32 %v1669_v24, %v1671_v60  ;;  %v2239_v32 = vld [vmem:[%s2538_s9 + $0x8] sm:$0xff] }
  0xf0   : > { %v3176_v16 = vadd.f32 %v1603_v57, %v1599_v22  ;;  %v3178_v10 = vadd.f32 %v1613_v63, %v1609_v7  ;;  %v1679_v27 = vmul.f32 %v3170_v44, %v3170_v44  ;;  %v718_v28 = vsub.f32 %v2886_v3, %v2876_v47  ;;  %v3209_v60 = vld [vmem:[%s2538_s9 + $0x28] sm:$0xff] }
  0xf1   : > { %v1361_v31 = vor.u32 %v1360_v8, %v1359_v26  ;;  %v1364_v25 = vshll.u32 %v1363_v56, 23  ;;  %v1753_v20 = vadd.f32 %v1751_v55, %v1749_v58  ;;  %vm934_vm6 = vweird.f32 %v2239_v32  ;;  %v1776_v13 = vld [vmem:[#allocation2 + $0x28] sm:$0xff] }
  0xf2   : > { %v943_v40 = vsel %vm936_vm3, %v939_v9, %v942_v39  ;;  %v1151_v51 = vsel %vm1144_vm4, %v1147_v23, %v1150_v6  ;;  %v1677_v24 = vmul.f32 %v3178_v10, %v3176_v16  ;;  %v714_v47 = vmul.f32 %v3115_v35, %v3115_v35 }
  0xf3   : > { %v1365_v17 = vor.u32 4788187, %v1364_v25  ;;  %v1368_v1 = vcvt.s32.f32 %v1361_v31  ;;  %v1755_v46 = vsub.f32 1.0, %v1753_v20  ;;  %v722_v30 = vsub.f32 %v2939_v42, %v2929_v2  ;;  %v1775_v2 = vld [vmem:[#allocation2 + $0x20] sm:$0xff] }
  0xf4   : > { %v736_v29 = vmul.f32 0.083333336, %v2854_v0  ;;  %v1675_v21 = vmax.f32 %v1673_v14, 0.0  ;;  %v1372_v36 = vsub.s32 4, %v3119_v38  ;;  %v1681_v9 = vsub.f32 %v1677_v24, %v1679_v27 }
  0xf5   : > { %v1366_v39 = vand.u32 2147483647, %v1365_v17  ;;  %v1768_v6 = vmul.f32 %v3185_v59, %v1755_v46  ;;  %v720_v23 = vmul.f32 %v718_v28, %v718_v28  ;;  %v738_v53 = vmul.f32 0.083333336, %v2906_v52 }
  0xf6   : > { %v3203_v41 = vsel %vm934_vm6, nan, %v943_v40  ;;  %v3206_v35 = vsel %vm934_vm6, nan, %v1151_v51  ;;  %v1683_v62 = vmax.f32 %v1681_v9, 0.0  ;;  %v1777_v22 = vadd.f32 %v3185_v59, %v1775_v2 }
  0xf7   : > { %v1369_v0 = vmul.f32 %v1368_v1, %v1366_v39  ;;  %v1770_v26 = vadd.f32 %v1768_v6, %v1766_v48  ;;  %v724_v57 = vmul.f32 %v722_v30, %v722_v30  ;;  %v3378_v7 = vand.u32 2147483647, %v2785_v19  ;;  %v3381_v30 = vld [vmem:[#allocation12_spill] sm:$0xff] }
  0xf8   : > { %vm1288_vm8 = vcmp.lt.s32.totalorder %v2785_v19, 0  ;;  %v1778_v63 = vadd.f32 %v3209_v60, %v1776_v13  ;;  %v1154_v8 = vmul.f32 %v3203_v41, %v736_v29  ;;  %v3222_v55 = vmul.f32 %v1683_v62, %v1675_v21  ;;  %1779 = vst [vmem:[#allocation2 + $0x20] sm:$0xff] %v1777_v22  ;;  %v3382_v21 = vld [vmem:[#allocation11_spill] sm:$0xff] }
  0xf9   : > { %vm3214_vm7 = vcmp.le.f32.partialorder %v3378_v7, 0.7853982  ;;  %v1370_v56 = vxor.u32 2147483648, %v1369_v0  ;;  %v1373_v58 = vsel %vm1288_vm8, %v1372_v36, %v3119_v38  ;;  %1772 = vst [vmem:[#allocation2 + $0x10] sm:$0xff] %v1770_v26  ;;  %v693_v14 = vadd.f32 %v2954_v12, %v2883_v34 }
  0xfa   : > { %v1158_v31 = vmul.f32 %v3206_v35, %v738_v53  ;;  %v1164_v25 = vmul.f32 %v3206_v35, %v736_v29  ;;  %v1168_v27 = vmul.f32 %v3203_v41, %v738_v53  ;;  %1780 = vst [vmem:[#allocation2 + $0x28] sm:$0xff] %v1778_v63  ;;  %v694_v20 = vadd.f32 %v2958_v5, %v2886_v3 }
  0xfb   : > { %v1174_v28 = vsub.f32 %v736_v29, %v738_v53  ;;  %v1371_v32 = vsel %vm1288_vm8, %v1370_v56, %v1369_v0  ;;  %2211 = vrsqrt.f32 %v3222_v55  ;;  %v701_v38 = vadd.f32 %v3093_v49, %v2932_v50 }
  0xfc   : > { %v702_v34 = vadd.f32 %v3105_v4, %v2939_v42  ;;  %v1374_v12 = vsel %vm3214_vm7, %v2785_v19, %v1371_v32  ;;  %v1375_v40 = vsel %vm3214_vm7, 0, %v1373_v58  ;;  %v716_v51 = vadd.f32 %v714_v47, %v710_v15 }
  0xfd   : > { %v726_v17 = vadd.f32 %v724_v57, %v720_v23  ;;  %v1156_v3 = vmul.f32 %v1154_v8, %v3203_v41  ;;  %2213 = vcosq.f32 %v1374_v12  ;;  %v1160_v5 = vmul.f32 %v1158_v31, %v3206_v35  ;;  %v3383_v31 = vld [vmem:[#allocation10_spill] sm:$0xff] }
  0xfe   : > { %v1166_v1 = vmul.f32 %v1164_v25, %v3206_v35  ;;  %v1170_v50 = vmul.f32 %v1168_v27, %v3203_v41  ;;  %2215 = vsinq.f32 %v1374_v12  ;;  %v623_v42 = vmul.f32 0.25, %v2761_v11 }
  0xff   : > { %v695_v49 = vadd.f32 %v693_v14, %v2889_v45  ;;  %v1176_v4 = vmul.f32 %v1174_v28, %v3203_v41  ;;  %v1586_v24 = vadd.s32 3, %v1375_v40  ;;  %v630_v15 = vmul.f32 0.25, %v2821_v33 }
 0x100   : > { %v696_v46 = vadd.f32 %v694_v20, %v2892_v18  ;;  %v703_v47 = vadd.f32 %v701_v38, %v2942_v61  ;;  %v704_v29 = vadd.f32 %v702_v34, %v3381_v30  ;;  %v631_v39 = vmul.f32 0.25, %v3382_v21 }
 0x101   : > { %v3255_v36 = vadd.f32 %v3176_v16, %v3143_v43  ;;  %v3259_v11 = vadd.f32 %v3178_v10, %v3145_v37  ;;  %v3263_v45 = vadd.f32 %v3170_v44, %v3140_v54  ;;  %v3265_v33 = vadd.f32 %v1160_v5, %v1156_v3 }
 0x102   : > { %v3267_v18 = vadd.f32 %v1170_v50, %v1166_v1  ;;  %v1180_v61 = vmul.f32 0.083333336, %v716_v51  ;;  %v1182_v9 = vmul.f32 0.083333336, %v726_v17  ;;  %v697_v6 = vmul.f32 0.25, %v695_v49 }
 0x103   : > { %v3270_v23 = vmul.f32 %v1176_v4, %v3206_v35  ;;  %v1379_v43 = vand.u32 3, %v1375_v40  ;;  %v1587_v16 = vand.u32 3, %v1586_v24  ;;  %v698_v53 = vmul.f32 0.25, %v696_v46 }
 0x104   : > { %v705_v48 = vmul.f32 0.25, %v703_v47  ;;  %v706_v37 = vmul.f32 0.25, %v704_v29  ;;  %vm1378_vm9 = vweird.f32 %v2785_v19  ;;  %v1629_v54 = vmul.f32 %v3259_v11, %v3255_v36 }
 0x105   : > { %v2212_v10 = vpop.eup %2211  ;;  %v1631_v44 = vmul.f32 %v3263_v45, %v3263_v45  ;;  %vm1689_vm10 = vcmp.eq.f32.partialorder %v3222_v55, inf  ;;  %v1692_v2 = vand.u32 2147483648, %v3222_v55  ;;  %v1618_v0 = vsub.f32 %v1180_v61, %v1182_v9 }
 0x106   : > { %v1670_v62 = vmul.f32 %v3267_v18, %v3265_v33  ;;  %v1688_v26 = vmul.f32 %v2212_v10, %v3222_v55  ;;  %vm1691_vm11 = vcmp.eq.f32.partialorder %v3222_v55, 0.0  ;;  %vm1380_vm12 = vcmp.lt.s32.totalorder %v1379_v43, 2 }
 0x107   : > { %v2214_v13 = vpop.eup %2213  ;;  %vm1384_vm13 = vcmp.eq.s32.totalorder %v1379_v43, 2  ;;  %vm1592_vm14 = vcmp.eq.s32.totalorder %v1587_v16, 2  ;;  %v1672_v22 = vmul.f32 %v3270_v23, %v3270_v23  ;;  %vm1381_vm15 = vcmp.eq.s32.totalorder %v1379_v43, 0 }
 0x108   : > { %v2216_v57 = vpop.eup %2215  ;;  %v1385_v7 = vxor.u32 2147483648, %v2214_v13  ;;  %vm1589_vm0 = vcmp.eq.s32.totalorder %v1587_v16, 0  ;;  %v1690_v52 = vsel %vm1689_vm10, %v3222_v55, %v1688_v26  ;;  %vm1588_vm1 = vcmp.lt.s32.totalorder %v1587_v16, 2 }
 0x109   : > { %v1382_v63 = vxor.u32 2147483648, %v2216_v57  ;;  %v1633_v8 = vsub.f32 %v1629_v54, %v1631_v44  ;;  %v1693_v56 = vsel %vm1691_vm11, %v1692_v2, %v1690_v52  ;;  %v1641_v25 = vsub.f32 %v3383_v31, %v697_v6  ;;  %v1767_v2 = vld [vmem:[#allocation2 + $0x18] sm:$0xff] }
 0x10a   : > { %v1386_v58 = vsel %vm1384_vm13, %v1385_v7, %v2216_v57  ;;  %v1594_v14 = vsel %vm1592_vm14, %v1385_v7, %v2216_v57  ;;  %v1701_v27 = vmul.f32 4.0, %v1693_v56  ;;  %v1642_v32 = vsub.f32 %v623_v42, %v698_v53 }
 0x10b   : > { %v1383_v20 = vsel %vm1381_vm15, %v2214_v13, %v1382_v63  ;;  %v1591_v28 = vsel %vm1589_vm0, %v2214_v13, %v1382_v63  ;;  %v3287_v38 = vsub.f32 %v630_v15, %v705_v48  ;;  %v1644_v40 = vsub.f32 %v631_v39, %v706_v37 }
 0x10c   : > { %v1387_v34 = vsel %vm1380_vm12, %v1383_v20, %v1386_v58  ;;  %v1595_v12 = vsel %vm1588_vm1, %v1591_v28, %v1594_v14  ;;  %v1703_v51 = vadd.f32 1e-07, %v1701_v27  ;;  %v1635_v3 = vmax.f32 %v1633_v8, 0.0 }
 0x10d   : > { %v1388_v55 = vsel %vm1378_vm9, nan, %v1387_v34  ;;  %v1596_v17 = vsel %vm1378_vm9, nan, %v1595_v12  ;;  %v1674_v5 = vsub.f32 %v1670_v62, %v1672_v22  ;;  %v1660_v19 = vsub.f32 0.0, %v1642_v32 }
 0x10e   : > { %v1598_v1 = vmul.f32 %v1388_v55, %v1180_v61  ;;  %v1602_v50 = vmul.f32 %v1596_v17, %v1182_v9  ;;  %v1608_v49 = vmul.f32 %v1596_v17, %v1180_v61  ;;  %v1612_v4 = vmul.f32 %v1388_v55, %v1182_v9 }
 0x10f   : > { %v1620_v42 = vmul.f32 %v1618_v0, %v1388_v55  ;;  %2217 = vrcp.f32 %v1703_v51  ;;  %v1750_v24 = vmul.f32 %v1388_v55, %v3203_v41  ;;  %v1752_v15 = vmul.f32 %v1596_v17, %v3206_v35 }
 0x110   : > { %v1600_v46 = vmul.f32 %v1598_v1, %v1388_v55  ;;  %v1604_v47 = vmul.f32 %v1602_v50, %v1596_v17  ;;  %v1610_v30 = vmul.f32 %v1608_v49, %v1596_v17  ;;  %v1614_v29 = vmul.f32 %v1612_v4, %v1388_v55 }
 0x111   : > { %v1622_v21 = vmul.f32 %v1620_v42, %v1596_v17  ;;  %v1637_v39 = vadd.f32 1e-07, %v1635_v3  ;;  %v1754_v6 = vadd.f32 %v1752_v15, %v1750_v24  ;;  %v1659_v53 = vsub.f32 0.0, %v1641_v25 }
 0x112   : > { %v1606_v43 = vadd.f32 %v1604_v47, %v1600_v46  ;;  %v1616_v16 = vadd.f32 %v1614_v29, %v1610_v30  ;;  %v1676_v48 = vmax.f32 %v1674_v5, 0.0  ;;  %v1645_v9 = vmul.f32 %v3287_v38, %v3255_v36 }
 0x113   : > { %v1628_v61 = vadd.f32 %v1622_v21, %v3270_v23  ;;  %v1680_v41 = vmul.f32 %v1622_v21, %v1622_v21  ;;  %v1756_v37 = vsub.f32 1.0, %v1754_v6  ;;  %v1649_v54 = vmul.f32 %v1641_v25, %v3259_v11 }
 0x114   : > { %v1624_v35 = vadd.f32 %v1606_v43, %v3265_v33  ;;  %v1626_v10 = vadd.f32 %v1616_v16, %v3267_v18  ;;  %v1678_v44 = vmul.f32 %v1616_v16, %v1606_v43  ;;  %2219 = vrcp.f32 %v1637_v39 }
 0x115   : > { %v1632_v0 = vmul.f32 %v1628_v61, %v1628_v61  ;;  %v1662_v62 = vmul.f32 %v1660_v19, %v1628_v61  ;;  %v1769_v26 = vmul.f32 %v3209_v60, %v1756_v37  ;;  %v1647_v11 = vmul.f32 %v1645_v9, %v3287_v38 }
 0x116   : > { %v1630_v13 = vmul.f32 %v1626_v10, %v1624_v35  ;;  %v1646_v23 = vmul.f32 %v1644_v40, %v1624_v35  ;;  %v1650_v22 = vmul.f32 %v1642_v32, %v1626_v10  ;;  %v1682_v57 = vsub.f32 %v1678_v44, %v1680_v41 }
 0x117   : > { %v1664_v36 = vmul.f32 %v1662_v62, %v1644_v40  ;;  %v1771_v7 = vadd.f32 %v1769_v26, %v1767_v2  ;;  %v1651_v56 = vmul.f32 %v1649_v54, %v1641_v25  ;;  %v1661_v58 = vmul.f32 %v1659_v53, %v3263_v45 }
 0x118   : > { %v1634_v52 = vsub.f32 %v1630_v13, %v1632_v0  ;;  %v1648_v63 = vmul.f32 %v1646_v23, %v1644_v40  ;;  %v1652_v33 = vmul.f32 %v1650_v22, %v1642_v32  ;;  %v1684_v8 = vmax.f32 %v1682_v57, 0.0 }
 0x119   : > { %v2218_v18 = vpop.eup %2217  ;;  %1773 = vst [vmem:[#allocation2 + $0x18] sm:$0xff] %v1771_v7  ;;  %v1653_v12 = vadd.f32 %v1651_v56, %v1647_v11  ;;  %v1663_v40 = vmul.f32 %v1661_v58, %v3287_v38  ;;  %vm1834_vm11 = vcmask (!%p2081_p11), 24576  }
 0x11a   : > { %v1636_v14 = vmax.f32 %v1634_v52, 0.0  ;;  %v1654_v31 = vadd.f32 %v1652_v33, %v1648_v63  ;;  %v1686_v27 = vmul.f32 %v1684_v8, %v1676_v48  ;;  %v1707_v20 = vmul.f32 %v2218_v18, %v1635_v3  ;;  %v1757_v52 = vld [vmem:[#allocation2] sm:$0xff] }
 0x11c   : > { %v1638_v28 = vadd.f32 1e-07, %v1636_v14  ;;  %2221 = vrsqrt.f32 %v1686_v27  ;;  %v1709_v34 = vadd.f32 1e-07, %v1707_v20  ;;  %vm1696_vm2 = vcmp.eq.f32.partialorder %v1686_v27, inf  ;;  %v1758_v20 = vld [vmem:[#allocation2 + $0x8] sm:$0xff] }
 0x11d   : > { %v1699_v45 = vand.u32 2147483648, %v1686_v27  ;;  %vm1698_vm3 = vcmp.eq.f32.partialorder %v1686_v27, 0.0 }
 0x11e   : > { %2223 = vrcp.f32 %v1638_v28  ;;  %v2220_v32 = vpop.eup %2219 }
 0x11f   : > { %2225 = vlog2.f32 %v1709_v34  ;;  %v1655_v51 = vmul.f32 %v2220_v32, %v1653_v12  ;;  %v1665_v55 = vmul.f32 %v2220_v32, %v1663_v40  ;;  %v1810_v12 = vld [vmem:[#allocation2 + $0x28] sm:$0xff] (!%p2081_p11) }
 0x121   : > { %v1657_v25 = vmul.f32 0.25, %v1655_v51  ;;  %v1667_v5 = vmul.f32 0.5, %v1665_v55  ;;  %v1797_v55 = vld [vmem:[#allocation2 + $0x10] sm:$0xff] (!%p2081_p11) }
 0x123   : > { %v1717_v46 = vadd.f32 %v1667_v5, %v1657_v25 }
 0x126   : > { %v2222_v17 = vpop.eup %2221 }
 0x127   : > { %v1695_v1 = vmul.f32 %v2222_v17, %v1686_v27  ;;  %v1798_v17 = vld [vmem:[#allocation2 + $0x18] sm:$0xff] (!%p2081_p11) }
 0x128   : > { %v2224_v50 = vpop.eup %2223  ;;  %v1799_v5 = vadd.f32 (!%p2081_p11), %v1798_v17, %v1797_v55 }
 0x129   : > { %v2226_v3 = vpop.eup %2225  ;;  %v1656_v49 = vmul.f32 %v2224_v50, %v1654_v31  ;;  %v1666_v4 = vmul.f32 %v2224_v50, %v1664_v36  ;;  %v1697_v42 = vsel %vm1696_vm2, %v1686_v27, %v1695_v1 }
 0x12a   : > { %v1700_v24 = vsel %vm1698_vm3, %v1699_v45, %v1697_v42  ;;  %v1712_v15 = vmul.f32 0.6931472, %v2226_v3 }
 0x12b   : > { %v1658_v38 = vmul.f32 0.25, %v1656_v49  ;;  %v1668_v47 = vmul.f32 0.5, %v1666_v4  ;;  %v1702_v30 = vmul.f32 4.0, %v1700_v24 }
 0x12c   : > { %v1715_v29 = vmul.f32 0.5, %v1712_v15 }
 0x12d   : > { %v1704_v21 = vadd.f32 1e-07, %v1702_v30  ;;  %v1718_v39 = vadd.f32 %v1668_v47, %v1658_v38 }
 0x12e   : > { %v1719_v19 = vadd.f32 %v1717_v46, %v1715_v29 }
 0x12f   : > { %2227 = vrcp.f32 %v1704_v21 }
 0x130   : > { %v1721_v6 = vmax.f32 %v1719_v19, 1e-07 }
 0x132   : > { %v1723_v43 = vmin.f32 %v1721_v6, 100.0 }
 0x134   : > { %v1725_v16 = vsub.f32 0.0, %v1723_v43 }
 0x136   : > { %v1727_v53 = vmul.f32 1.442695, %v1725_v16 }
 0x138   : > { %2229 = vpow2.f32 %v1727_v53  ;;  %v1821_v53 = vlaneseq (!%p2081_p11) }
 0x139   : > { %v2228_v48 = vpop.eup %2227 }
 0x13a   : > { %v1708_v61 = vmul.f32 %v2228_v48, %v1636_v14  ;;  %v1822_v48 = vand.u32 (!%p2081_p11), 127, %v1821_v53 }
 0x13c   : > { %v1710_v9 = vadd.f32 1e-07, %v1708_v61  ;;  %vm1823_vm8 = vcmp.eq.s32.totalorder (!%p2081_p11), %v1822_v48, 0  ;;  %vm1826_vm9 = vcmp.eq.s32.totalorder (!%p2081_p11), %v1822_v48, 1  ;;  %vm1830_vm10 = vcmp.eq.s32.totalorder (!%p2081_p11), %v1822_v48, 2 }
 0x13e   : > { %2231 = vlog2.f32 %v1710_v9 }
 0x142   : > { %v2230_v41 = vpop.eup %2229 }
 0x143   : > { %v1731_v37 = vsub.f32 1.0, %v2230_v41 }
 0x145   : > { %v1733_v35 = vadd.f32 1e-07, %v1731_v37 }
 0x147   : > { %2233 = vrsqrt.f32 %v1733_v35  ;;  %vm1737_vm4 = vcmp.eq.f32.partialorder %v1733_v35, inf  ;;  %v1740_v13 = vand.u32 2147483648, %v1733_v35  ;;  %vm1739_vm5 = vcmp.eq.f32.partialorder %v1733_v35, 0.0 }
 0x148   : > { %v2232_v10 = vpop.eup %2231 }
 0x149   : > { %v1714_v54 = vmul.f32 0.6931472, %v2232_v10 }
 0x14b   : > { %v1716_v44 = vmul.f32 0.5, %v1714_v54 }
 0x14d   : > { %v1720_v2 = vadd.f32 %v1718_v39, %v1716_v44 }
 0x14f   : > { %v1722_v0 = vmax.f32 %v1720_v2, 1e-07 }
 0x151   : > { %v2234_v62 = vpop.eup %2233  ;;  %v1724_v26 = vmin.f32 %v1722_v0, 100.0 }
 0x152   : > { %v1736_v23 = vmul.f32 %v2234_v62, %v1733_v35 }
 0x153   : > { %v1726_v22 = vsub.f32 0.0, %v1724_v26 }
 0x154   : > { %v1738_v57 = vsel %vm1737_vm4, %v1733_v35, %v1736_v23 }
 0x155   : > { %v1729_v36 = vmul.f32 1.442695, %v1726_v22  ;;  %v1741_v7 = vsel %vm1739_vm5, %v1740_v13, %v1738_v57 }
 0x156   : > { %v1759_v63 = vmul.f32 %v3185_v59, %v1741_v7  ;;  %v1809_v59 = vld [vmem:[#allocation2 + $0x20] sm:$0xff] (!%p2081_p11) }
 0x157   : > { %2235 = vpow2.f32 %v1729_v36  ;;  %v1811_v32 = vadd.f32 (!%p2081_p11), %v1810_v12, %v1809_v59 }
 0x158   : > { %v1761_v33 = vadd.f32 %v1759_v63, %v1757_v52 }
 0x159   : > { %1812 = vadd.xlane.f32.xlu1 (!%p2081_p11), %v1811_v32 }
 0x15a   : > { %1763 = vst [vmem:[#allocation2] sm:$0xff] %v1761_v33 }
 0x161   : > { %v2236_v8 = vpop.eup %2235  ;;  %v1785_v40 = vld [vmem:[#allocation2] sm:$0xff] (!%p2081_p11) }
 0x162   : > { %v1732_v18 = vsub.f32 1.0, %v2236_v8 }
 0x164   : > { %v1734_v11 = vadd.f32 1e-07, %v1732_v18 }
 0x166   : > { %2237 = vrsqrt.f32 %v1734_v11  ;;  %vm1744_vm6 = vcmp.eq.f32.partialorder %v1734_v11, inf  ;;  %v1747_v58 = vand.u32 2147483648, %v1734_v11  ;;  %vm1746_vm7 = vcmp.eq.f32.partialorder %v1734_v11, 0.0 }
 0x170   : > { %v2238_v56 = vpop.eup %2237 }
 0x171   : > { %v1743_v14 = vmul.f32 %v2238_v56, %v1734_v11 }
 0x173   : > { %v1745_v31 = vsel %vm1744_vm6, %v1734_v11, %v1743_v14  ;;  %1784 = sbr.rel (%p2081_p11) target bundleno = 602 (0x25a), region = 162 }
 0x174   : > { %v1748_v27 = vsel %vm1746_vm7, %v1747_v58, %v1745_v31 }
 0x175   : > { %v1760_v28 = vmul.f32 %v3209_v60, %v1748_v27 }
 0x177   : > { %v1762_v34 = vadd.f32 %v1760_v28, %v1758_v20 }
 0x179   : > { %1764 = vst [vmem:[#allocation2 + $0x8] sm:$0xff] %v1762_v34 }
 0x180   : > { %v1786_v51 = vld [vmem:[#allocation2 + $0x8] sm:$0xff] }
 0x181   : > { %v1787_v25 = vadd.f32 %v1786_v51, %v1785_v40 }
 0x183   : > { %1788 = vadd.xlane.f32.xlu0 %v1787_v25 }
 0x187   : > { %1800 = vadd.xlane.f32.xlu0 %v1799_v5 }
 0x1e6   : > { %v1813_v45 = vpop.xlane.xlu1 %1812 }
 0x1e7   : > { %v1814_v1 = vrot.slane %v1813_v45, 4 }
 0x1e9   : > { %v1815_v3 = vadd.f32 %v1814_v1, %v1813_v45 }
 0x1eb   : > { %v1816_v4 = vrot.slane %v1815_v3, 2 }
 0x1ed   : > { %v1817_v47 = vadd.f32 %v1816_v4, %v1815_v3 }
 0x1ef   : > { %v1818_v19 = vrot.slane %v1817_v47, 1 }
 0x1f1   : > { %v1819_v16 = vadd.f32 %v1818_v19, %v1817_v47 }
 0x210   : > { %v1789_v60 = vpop.xlane.xlu0 %1788 }
 0x211   : > { %v1790_v50 = vrot.slane %v1789_v60, 4 }
 0x213   : > { %v1791_v49 = vadd.f32 %v1790_v50, %v1789_v60 }
 0x214   : > { %v1801_v42 = vpop.xlane.xlu0 %1800 }
 0x215   : > { %v1792_v24 = vrot.slane %v1791_v49, 2  ;;  %v1802_v15 = vrot.slane %v1801_v42, 4 }
 0x217   : > { %v1803_v46 = vadd.f32 %v1802_v15, %v1801_v42  ;;  %v1793_v38 = vadd.f32 %v1792_v24, %v1791_v49 }
 0x219   : > { %v1804_v30 = vrot.slane %v1803_v46, 2  ;;  %v1794_v29 = vrot.slane %v1793_v38, 1 }
 0x21b   : > { %v1805_v21 = vadd.f32 %v1804_v30, %v1803_v46  ;;  %v1795_v39 = vadd.f32 %v1794_v29, %v1793_v38 }
 0x21d   : > { %2103 = vpush %v1795_v39  ;;  %v1806_v6 = vrot.slane %v1805_v21, 1 }
 0x21f   : > { %v1807_v43 = vadd.f32 %v1806_v6, %v1805_v21 }
 0x221   : > { %2105 = vpush %v1807_v43 }
 0x222   : > { %2107 = vpush %v1819_v16 }
 0x24e   : > { %s2104_s17 = spop %2103 }
 0x24f   : > { %v1824_v61 = vstv %s2104_s17 }
 0x250   : > { %v1825_v41 = vsel %vm1823_vm8, %v1824_v61, 0.0 }
 0x252   : > { %s2106_s18 = spop %2105 }
 0x253   : > { %v1827_v9 = vstv %s2106_s18  ;;  %s2108_s8 = spop %2107 }
 0x254   : > { %v1828_v37 = vsel %vm1826_vm9, %v1827_v9, 0.0  ;;  %v1831_v35 = vstv %s2108_s8 }
 0x255   : > { %v1829_v10 = vadd.f32 %v1828_v37, %v1825_v41  ;;  %v1832_v54 = vsel %vm1830_vm10, %v1831_v35, 0.0 }
 0x257   : > { %v1833_v44 = vadd.f32 %v1832_v54, %v1829_v10 }
 0x259   : > { %1835 = vst.msk [vmem:[%s560_s12] sm:$0x1] %vm1834_vm11, %v1833_v44 }
 0x25a PF: > { %s15_s23 = sadd.s32 1, %s2329_s23   ;;  %s3384_s19 = sld [smem:[#allocation9_spill]] }
 0x25b   : > { %p12_p12 = scmp.ge.s32.totalorder %s15_s23, 10   ;;  %s3385_s15 = smov %s2301_s16 }
 0x25c   : > { %s3386_s16 = smov %s2460_s22  ;;  %s3387_s17 = smov %s2317_s20 }
 0x25d   : > { %s3388_s18 = smov %s2321_s21  ;;  %s3389_s20 = smov %s3393_s24 }
 0x25e   : > { %s3390_s21 = smov %s3397_s25  ;;  %s3391_s22 = smov %s3401_s28 }
 0x25f   :  { %14 = sbr.rel (!%p12_p12) target bundleno = 7 (0x7), region = 232 }
 0x266   :  { %1861 = vsyncpa [#allocation4], 1 }
 0x267   :  { %1863 = vsyncpa [#allocation4 + $0x1], 1 }

// kernel: _multi_task_loss_impl.2
= control target key start
LH: loop header
LB: loop body
LE: loop exit
PB: predicated region body
PF: predicated region fallthrough
CT: control target
= control target key end

     0   :  { %s1118_s9 = smov 0   ;;  %s1120_s10 = smov 0   ;;  %s1778_s0 = inlined_call_operand.vmem [shape: f32[2,6,64,128], index: 0, kind: input, shape index: {}]   ;;  %s1779_s1 = inlined_call_operand.vmem [shape: s32[2,64,128], index: 1, kind: input, shape index: {}]   ;;  %s1780_s2 = inlined_call_operand.vmem [shape: f32[2,2,1,1], index: 2, kind: output, shape index: {}]  }
   0x1   :  { %s1122_s11 = smov 0   ;;  %s1124_s12 = smov 0  }
   0x2   :  { %s1126_s13 = smov 0   ;;  %s1128_s14 = smov 0  }
   0x3   :  { %s1130_s15 = smov 0   ;;  %s1132_s16 = smov 0  }
   0x4   :  { %s1134_s17 = smov 0  }
   0x5 LB: > { %s24_s18 = sadd.s32 1, %s1087_s14  ;;  %s27_s19 = sadd.s32 1, %s1091_s15  ;;  %s1099_s17 = sphi %s1134_s17, %s12_s17   ;;  %s1095_s16 = sphi %s1132_s16, %s1856_s16   ;;  %s1091_s15 = sphi %s1130_s15, %s1855_s15   ;;  %s1087_s14 = sphi %s1128_s14, %s1854_s14   ;;  %s1083_s13 = sphi %s1126_s13, %s1853_s13   ;;  %s1079_s12 = sphi %s1124_s12, %s1852_s12   ;;  %s1075_s11 = sphi %s1122_s11, %s1851_s11   ;;  %s1071_s10 = sphi %s1120_s10, %s1850_s10   ;;  %s1067_s9 = sphi %s1118_s9, %s1849_s9  }
   0x6   : > { %p25_p0 = scmp.ge.s32.totalorder %s24_s18, 2  ;;  %s31_s20 = sadd.s32 1, %s1095_s16 }
   0x7   : > { %p51_p1 = scmp.ne.s32.totalorder %s1071_s10, %s1067_s9  ;;  %p52_p3 = scmp.eq.s32.totalorder %s1099_s17, 0 }
   0x8   : > { %s1858_s19 = smov (!%p25_p0, %s27_s19), %s1091_s15  ;;  %s845_s22 = sshll.u32 %s1095_s16, 1 }
   0x9   : > { %p29_p2 = scmp.ge.s32.totalorder %s1858_s19, 2  ;;  %p1173_p4 = por %p52_p3, %p51_p1 }
   0xa   : > { %s1864_s18 = smov (%p25_p0, %s24_s18), 0  ;;  %s36_s23 = sadd.s32 %s1087_s14, %s845_s22 }
   0xb   : > { %s1860_s19 = smov (%p29_p2, %s1858_s19), 0  ;;  %s1862_s20 = smov (!%p29_p2, %s31_s20), %s1095_s16 }
   0xc   : > { %p33_p5 = scmp.ge.s32.totalorder %s1862_s20, 2  ;;  %s39_s25 = ssub.s32 %s1091_s15, %s1860_s19 }
   0xd   : > { %s44_s29 = sadd.s32 1, %s1071_s10  ;;  %p850_p7 = scmp.ge.s32.totalorder %s1099_s17, 8 }
   0xe   : > { %s1866_s20 = smov (%p33_p5, %s1862_s20), 0 }
   0xf   : > { %s846_s24 = sshll.u32 %s1866_s20, 1  ;;  %137 = sbr.rel (%p850_p7) target bundleno = 36 (0x24), region = 16 }
  0x10   : > { %s38_s26 = sadd.s32 %s846_s24, %s1864_s18 }
  0x11   : > { %s40_s27 = ssub.s32 %s36_s23, %s38_s26 }
  0x12   : > { %s41_s28 = sor.u32 %s40_s27, %s39_s25 }
  0x13   : > { %p42_p6 = scmp.eq.s32.totalorder %s41_s28, 0 }
  0x15   : > { %s1189_s30 = scalar_select %p42_p6, %s1071_s10, %s44_s29  }
  0x16   : > { %140 = sbr.rel (!%p1173_p4) target bundleno = 36 (0x24), region = 20  ;;  %s142_s3 = sand.u32 (%p1173_p4), 1, %s1071_s10  }
  0x17   : > { %s878_s4 = smul.u32 (%p1173_p4), 96, %s142_s3  ;;  %s852_s5 = sshll.u32 (%p1173_p4), %s36_s23, 1 }
  0x18   : > { %s879_s6 = smul.u32 (%p1173_p4), 48, %s1091_s15 }
  0x19   : > { %s144_s26 = scalar_lea.vmem (%p1173_p4), [#allocation3], %s878_s4 }
  0x1a   : > { %s149_s7 = sadd.s32 (%p1173_p4), %s879_s6, %s852_s5 }
  0x1b   : > { %s853_s8 = sshll.u32 (%p1173_p4), %s149_s7, 3 }
  0x1c   : > { %s151_s25 = scalar_lea.vmem (%p1173_p4), %s1778_s0, %s853_s8 }
  0x1d   : > { %v201_v0 = vld [vmem:[%s151_s25] sm:$0xff]  ;;  %v203_v1 = vld [vmem:[%s151_s25 + $0x8] sm:$0xff] }
  0x1e   : > { %v205_v2 = vld [vmem:[%s151_s25 + $0x40] sm:$0xff]  ;;  %202 = vst [vmem:[%s144_s26] sm:$0xff] %v201_v0  ;;  %204 = vst [vmem:[%s144_s26 + $0x8] sm:$0xff] %v203_v1  ;;  %v207_v3 = vld [vmem:[%s151_s25 + $0x48] sm:$0xff] }
  0x1f   : > { %206 = vst [vmem:[%s144_s26 + $0x10] sm:$0xff] %v205_v2  ;;  %v209_v4 = vld [vmem:[%s151_s25 + $0x80] sm:$0xff]  ;;  %v211_v5 = vld [vmem:[%s151_s25 + $0x88] sm:$0xff]  ;;  %208 = vst [vmem:[%s144_s26 + $0x18] sm:$0xff] %v207_v3 }
  0x20   : > { %210 = vst [vmem:[%s144_s26 + $0x20] sm:$0xff] %v209_v4  ;;  %212 = vst [vmem:[%s144_s26 + $0x28] sm:$0xff] %v211_v5  ;;  %v213_v6 = vld [vmem:[%s151_s25 + $0xc0] sm:$0xff]  ;;  %v215_v7 = vld [vmem:[%s151_s25 + $0xc8] sm:$0xff] }
  0x21   : > { %v217_v8 = vld [vmem:[%s151_s25 + $0x100] sm:$0xff]  ;;  %214 = vst [vmem:[%s144_s26 + $0x30] sm:$0xff] %v213_v6  ;;  %216 = vst [vmem:[%s144_s26 + $0x38] sm:$0xff] %v215_v7  ;;  %v219_v9 = vld [vmem:[%s151_s25 + $0x108] sm:$0xff] }
  0x22   : > { %218 = vst [vmem:[%s144_s26 + $0x40] sm:$0xff] %v217_v8  ;;  %v221_v10 = vld [vmem:[%s151_s25 + $0x140] sm:$0xff]  ;;  %v223_v11 = vld [vmem:[%s151_s25 + $0x148] sm:$0xff]  ;;  %220 = vst [vmem:[%s144_s26 + $0x48] sm:$0xff] %v219_v9 }
  0x23   : > { %222 = vst [vmem:[%s144_s26 + $0x50] sm:$0xff] %v221_v10  ;;  %224 = vst [vmem:[%s144_s26 + $0x58] sm:$0xff] %v223_v11 }
  0x24 PF: > { %p854_p8 = scmp.ge.s32.totalorder %s1099_s17, 1  ;;  %p246_p9 = scmp.lt.s32.totalorder %s1099_s17, 9 }
  0x26   : > { %p247_p10 = pnand %p854_p8, %p246_p9 }
  0x28   : > { %250 = sbr.rel (%p247_p10) target bundleno = 387 (0x183), region = 62 }
  0x2f   : > { %s253_s21 = sand.u32 1, %s1067_s9   ;;  %s855_s23 = sshll.u32 %s1083_s13, 1 }
  0x30   : > { %s880_s27 = smul.u32 96, %s253_s21  ;;  %s291_s28 = sadd.s32 %s1075_s11, %s855_s23 }
  0x31   : > { %s856_s29 = sshll.u32 %s291_s28, 1  ;;  %p293_p11 = scmp.lt.s32.totalorder %s1079_s12, 1 }
  0x32   : > { %p295_p12 = scmp.lt.s32.totalorder %s856_s29, 7  ;;  %p304_p13 = scmp.lt.s32.totalorder %s1083_s13, 1 }
  0x33   : > { %s1868_s12 = smov (!%p293_p11, %s1079_s12), 1  ;;  %s1217_s21 = scalar_lea.vmem [#allocation3], %s880_s27 }
  0x34   : > { %s1870_s29 = smov (!%p295_p12, %s856_s29), 7  ;;  %s857_s3 = sshll.u32 %s1868_s12, 3 }
  0x35   : > { %s298_s4 = sadd.s32 %s857_s3, %s1870_s29  ;;  %s1872_s13 = smov (!%p304_p13, %s1083_s13), 1 }
  0x36   : > { %s858_s5 = sshll.u32 %s298_s4, 3  ;;  %s859_s22 = sshll.u32 %s1872_s13, 1 }
  0x37   : > { %s300_s8 = scalar_lea.vmem %s1779_s1, %s858_s5  ;;  %s1211_s24 = sadd.s32 %s859_s22, %s1868_s12 }
  0x38   : > { %s310_s26 = scalar_lea.vmem %s1780_s2, %s1211_s24  ;;  %p860_p0 = scmp.ne.s32.totalorder %s1075_s11, 0 }
  0x39   : > { %v1101_v12 = vmov (!%p860_p0), 0.0  }
  0x3a   : > { %314 = sbr.rel (%p860_p0) target bundleno = 65 (0x41), region = 70  ;;  %315 = vst [vmem:[#allocation2] sm:$0xff] (!%p860_p0), %v1101_v12  ;;  %316 = vst [vmem:[#allocation2 + $0x8] sm:$0xff] (!%p860_p0), %v1101_v12 }
  0x41 PF: > { %v1221_v13 = vld [vmem:[%s1217_s21] sm:$0xff]  ;;  %v1224_v14 = vld [vmem:[%s1217_s21 + $0x8] sm:$0xff]  ;;  %v1227_v15 = vld [vmem:[%s1217_s21 + $0x10] sm:$0xff]  ;;  %v1781_v36 = vmov 0.0   ;;  %p875_p1 = scmp.ne.s32.totalorder %s1075_s11, 1 }
  0x42   : > { %v373_v16 = vand.u32 2147483647, %v1221_v13  ;;  %v1231_v17 = vld [vmem:[%s1217_s21 + $0x18] sm:$0xff]  ;;  %v1234_v18 = vld [vmem:[%s1217_s21 + $0x20] sm:$0xff]  ;;  %v1236_v19 = vld [vmem:[%s300_s8] sm:$0xff]  ;;  %vm445_vm12 = vcmp.ge.f32.partialorder %v1221_v13, 0.0 }
  0x43   : > { %1794 = vst [vmem:[#allocation4_spill] sm:$0xff] %v1236_v19  ;;  %v1239_v20 = vld [vmem:[%s1217_s21 + $0x28] sm:$0xff]  ;;  %v1241_v21 = vld [vmem:[%s300_s8 + $0x8] sm:$0xff]  ;;  %v1244_v22 = vld [vmem:[%s1217_s21 + $0x30] sm:$0xff]  ;;  %v374_v24 = vand.u32 2147483647, %v1224_v14 }
  0x44   : > { %1795 = vst [vmem:[#allocation5_spill] sm:$0xff] %v1241_v21  ;;  %v1247_v23 = vld [vmem:[%s1217_s21 + $0x38] sm:$0xff]  ;;  %v375_v25 = vand.u32 2147483647, %v1227_v15  ;;  %vm331_vm0 = vcmp.eq.s32.totalorder %v1236_v19, 0  ;;  %v385_v28 = vsub.f32 0.0, %v373_v16 }
  0x45   : > { %v376_v26 = vand.u32 2147483647, %v1231_v17  ;;  %v377_v27 = vand.u32 2147483647, %v1234_v18  ;;  %v1255_v29 = vld [vmem:[%s1217_s21 + $0x40] sm:$0xff]  ;;  %v1258_v30 = vld [vmem:[%s1217_s21 + $0x48] sm:$0xff] }
  0x46   : > { %vm332_vm1 = vcmp.eq.s32.totalorder %v1241_v21, 0  ;;  %vm333_vm2 = vcmp.eq.s32.totalorder %v1236_v19, 1  ;;  %vm334_vm3 = vcmp.eq.s32.totalorder %v1241_v21, 1  ;;  %vm335_vm4 = vcmp.eq.s32.totalorder %v1236_v19, 2  ;;  %v1265_v31 = vld [vmem:[%s1217_s21 + $0x50] sm:$0xff]  ;;  %v1276_v35 = vld [vmem:[%s1217_s21 + $0x58] sm:$0xff] }
  0x47   : > { %vm336_vm5 = vcmp.eq.s32.totalorder %v1241_v21, 2  ;;  %vm337_vm6 = vcmp.eq.s32.totalorder %v1236_v19, 3  ;;  %vm338_vm7 = vcmp.eq.s32.totalorder %v1241_v21, 3  ;;  %v378_v32 = vand.u32 2147483647, %v1239_v20  ;;  %1796 = vst [vmem:[#allocation6_spill] sm:$0xff] %v1276_v35 }
  0x48   : > { %vm339_vm8 = vcmp.eq.s32.totalorder %v1236_v19, 4  ;;  %vm340_vm9 = vcmp.eq.s32.totalorder %v1241_v21, 4  ;;  %v379_v33 = vand.u32 2147483647, %v1244_v22  ;;  %v380_v34 = vand.u32 2147483647, %v1247_v23 }
  0x49   : > { %vm341_vm10 = vcmp.eq.s32.totalorder %v1236_v19, 5  ;;  %vm342_vm11 = vcmp.eq.s32.totalorder %v1241_v21, 5  ;;  %v1283_v37 = vsel %vm331_vm0, 1.0, %v1781_v36  ;;  %v381_v38 = vand.u32 2147483647, %v1255_v29 }
  0x4a   : > { %v386_v39 = vsub.f32 0.0, %v374_v24  ;;  %v387_v40 = vsub.f32 0.0, %v375_v25  ;;  %v388_v41 = vsub.f32 0.0, %v376_v26  ;;  %v389_v42 = vsub.f32 0.0, %v377_v27 }
  0x4b   : > { %v1289_v43 = vsel %vm332_vm1, 1.0, %v1781_v36  ;;  %v382_v44 = vand.u32 2147483647, %v1258_v30  ;;  %v383_v45 = vand.u32 2147483647, %v1265_v31  ;;  %v390_v46 = vsub.f32 0.0, %v378_v32 }
  0x4c   : > { %v384_v47 = vand.u32 2147483647, %v1276_v35  ;;  %v391_v48 = vsub.f32 0.0, %v379_v33  ;;  %v392_v49 = vsub.f32 0.0, %v380_v34  ;;  %v397_v50 = vmul.f32 1.442695, %v385_v28 }
  0x4d   : > { %v399_v51 = vmul.f32 1.442695, %v386_v39  ;;  %v401_v52 = vmul.f32 1.442695, %v387_v40  ;;  %v403_v53 = vmul.f32 1.442695, %v388_v41  ;;  %v493_v12 = vmul.f32 %v1283_v37, %v1221_v13 }
  0x4e   : > { %v1297_v54 = vsel %vm333_vm2, 1.0, %v1781_v36  ;;  %v393_v55 = vsub.f32 0.0, %v381_v38  ;;  %957 = vpow2.f32 %v397_v50  ;;  %v405_v56 = vmul.f32 1.442695, %v389_v42 }
  0x4f   : > { %v1302_v57 = vsel %vm334_vm3, 1.0, %v1781_v36  ;;  %v394_v58 = vsub.f32 0.0, %v382_v44  ;;  %959 = vpow2.f32 %v399_v51  ;;  %v407_v59 = vmul.f32 1.442695, %v390_v46 }
  0x50   : > { %v1307_v60 = vsel %vm335_vm4, 1.0, %v1781_v36  ;;  %v395_v61 = vsub.f32 0.0, %v383_v45  ;;  %961 = vpow2.f32 %v401_v52  ;;  %v409_v62 = vmul.f32 1.442695, %v391_v48 }
  0x51   : > { %v1312_v63 = vsel %vm336_vm5, 1.0, %v1781_v36  ;;  %v396_v0 = vsub.f32 0.0, %v384_v47  ;;  %963 = vpow2.f32 %v403_v53  ;;  %v411_v1 = vmul.f32 1.442695, %v392_v49 }
  0x52   : > { %v1317_v2 = vsel %vm337_vm6, 1.0, %v1781_v36  ;;  %v1322_v3 = vsel %vm338_vm7, 1.0, %v1781_v36  ;;  %965 = vpow2.f32 %v405_v56  ;;  %v413_v4 = vmul.f32 1.442695, %v393_v55 }
  0x53   : > { %v1327_v5 = vsel %vm339_vm8, 1.0, %v1781_v36  ;;  %v1332_v6 = vsel %vm340_vm9, 1.0, %v1781_v36  ;;  %967 = vpow2.f32 %v407_v59  ;;  %v415_v7 = vmul.f32 1.442695, %v394_v58 }
  0x54   : > { %v1337_v8 = vsel %vm341_vm10, 1.0, %v1781_v36  ;;  %v1342_v9 = vsel %vm342_vm11, 1.0, %v1781_v36  ;;  %969 = vpow2.f32 %v409_v62  ;;  %v417_v10 = vmul.f32 1.442695, %v395_v61 }
  0x55   : > { %971 = vpow2.f32 %v411_v1  ;;  %v419_v11 = vmul.f32 1.442695, %v396_v0  ;;  %v494_v16 = vmul.f32 %v1289_v43, %v1224_v14  ;;  %v481_v24 = vmax.f32 %v1221_v13, 0.0 }
  0x56   : > { %973 = vpow2.f32 %v413_v4  ;;  %v482_v25 = vmax.f32 %v1224_v14, 0.0  ;;  %v483_v26 = vmax.f32 %v1227_v15, 0.0  ;;  %v484_v27 = vmax.f32 %v1231_v17, 0.0 }
  0x57   : > { %975 = vpow2.f32 %v415_v7  ;;  %v485_v28 = vmax.f32 %v1234_v18, 0.0  ;;  %v486_v32 = vmax.f32 %v1239_v20, 0.0  ;;  %v487_v34 = vmax.f32 %v1244_v22, 0.0 }
  0x58   : > { %v1354_v33 = vpop.eup %957  ;;  %977 = vpow2.f32 %v417_v10  ;;  %v488_v38 = vmax.f32 %v1247_v23, 0.0  ;;  %v489_v39 = vmax.f32 %v1255_v29, 0.0  ;;  %v490_v42 = vmax.f32 %v1258_v30, 0.0 }
  0x59   : > { %v1359_v40 = vpop.eup %959  ;;  %979 = vpow2.f32 %v419_v11  ;;  %v1362_v41 = vadd.f32 1.0, %v1354_v33  ;;  %v491_v44 = vmax.f32 %v1265_v31, 0.0  ;;  %v492_v47 = vmax.f32 %v1276_v35, 0.0 }
  0x5a   : > { %v1366_v45 = vpop.eup %961  ;;  %v1369_v46 = vadd.f32 1.0, %v1359_v40  ;;  %v495_v48 = vmul.f32 %v1297_v54, %v1227_v15  ;;  %v496_v49 = vmul.f32 %v1302_v57, %v1231_v17  ;;  %v497_v52 = vmul.f32 %v1307_v60, %v1234_v18 }
  0x5b   : > { %v1376_v50 = vpop.eup %963  ;;  %v1379_v51 = vadd.f32 1.0, %v1366_v45  ;;  %981 = vrcp.f32 %v1362_v41  ;;  %v498_v53 = vmul.f32 %v1312_v63, %v1239_v20  ;;  %v499_v58 = vmul.f32 %v1317_v2, %v1244_v22 }
  0x5c   : > { %1797 = vst [vmem:[#allocation7_spill] sm:$0xff] %v1376_v50  ;;  %v1386_v55 = vpop.eup %965  ;;  %v1389_v56 = vadd.f32 1.0, %v1376_v50  ;;  %983 = vrcp.f32 %v1369_v46  ;;  %v500_v59 = vmul.f32 %v1322_v3, %v1247_v23  ;;  %v501_v0 = vmul.f32 %v1327_v5, %v1255_v29 }
  0x5d   : > { %1798 = vst [vmem:[#allocation8_spill] sm:$0xff] %v1386_v55  ;;  %v1396_v61 = vpop.eup %967  ;;  %v1399_v62 = vadd.f32 1.0, %v1386_v55  ;;  %985 = vrcp.f32 %v1379_v51  ;;  %v502_v1 = vmul.f32 %v1332_v6, %v1258_v30  ;;  %v503_v10 = vmul.f32 %v1337_v8, %v1265_v31 }
  0x5e   : > { %1799 = vst [vmem:[#allocation9_spill] sm:$0xff] %v1389_v56  ;;  %1800 = vst [vmem:[#allocation10_spill] sm:$0xff] %v1396_v61  ;;  %v1406_v4 = vpop.eup %969  ;;  %v1409_v7 = vadd.f32 1.0, %v1396_v61  ;;  %987 = vrcp.f32 %v1389_v56  ;;  %v504_v11 = vmul.f32 %v1342_v9, %v1276_v35  ;;  %v1423_v19 = vsub.f32 %v481_v24, %v493_v12 }
  0x5f   : > { %1801 = vst [vmem:[#allocation11_spill] sm:$0xff] %v1399_v62  ;;  %1802 = vst [vmem:[#allocation12_spill] sm:$0xff] %v1406_v4  ;;  %v1416_v36 = vpop.eup %971  ;;  %v1419_v21 = vadd.f32 1.0, %v1406_v4  ;;  %989 = vrcp.f32 %v1399_v62  ;;  %v1425_v61 = vsub.f32 %v482_v25, %v494_v16  ;;  %v1433_v50 = vsub.f32 %v483_v26, %v495_v48 }
  0x60   : > { %v1427_v55 = vpop.eup %973  ;;  %v1430_v56 = vadd.f32 1.0, %v1416_v36  ;;  %991 = vrcp.f32 %v1409_v7  ;;  %v1435_v35 = vsub.f32 %v484_v27, %v496_v49  ;;  %vm446_vm13 = vcmp.ge.f32.partialorder %v1224_v14, 0.0 }
  0x61   : > { %v1437_v4 = vpop.eup %975  ;;  %v1440_v62 = vadd.f32 1.0, %v1427_v55  ;;  %993 = vrcp.f32 %v1419_v21  ;;  %v1444_v12 = vsub.f32 %v485_v28, %v497_v52  ;;  %v1446_v16 = vsub.f32 %v486_v32, %v498_v53 }
  0x62   : > { %v1448_v24 = vpop.eup %977  ;;  %v1451_v25 = vadd.f32 1.0, %v1437_v4  ;;  %995 = vrcp.f32 %v1430_v56  ;;  %vm447_vm14 = vcmp.ge.f32.partialorder %v1227_v15, 0.0  ;;  %v1455_v26 = vsub.f32 %v487_v34, %v499_v58 }
  0x63   : > { %v1457_v27 = vsub.f32 %v488_v38, %v500_v59  ;;  %v1459_v48 = vpop.eup %979  ;;  %v1462_v28 = vadd.f32 1.0, %v1448_v24  ;;  %997 = vrcp.f32 %v1440_v62  ;;  %vm448_vm15 = vcmp.ge.f32.partialorder %v1231_v17, 0.0 }
  0x64   : > { %1803 = vst [vmem:[#allocation13_spill] sm:$0xff] %v1455_v26  ;;  %v1466_v32 = vsub.f32 %v489_v39, %v501_v0  ;;  %v1468_v49 = vsub.f32 %v490_v42, %v502_v1  ;;  %v1471_v52 = vadd.f32 1.0, %v1459_v48  ;;  %999 = vrcp.f32 %v1451_v25 }
  0x65   : > { %1804 = vst [vmem:[#allocation14_spill] sm:$0xff] %v1457_v27  ;;  %vm449_vm0 = vcmp.ge.f32.partialorder %v1234_v18, 0.0  ;;  %vm450_vm1 = vcmp.ge.f32.partialorder %v1239_v20, 0.0  ;;  %v1476_v34 = vsub.f32 %v491_v44, %v503_v10  ;;  %v1478_v38 = vsub.f32 %v492_v47, %v504_v11  ;;  %v982_v53 = vpop.eup %981  ;;  %v1811_v47 = vld [vmem:[#allocation9_spill] sm:$0xff]  ;;  %v1813_v58 = vld [vmem:[#allocation10_spill] sm:$0xff] }
  0x66   : > { %1805 = vst [vmem:[#allocation15_spill] sm:$0xff] %v1466_v32  ;;  %1806 = vst [vmem:[#allocation16_spill] sm:$0xff] %v1468_v49  ;;  %1001 = vrcp.f32 %v1462_v28  ;;  %vm451_vm2 = vcmp.ge.f32.partialorder %v1244_v22, 0.0  ;;  %v984_v59 = vpop.eup %983  ;;  %vm452_vm3 = vcmp.ge.f32.partialorder %v1247_v23, 0.0  ;;  %v457_v44 = vmul.f32 %v982_v53, %v1354_v33  ;;  %v1814_v11 = vld [vmem:[#allocation11_spill] sm:$0xff]  ;;  %v1815_v26 = vld [vmem:[#allocation12_spill] sm:$0xff] }
  0x67   : > { %1807 = vst [vmem:[#allocation17_spill] sm:$0xff] %v1476_v34  ;;  %1808 = vst [vmem:[#allocation18_spill] sm:$0xff] %v1478_v38  ;;  %1003 = vrcp.f32 %v1471_v52  ;;  %v986_v1 = vpop.eup %985  ;;  %vm453_vm4 = vcmp.ge.f32.partialorder %v1255_v29, 0.0  ;;  %vm454_vm5 = vcmp.ge.f32.partialorder %v1258_v30, 0.0  ;;  %v458_v33 = vmul.f32 %v984_v59, %v1359_v40  ;;  %v1809_v38 = vld [vmem:[#allocation6_spill] sm:$0xff]  ;;  %v1810_v40 = vld [vmem:[#allocation7_spill] sm:$0xff] }
  0x68   : > { %1005 = vlog2.f32 %v1362_v41  ;;  %v988_v42 = vpop.eup %987  ;;  %vm455_vm6 = vcmp.ge.f32.partialorder %v1265_v31, 0.0  ;;  %v459_v41 = vmul.f32 %v986_v1, %v1366_v45  ;;  %vm456_vm7 = vcmp.ge.f32.partialorder %v1809_v38, 0.0 }
  0x69   : > { %1007 = vlog2.f32 %v1369_v46  ;;  %v990_v39 = vpop.eup %989  ;;  %v460_v46 = vmul.f32 %v988_v42, %v1810_v40  ;;  %v1509_v0 = vsel %vm445_vm12, %v982_v53, %v457_v44  ;;  %v1513_v34 = vmul.f32 0.25, %v1283_v37 }
  0x6a   : > { %1009 = vlog2.f32 %v1379_v51  ;;  %v992_v10 = vpop.eup %991  ;;  %v1812_v51 = vld [vmem:[#allocation8_spill] sm:$0xff]  ;;  %v1519_v27 = vmul.f32 0.25, %v1289_v43  ;;  %v1524_v53 = vsel %vm446_vm13, %v984_v59, %v458_v33  ;;  %v1529_v44 = vmul.f32 %v1283_v37, %v1509_v0 }
  0x6b   : > { %1011 = vlog2.f32 %v1811_v47  ;;  %v994_v45 = vpop.eup %993  ;;  %v461_v49 = vmul.f32 %v990_v39, %v1812_v51  ;;  %v462_v32 = vmul.f32 %v992_v10, %v1813_v58  ;;  %v1539_v14 = vmul.f32 %v1289_v43, %v1524_v53 }
  0x6c   : > { %1013 = vlog2.f32 %v1814_v11  ;;  %v996_v40 = vpop.eup %995  ;;  %v463_v13 = vmul.f32 %v994_v45, %v1815_v26  ;;  %v1534_v11 = vsel %vm447_vm14, %v986_v1, %v459_v41  ;;  %v1544_v59 = vsel %vm448_vm15, %v988_v42, %v460_v46 }
  0x6d   : > { %1015 = vlog2.f32 %v1409_v7  ;;  %v998_v47 = vpop.eup %997  ;;  %v464_v58 = vmul.f32 %v996_v40, %v1416_v36  ;;  %v1549_v15 = vmul.f32 %v1297_v54, %v1534_v11  ;;  %v1554_v1 = vsel %vm449_vm0, %v990_v39, %v461_v49 }
  0x6e   : > { %1017 = vlog2.f32 %v1419_v21  ;;  %v1000_v26 = vpop.eup %999  ;;  %v465_v7 = vmul.f32 %v998_v47, %v1427_v55  ;;  %v1558_v55 = vsel %vm450_vm1, %v992_v10, %v462_v32  ;;  %v1562_v17 = vmul.f32 %v1302_v57, %v1544_v59 }
  0x6f   : > { %1019 = vlog2.f32 %v1430_v56  ;;  %v466_v21 = vmul.f32 %v1000_v26, %v1437_v4  ;;  %v1567_v33 = vsel %vm451_vm2, %v994_v45, %v463_v13  ;;  %v1572_v18 = vmul.f32 %v1307_v60, %v1554_v1 }
  0x70   : > { %v1002_v36 = vpop.eup %1001  ;;  %1021 = vlog2.f32 %v1440_v62  ;;  %v476_v32 = vsel %vm452_vm3, %v996_v40, %v464_v58  ;;  %v477_v62 = vsel %vm453_vm4, %v998_v47, %v465_v7  ;;  %v1586_v39 = vmul.f32 %v1317_v2, %v1567_v33 }
  0x71   : > { %v1004_v56 = vpop.eup %1003  ;;  %v467_v42 = vmul.f32 %v1002_v36, %v1448_v24  ;;  %1023 = vlog2.f32 %v1451_v25  ;;  %v1580_v24 = vmul.f32 %v1312_v63, %v1558_v55  ;;  %v478_v25 = vsel %vm454_vm5, %v1000_v26, %v466_v21 }
  0x72   : > { %v1006_v20 = vpop.eup %1005  ;;  %v468_v4 = vmul.f32 %v1004_v56, %v1459_v48  ;;  %v1589_v48 = vmul.f32 %v1322_v3, %v476_v32  ;;  %1025 = vlog2.f32 %v1462_v28  ;;  %v1595_v41 = vmul.f32 %v1327_v5, %v477_v62 }
  0x73   : > { %v1008_v22 = vpop.eup %1007  ;;  %v518_v49 = vmul.f32 0.6931472, %v1006_v20  ;;  %v479_v46 = vsel %vm455_vm6, %v1002_v36, %v467_v42  ;;  %1027 = vlog2.f32 %v1471_v52  ;;  %v562_v51 = vmul.f32 %v1332_v6, %v478_v25 }
  0x74   : > { %v1010_v23 = vpop.eup %1009  ;;  %v520_v10 = vmul.f32 0.6931472, %v1008_v22  ;;  %v480_v30 = vsel %vm456_vm7, %v1004_v56, %v468_v4  ;;  %v563_v47 = vmul.f32 %v1337_v8, %v479_v46  ;;  %v565_v28 = vsub.f32 1.0, %v1509_v0 }
  0x75   : > { %v1012_v29 = vpop.eup %1011  ;;  %v522_v45 = vmul.f32 0.6931472, %v1010_v23  ;;  %v1606_v7 = vadd.f32 %v518_v49, %v1423_v19  ;;  %v564_v31 = vmul.f32 %v1342_v9, %v480_v30  ;;  %v566_v52 = vsub.f32 1.0, %v1524_v53 }
  0x76   : > { %v1014_v40 = vpop.eup %1013  ;;  %v524_v13 = vmul.f32 0.6931472, %v1012_v29  ;;  %v1611_v42 = vadd.f32 %v520_v10, %v1425_v61  ;;  %v567_v38 = vsub.f32 1.0, %v1534_v11  ;;  %v568_v56 = vsub.f32 1.0, %v1544_v59 }
  0x77   : > { %v1016_v58 = vpop.eup %1015  ;;  %v526_v26 = vmul.f32 0.6931472, %v1014_v40  ;;  %v1616_v0 = vadd.f32 %v522_v45, %v1433_v50  ;;  %v569_v4 = vsub.f32 1.0, %v1554_v1  ;;  %v570_v53 = vsub.f32 1.0, %v1558_v55 }
  0x78   : > { %v1018_v36 = vpop.eup %1017  ;;  %v528_v21 = vmul.f32 0.6931472, %v1016_v58  ;;  %v1619_v19 = vadd.f32 %v524_v13, %v1435_v35  ;;  %v571_v61 = vsub.f32 1.0, %v1567_v33  ;;  %v572_v11 = vsub.f32 1.0, %v476_v32 }
  0x79   : > { %v1020_v20 = vpop.eup %1019  ;;  %v530_v22 = vmul.f32 0.6931472, %v1018_v36  ;;  %v1624_v49 = vadd.f32 %v526_v26, %v1444_v12  ;;  %v573_v10 = vsub.f32 1.0, %v477_v62  ;;  %v574_v29 = vsub.f32 1.0, %v478_v25 }
  0x7a   : > { %v1022_v23 = vpop.eup %1021  ;;  %v532_v59 = vmul.f32 0.6931472, %v1020_v20  ;;  %v575_v50 = vsub.f32 1.0, %v479_v46  ;;  %v1628_v35 = vadd.f32 %v528_v21, %v1446_v16  ;;  %v576_v40 = vsub.f32 1.0, %v480_v30  ;;  %v1822_v21 = vld [vmem:[#allocation13_spill] sm:$0xff] }
  0x7b   : > { %v1024_v45 = vpop.eup %1023  ;;  %v1816_v1 = vsub.f32 1.0, %v1283_v37  ;;  %v1817_v13 = vsub.f32 1.0, %v1289_v43  ;;  %v1818_v58 = vsub.f32 1.0, %v1297_v54  ;;  %v1819_v32 = vsub.f32 1.0, %v1302_v57 }
  0x7c   : > { %v1820_v62 = vsub.f32 1.0, %v1307_v60  ;;  %v1821_v46 = vsub.f32 1.0, %v1312_v63  ;;  %v1026_v36 = vpop.eup %1025  ;;  %v534_v30 = vmul.f32 0.6931472, %v1022_v23  ;;  %v1643_v20 = vadd.f32 %v530_v22, %v1822_v21 }
  0x7d   : > { %v589_v55 = vmul.f32 %v1816_v1, %v565_v28  ;;  %v590_v12 = vmul.f32 %v1817_v13, %v566_v52  ;;  %v591_v33 = vmul.f32 %v1818_v58, %v567_v38  ;;  %v592_v26 = vmul.f32 %v1819_v32, %v568_v56  ;;  %v1028_v13 = vpop.eup %1027 }
  0x7e   : > { %v593_v25 = vmul.f32 %v1820_v62, %v569_v4  ;;  %v594_v16 = vmul.f32 %v1821_v46, %v570_v53  ;;  %v1823_v28 = vsub.f32 1.0, %v1317_v2  ;;  %v1824_v1 = vsub.f32 1.0, %v1322_v3  ;;  %v1828_v46 = vld [vmem:[#allocation14_spill] sm:$0xff] }
  0x7f   : > { %v536_v58 = vmul.f32 0.6931472, %v1024_v45  ;;  %v1825_v56 = vsub.f32 1.0, %v1327_v5  ;;  %v1826_v4 = vsub.f32 1.0, %v1332_v6  ;;  %v1827_v53 = vsub.f32 1.0, %v1337_v8 }
  0x80   : > { %v595_v52 = vmul.f32 %v1823_v28, %v571_v61  ;;  %v596_v38 = vmul.f32 %v1824_v1, %v572_v11  ;;  %v1656_v22 = vadd.f32 %v532_v59, %v1828_v46  ;;  %v1829_v21 = vsub.f32 1.0, %v1342_v9 }
  0x81   : > { %v597_v32 = vmul.f32 %v1825_v56, %v573_v10  ;;  %v598_v62 = vmul.f32 %v1826_v4, %v574_v29  ;;  %v599_v23 = vmul.f32 %v1827_v53, %v575_v50  ;;  %v601_v28 = vadd.f32 %v589_v55, %v1529_v44 }
  0x82   : > { %v600_v61 = vmul.f32 %v1829_v21, %v576_v40  ;;  %v602_v11 = vadd.f32 %v590_v12, %v1539_v14  ;;  %v603_v45 = vadd.f32 %v591_v33, %v1549_v15  ;;  %v604_v10 = vadd.f32 %v592_v26, %v1562_v17  ;;  %v1831_v26 = vld [vmem:[#allocation16_spill] sm:$0xff] }
  0x83   : > { %v605_v1 = vadd.f32 %v593_v25, %v1572_v18  ;;  %v606_v29 = vadd.f32 %v594_v16, %v1580_v24  ;;  %v538_v56 = vmul.f32 0.6931472, %v1026_v36  ;;  %v540_v50 = vmul.f32 0.6931472, %v1028_v13  ;;  %v1830_v24 = vld [vmem:[#allocation15_spill] sm:$0xff] }
  0x84   : > { %v607_v59 = vadd.f32 %v595_v52, %v1586_v39  ;;  %v608_v4 = vadd.f32 %v596_v38, %v1589_v48  ;;  %v1669_v40 = vadd.f32 %v597_v32, %v1595_v41  ;;  %v1671_v44 = vadd.f32 %v598_v62, %v562_v51  ;;  %v1832_v41 = vld [vmem:[#allocation17_spill] sm:$0xff]  ;;  %v1833_v51 = vld [vmem:[#allocation18_spill] sm:$0xff] }
  0x85   : > { %v1673_v14 = vadd.f32 %v599_v23, %v563_v47  ;;  %v1675_v15 = vadd.f32 %v600_v61, %v564_v31  ;;  %v613_v17 = vsub.f32 1.0, %v601_v28  ;;  %v614_v55 = vsub.f32 1.0, %v602_v11 }
  0x86   : > { %v615_v18 = vsub.f32 1.0, %v603_v45  ;;  %v616_v12 = vsub.f32 1.0, %v604_v10  ;;  %v1678_v33 = vadd.f32 %v534_v30, %v1830_v24  ;;  %v1681_v39 = vadd.f32 %v536_v58, %v1831_v26 }
  0x87   : > { %v617_v48 = vsub.f32 1.0, %v605_v1  ;;  %v618_v25 = vsub.f32 1.0, %v606_v29  ;;  %v1684_v16 = vadd.f32 %v538_v56, %v1832_v41  ;;  %v1687_v47 = vadd.f32 %v540_v50, %v1833_v51 }
  0x88   : > { %v619_v31 = vsub.f32 1.0, %v607_v59  ;;  %v620_v36 = vsub.f32 1.0, %v608_v4  ;;  %v621_v52 = vsub.f32 1.0, %v1669_v40  ;;  %v622_v38 = vsub.f32 1.0, %v1671_v44 }
  0x89   : > { %v623_v30 = vsub.f32 1.0, %v1673_v14  ;;  %v624_v13 = vsub.f32 1.0, %v1675_v15  ;;  %v625_v58 = vmul.f32 %v613_v17, %v613_v17  ;;  %v626_v32 = vmul.f32 %v614_v55, %v614_v55 }
  0x8a   : > { %v627_v62 = vmul.f32 %v615_v18, %v615_v18  ;;  %v628_v53 = vmul.f32 %v616_v12, %v616_v12  ;;  %v629_v23 = vmul.f32 %v617_v48, %v617_v48  ;;  %v630_v46 = vmul.f32 %v618_v25, %v618_v25 }
  0x8b   : > { %v639_v21 = vmul.f32 0.25, %v1297_v54  ;;  %v640_v61 = vmul.f32 0.25, %v1302_v57  ;;  %v641_v28 = vmul.f32 0.25, %v1307_v60  ;;  %v642_v11 = vmul.f32 0.25, %v1312_v63 }
  0x8c   : > { %v643_v45 = vmul.f32 0.25, %v1317_v2  ;;  %v644_v10 = vmul.f32 0.25, %v1322_v3  ;;  %v645_v1 = vmul.f32 0.25, %v1327_v5  ;;  %v646_v29 = vmul.f32 0.25, %v1332_v6 }
  0x8d   : > { %v647_v56 = vmul.f32 0.25, %v1337_v8  ;;  %v648_v50 = vmul.f32 0.25, %v1342_v9  ;;  %v1834_v59 = vsub.f32 1.0, %v1283_v37  ;;  %v1835_v40 = vsub.f32 1.0, %v1289_v43 }
  0x8e   : > { %v1836_v14 = vsub.f32 1.0, %v1297_v54  ;;  %v1837_v17 = vsub.f32 1.0, %v1302_v57  ;;  %v1838_v18 = vsub.f32 1.0, %v1307_v60  ;;  %v1839_v24 = vsub.f32 1.0, %v1312_v63 }
  0x8f   : > { %v649_v4 = vmul.f32 0.75, %v1834_v59  ;;  %v650_v44 = vmul.f32 0.75, %v1835_v40  ;;  %v1840_v48 = vsub.f32 1.0, %v1317_v2  ;;  %v1841_v37 = vsub.f32 1.0, %v1322_v3 }
  0x90   : > { %v651_v15 = vmul.f32 0.75, %v1836_v14  ;;  %v652_v55 = vmul.f32 0.75, %v1837_v17  ;;  %v653_v12 = vmul.f32 0.75, %v1838_v18  ;;  %v654_v26 = vmul.f32 0.75, %v1839_v24 }
  0x91   : > { %v655_v25 = vmul.f32 0.75, %v1840_v48  ;;  %v656_v41 = vmul.f32 0.75, %v1841_v37  ;;  %v1842_v43 = vsub.f32 1.0, %v1327_v5  ;;  %v1843_v54 = vsub.f32 1.0, %v1332_v6 }
  0x92   : > { %v1844_v57 = vsub.f32 1.0, %v1337_v8  ;;  %v1845_v60 = vsub.f32 1.0, %v1342_v9  ;;  %v661_v63 = vadd.f32 %v649_v4, %v1513_v34  ;;  %v662_v2 = vadd.f32 %v650_v44, %v1519_v27  ;;  %v1846_v44 = vld [vmem:[#allocation4_spill] sm:$0xff] }
  0x93   : > { %v657_v51 = vmul.f32 0.75, %v1842_v43  ;;  %v658_v59 = vmul.f32 0.75, %v1843_v54  ;;  %v663_v17 = vadd.f32 %v651_v15, %v639_v21  ;;  %v664_v18 = vadd.f32 %v652_v55, %v640_v61 }
  0x94   : > { %v659_v40 = vmul.f32 0.75, %v1844_v57  ;;  %v660_v14 = vmul.f32 0.75, %v1845_v60  ;;  %v665_v3 = vadd.f32 %v653_v12, %v641_v28  ;;  %v666_v24 = vadd.f32 %v654_v26, %v642_v11 }
  0x95   : > { %v667_v48 = vadd.f32 %v655_v25, %v643_v45  ;;  %v668_v5 = vadd.f32 %v656_v41, %v644_v10  ;;  %v631_v37 = vmul.f32 %v619_v31, %v619_v31  ;;  %v632_v43 = vmul.f32 %v620_v36, %v620_v36  ;;  %v697_v25 = vld [vmem:[#allocation2] sm:$0xff]  ;;  %v698_v41 = vld [vmem:[#allocation2 + $0x8] sm:$0xff] }
  0x96   : > { %v669_v6 = vadd.f32 %v657_v51, %v645_v1  ;;  %v670_v54 = vadd.f32 %v658_v59, %v646_v29  ;;  %v673_v8 = vmul.f32 %v661_v63, %v1606_v7  ;;  %v674_v57 = vmul.f32 %v662_v2, %v1611_v42 }
  0x97   : > { %v675_v9 = vmul.f32 %v663_v17, %v1616_v0  ;;  %v676_v34 = vmul.f32 %v664_v18, %v1619_v19  ;;  %v671_v4 = vadd.f32 %v659_v40, %v647_v56  ;;  %v672_v27 = vadd.f32 %v660_v14, %v648_v50 }
  0x98   : > { %v677_v21 = vmul.f32 %v665_v3, %v1624_v49  ;;  %v678_v61 = vmul.f32 %v666_v24, %v1628_v35  ;;  %v633_v28 = vmul.f32 %v621_v52, %v621_v52  ;;  %v634_v11 = vmul.f32 %v622_v38, %v622_v38 }
  0x99   : > { %v679_v31 = vmul.f32 %v667_v48, %v1643_v20  ;;  %v680_v36 = vmul.f32 %v668_v5, %v1656_v22  ;;  %v685_v45 = vmul.f32 %v673_v8, %v625_v58  ;;  %v686_v7 = vmul.f32 %v674_v57, %v626_v32 }
  0x9a   : > { %v687_v10 = vmul.f32 %v675_v9, %v627_v62  ;;  %v688_v42 = vmul.f32 %v676_v34, %v628_v53  ;;  %v681_v0 = vmul.f32 %v669_v6, %v1678_v33  ;;  %v682_v19 = vmul.f32 %v670_v54, %v1681_v39  ;;  %v1847_v33 = vld [vmem:[#allocation5_spill] sm:$0xff] }
  0x9b   : > { %v689_v1 = vmul.f32 %v677_v21, %v629_v23  ;;  %v690_v29 = vmul.f32 %v678_v61, %v630_v46  ;;  %v635_v56 = vmul.f32 %v623_v30, %v623_v30  ;;  %v636_v49 = vmul.f32 %v624_v13, %v624_v13 }
  0x9c   : > { %v683_v35 = vmul.f32 %v671_v4, %v1684_v16  ;;  %v684_v52 = vmul.f32 %v672_v27, %v1687_v47  ;;  %v691_v38 = vmul.f32 %v679_v31, %v631_v37  ;;  %v692_v20 = vmul.f32 %v680_v36, %v632_v43 }
  0x9d   : > { %v699_v50 = vadd.f32 %v687_v10, %v685_v45  ;;  %v704_v22 = vadd.f32 %v688_v42, %v686_v7  ;;  %v693_v58 = vmul.f32 %v681_v0, %v633_v28  ;;  %v694_v32 = vmul.f32 %v682_v19, %v634_v11 }
  0x9e   : > { %vm367_vm8 = vcmp.ge.s32.totalorder %v1846_v44, 0  ;;  %vm368_vm9 = vcmp.ge.s32.totalorder %v1847_v33, 0  ;;  %v695_v39 = vmul.f32 %v683_v35, %v635_v56  ;;  %v696_v23 = vmul.f32 %v684_v52, %v636_v49 }
  0x9f   : > { %v700_v62 = vadd.f32 %v699_v50, %v689_v1  ;;  %v705_v53 = vadd.f32 %v704_v22, %v690_v29  ;;  %v1848_v15 = vmov 0.0   ;;  %vm732_vm10 = vcmask (!%p875_p1), 0  }
  0xa0   : > { %v873_v47 = vsel %vm367_vm8, 1.0, %v1848_v15  ;;  %v874_v55 = vsel %vm368_vm9, 1.0, %v1848_v15 }
  0xa1   : > { %v701_v30 = vadd.f32 %v700_v62, %v691_v38  ;;  %v706_v13 = vadd.f32 %v705_v53, %v692_v20 }
  0xa3   : > { %v702_v46 = vadd.f32 %v701_v30, %v693_v58  ;;  %v707_v16 = vadd.f32 %v706_v13, %v694_v32 }
  0xa5   : > { %v703_v12 = vadd.f32 %v702_v46, %v695_v39  ;;  %v708_v26 = vadd.f32 %v707_v16, %v696_v23  ;;  %718 = sbr.rel (%p875_p1) target bundleno = 387 (0x183), region = 74 }
  0xa7   : > { %v709_v51 = vmul.f32 %v873_v47, %v703_v12  ;;  %v710_v59 = vmul.f32 %v874_v55, %v708_v26 }
  0xa9   : > { %v711_v40 = vadd.f32 %v709_v51, %v697_v25  ;;  %v712_v60 = vadd.f32 %v710_v59, %v698_v41 }
  0xab   : > { %713 = vst [vmem:[#allocation2] sm:$0xff] %v711_v40  ;;  %714 = vst [vmem:[#allocation2 + $0x8] sm:$0xff] %v712_v60 }
  0xb2   : > { %v719_v14 = vld [vmem:[#allocation2] sm:$0xff]  ;;  %v720_v63 = vld [vmem:[#allocation2 + $0x8] sm:$0xff] }
  0xb3   : > { %v721_v2 = vadd.f32 %v720_v63, %v719_v14 }
  0xb5   : > { %722 = vadd.xlane.f32.xlu0 %v721_v2 }
 0x142   : > { %v723_v17 = vpop.xlane.xlu0 %722 }
 0x143   : > { %v724_v18 = vrot.slane %v723_v17, 4 }
 0x145   : > { %v725_v3 = vadd.f32 %v724_v18, %v723_v17 }
 0x147   : > { %v726_v24 = vrot.slane %v725_v3, 2 }
 0x149   : > { %v727_v48 = vadd.f32 %v726_v24, %v725_v3 }
 0x14b   : > { %v728_v5 = vrot.slane %v727_v48, 1 }
 0x14d   : > { %v729_v37 = vadd.f32 %v728_v5, %v727_v48 }
 0x14f   : > { %881 = vpush %v729_v37 }
 0x180   : > { %s882_s12 = spop %881 }
 0x181   : > { %v731_v43 = vstv %s882_s12 }
 0x182   : > { %733 = vst.msk [vmem:[%s310_s26] sm:$0x1] %vm732_vm10, %v731_v43 }
 0x183 PF: > { %s12_s17 = sadd.s32 1, %s1099_s17   ;;  %s1849_s9 = smov %s1071_s10 }
 0x184   : > { %p9_p2 = scmp.ge.s32.totalorder %s12_s17, 10   ;;  %s1850_s10 = smov %s1189_s30 }
 0x185   : > { %s1851_s11 = smov %s1087_s14  ;;  %s1852_s12 = smov %s1091_s15 }
 0x186   : > { %s1853_s13 = smov %s1095_s16  ;;  %s1854_s14 = smov %s1864_s18 }
 0x187   : > { %s1855_s15 = smov %s1860_s19  ;;  %s1856_s16 = smov %s1866_s20 }
 0x188   :  { %11 = sbr.rel (!%p9_p2) target bundleno = 5 (0x5), region = 112 }

</bundles_post_ra>
